<compile_context>
chip_gen: v6e
topology: v6e:2x2x1
jax: 0.10.0
libtpu: 0.0.40
codegen_flags: <defaults>
</compile_context>

<pallas_src>
import functools
import math

import jax
import jax.numpy as jnp
from jax.experimental import pallas as pl
from jax.experimental.pallas import tpu as pltpu


# Lane offset of the image interior inside the flattened padded scratch.  128 keeps the
# interior store fully lane-aligned (unmasked stores); the 9 conv taps read at offsets
# _BASE + dy*W + dx (small static lane rotations, cheap XLU work).
_BASE = 128
_TAIL = 128


# ----------------------------------------------------------------------------
# In-kernel building blocks (activations are (C, H*W) values; f32 elementwise,
# compute_dtype matmul operands, f32 accumulation)
# ----------------------------------------------------------------------------
def _col_masks(H, W):
    """Lane masks zeroing the columns that wrap across image rows in the flattened
    (C, H*W) layout: tap dx=-1 is invalid at x==0, tap dx=+1 at x==W-1."""
    col = jax.lax.broadcasted_iota(jnp.int32, (1, H * W), 1) % W
    return (col != 0), (col != (W - 1))


def _zero_halo(xpad_ref, HW):
    """Zero only the halo strips (the interior is fully rewritten by every conv).
    Done every grid step — two tiny stores — so it stays correct when the batch axis is
    sharded across TensorCores under "parallel" dimension semantics."""
    C, L = xpad_ref.shape
    xpad_ref[:, 0:_BASE] = jnp.zeros((C, _BASE), xpad_ref.dtype)
    xpad_ref[:, _BASE + HW:L] = jnp.zeros((C, L - _BASE - HW), xpad_ref.dtype)


def _conv3x3(x, w_ref, b_ref, xpad_ref, W, masks, compute_dtype, relu_out=False):
    """3x3 'same' conv in (C, H*W) layout as a single im2col MXU matmul.

    x:        (Cin, H*W) f32 value
    w_ref:    (Cout, 9*Cin) ref, columns tap-major ((dy*3+dx)*Cin + c)
    b_ref:    (Cout, 1) f32 ref
    xpad_ref: (Cpad >= Cin, _BASE + H*W + _TAIL) f32 scratch with zeroed halo strips
    returns:  (Cout, H*W) f32

    Invariant: every conv writes rows [0:Cin] of the interior and reads only those rows,
    so stale rows above Cin (from other convs / previous grid steps) are never read.
    """
    Cin, HW = x.shape
    not_first, not_last = masks
    xpad_ref[0:Cin, _BASE:_BASE + HW] = x          # lane-aligned interior store
    taps = []
    for dy in (-1, 0, 1):
        for dx in (-1, 0, 1):
            off = _BASE + dy * W + dx
            t = xpad_ref[0:Cin, off:off + HW]
            if dx == -1:
                t = jnp.where(not_first, t, 0.0)   # zero wrapped column x==0
            elif dx == 1:
                t = jnp.where(not_last, t, 0.0)    # zero wrapped column x==W-1
            taps.append(t)
    patch = jnp.concatenate(taps, axis=0).astype(compute_dtype)   # (9*Cin, HW)
    y = jnp.dot(w_ref[...], patch, preferred_element_type=jnp.float32) + b_ref[...]
    if relu_out:
        y = jnp.maximum(y, 0.0)
    return y


def _matmul_cat(parts, w_ref, b_ref, relu_in, compute_dtype):
    """dot(W, concat(parts, axis=0)) + b without materializing the concat: the 1x1
    weight (already transposed to (Cout, Cin_total)) is column-split per part."""
    acc = None
    off = 0
    for p in parts:
        c = p.shape[0]
        if relu_in:
            p = jnp.maximum(p, 0.0)
        d = jnp.dot(w_ref[:, off:off + c], p.astype(compute_dtype),
                    preferred_element_type=jnp.float32)
        acc = d if acc is None else acc + d
        off += c
    return acc + b_ref[...]


# ----------------------------------------------------------------------------
# Fused kernels
# ----------------------------------------------------------------------------
def _lr_stage_kernel(*refs, num_layers, H, W, compute_dtype):
    """Fused LR stage for one batch element:
       init 3x3 -> dense block -> compression 1x1 -> upsampler 3x3 (+ReLU)
       with the adapt-1x1 skip added to every pixel-shuffle group."""
    it = iter(refs)
    x_ref = next(it)
    w_init, b_init = next(it), next(it)
    layers = [(next(it), next(it), next(it), next(it)) for _ in range(num_layers)]
    w_comp, b_comp = next(it), next(it)
    w_ups, b_ups = next(it), next(it)
    w_adapt, b_adapt = next(it), next(it)
    o_ref = next(it)
    xpad = next(it)

    HW = H * W
    _zero_halo(xpad, HW)
    masks = _col_masks(H, W)

    # initial 3x3 conv (keep the un-ReLU'd f0 for the skip branch)
    f0 = _conv3x3(x_ref[0].astype(jnp.float32), w_init, b_init, xpad, W, masks,
                  compute_dtype)                                         # (F, HW)

    # dense block: each layer = ReLU -> 1x1 -> ReLU -> 3x3; features kept as parts
    # (the growing concat is replaced by column-splitting the 1x1 weights)
    parts = [f0]
    for (w1, b1, w2, b2) in layers:
        y = _matmul_cat(parts, w1, b1, relu_in=True, compute_dtype=compute_dtype)
        y = jnp.maximum(y, 0.0)
        y = _conv3x3(y, w2, b2, xpad, W, masks, compute_dtype)
        parts.append(y)

    # compression 1x1 (no activation)
    comp = _matmul_cat(parts, w_comp, b_comp, relu_in=False,
                       compute_dtype=compute_dtype)                      # (Fc, HW)
    Fc = comp.shape[0]

    # upsampler 3x3 conv; output rows are pre-permuted (wrapper side) to pixel-shuffle
    # group-major order, and the post-shuffle ReLU commutes with the shuffle -> here
    u = _conv3x3(comp, w_ups, b_ups, xpad, W, masks, compute_dtype,
                 relu_out=True)                                          # (4*Fc, HW)

    # skip branch: adapt 1x1 at LR resolution (1x1 conv commutes with NN upsampling)
    skip = _matmul_cat([f0], w_adapt, b_adapt, relu_in=False,
                       compute_dtype=compute_dtype)                      # (Fc, HW)

    # feature residual: one broadcast add over the 4 shuffle groups + one dense store
    out = u.reshape(4, Fc, HW) + skip[None, :, :]
    o_ref[0] = out.astype(o_ref.dtype)


def _hr_stage_kernel(x_ref, w_final, b_final, w_img, b_img, o_ref, xpad, *,
                     W, compute_dtype):
    """Fused HR stage for one batch element: final 3x3 conv + image 3x3 conv."""
    HW = x_ref.shape[-1]
    _zero_halo(xpad, HW)
    masks = _col_masks(HW // W, W)
    y = _conv3x3(x_ref[0].astype(jnp.float32), w_final, b_final, xpad, W, masks,
                 compute_dtype)
    y = _conv3x3(y, w_img, b_img, xpad, W, masks, compute_dtype)
    o_ref[0] = y.astype(o_ref.dtype)


# ----------------------------------------------------------------------------
# Wrapper (pallas_call plumbing + the only XLA glue: pixel-shuffle interleave)
# ----------------------------------------------------------------------------
def _zero_index_map(ndim):
    return lambda n: (0,) * ndim


def _full_spec(a):
    return pl.BlockSpec(a.shape, _zero_index_map(a.ndim))


def _prep_w3x3(w, compute_dtype, cin_pad=None):
    """(3,3,Cin,Cout) -> (Cout, 9*Cin_pad) im2col weight, columns tap-major."""
    kh, kw, cin, cout = w.shape
    if cin_pad is not None and cin_pad > cin:
        w = jnp.pad(w, ((0, 0), (0, 0), (0, cin_pad - cin), (0, 0)))
        cin = cin_pad
    return jnp.transpose(w, (3, 0, 1, 2)).reshape(cout, kh * kw * cin).astype(compute_dtype)


def _prep_w1x1(w, compute_dtype):
    """(Cin, Cout) -> (Cout, Cin)."""
    return jnp.transpose(w, (1, 0)).astype(compute_dtype)


def _b_col(p):
    return p["b"].reshape(-1, 1).astype(jnp.float32)


def _cost_estimate(inputs, out_shape, spatial, n_batch):
    flops = 0
    nbytes = math.prod(out_shape.shape) * jnp.dtype(out_shape.dtype).itemsize
    for a in inputs:
        nbytes += a.size * jnp.dtype(a.dtype).itemsize
        if a.ndim == 2 and a.shape[1] > 1:           # weight matrices (not biases)
            flops += 2 * a.shape[0] * a.shape[1] * spatial
    return pl.CostEstimate(flops=flops * n_batch, transcendentals=0,
                           bytes_accessed=nbytes)


def densenet_generator_forward(params, x_nchw, scale=2, blend=1,
                               compute_dtype=jnp.bfloat16):
    # TODO(synk): progressive multi-pyramid blending (`blend`) not implemented.
    del blend
    assert scale == 2
    N, in_ch, H, W = x_nchw.shape
    HW = H * W

    num_layers = len(params["dense_layers"])
    Fc = params["comp"]["w"].shape[-1]

    # (C, H*W) layout: NCHW input flattens directly, no transpose.  Pad the image's
    # 3 channels to 8 rows (zero channels, matching zero weight columns) so the interior
    # scratch store of every 3x3 conv is a full-row, unmasked store.
    cpad_in = max(in_ch, 8)
    x = x_nchw.astype(jnp.float32).reshape(N, in_ch, HW)
    if cpad_in > in_ch:
        x = jnp.pad(x, ((0, 0), (0, cpad_in - in_ch), (0, 0)))

    w_init = _prep_w3x3(params["init_conv"]["w"], compute_dtype, cin_pad=cpad_in)
    lr_inputs = [x, w_init, _b_col(params["init_conv"])]
    for lp in params["dense_layers"]:
        lr_inputs += [_prep_w1x1(lp["conv1"]["w"], compute_dtype), _b_col(lp["conv1"]),
                      _prep_w3x3(lp["conv2"]["w"], compute_dtype), _b_col(lp["conv2"])]

    # permute upsampler output channels from PyTorch pixel-shuffle order (c*4 + i*2 + j)
    # to shuffle-group-major order ((i*2 + j)*Fc + c)
    perm = jnp.asarray([(o % Fc) * 4 + (o // Fc) for o in range(4 * Fc)])
    w_ups = _prep_w3x3(params["ups_conv"]["w"], compute_dtype)[perm]
    b_ups = params["ups_conv"]["b"][perm].reshape(-1, 1).astype(jnp.float32)

    lr_inputs += [_prep_w1x1(params["comp"]["w"], compute_dtype), _b_col(params["comp"]),
                  w_ups, b_ups,
                  _prep_w1x1(params["adapt"]["w"], compute_dtype), _b_col(params["adapt"])]

    lr_cpad = max(cpad_in,
                  *[lp["conv2"]["w"].shape[2] for lp in params["dense_layers"]],
                  params["ups_conv"]["w"].shape[2])
    lr_cpad = -(-lr_cpad // 8) * 8

    lr_in_specs = ([pl.BlockSpec((1, cpad_in, HW), lambda n: (n, 0, 0))]
                   + [_full_spec(a) for a in lr_inputs[1:]])
    lr_out_shape = jax.ShapeDtypeStruct((N, 4, Fc, HW), compute_dtype)

    lr_out = pl.pallas_call(
        functools.partial(_lr_stage_kernel, num_layers=num_layers, H=H, W=W,
                          compute_dtype=compute_dtype),
        out_shape=lr_out_shape,
        grid=(N,),
        in_specs=lr_in_specs,
        out_specs=pl.BlockSpec((1, 4, Fc, HW), lambda n: (n, 0, 0, 0)),
        scratch_shapes=[pltpu.VMEM((lr_cpad, _BASE + HW + _TAIL), jnp.float32)],
        compiler_params=pltpu.CompilerParams(dimension_semantics=("parallel",)),
        cost_estimate=_cost_estimate(lr_inputs, lr_out_shape, HW, N),
    )(*lr_inputs)

    # pixel shuffle (group-major channel order) -> HR feature with skip already added.
    # TODO(synk): at real SR resolutions fold this interleave into the HR kernel's loads
    #             to drop the HBM round trip of the (N, 4, Fc, H*W) tensor.
    Hh, Wh = 2 * H, 2 * W
    u = lr_out.reshape(N, 2, 2, Fc, H, W)
    u = jnp.transpose(u, (0, 3, 4, 1, 5, 2))                     # (N, Fc, H, i, W, j)
    feat_hr = u.reshape(N, Fc, Hh * Wh)

    out_ch = params["img_conv"]["w"].shape[-1]
    hr_inputs = [feat_hr,
                 _prep_w3x3(params["final_conv"]["w"], compute_dtype),
                 _b_col(params["final_conv"]),
                 _prep_w3x3(params["img_conv"]["w"], compute_dtype),
                 _b_col(params["img_conv"])]
    hr_in_specs = ([pl.BlockSpec((1, Fc, Hh * Wh), lambda n: (n, 0, 0))]
                   + [_full_spec(a) for a in hr_inputs[1:]])
    hr_out_shape = jax.ShapeDtypeStruct((N, out_ch, Hh * Wh), jnp.float32)
    hr_cpad = max(params["final_conv"]["w"].shape[2], params["img_conv"]["w"].shape[2])
    hr_cpad = -(-hr_cpad // 8) * 8

    out = pl.pallas_call(
        functools.partial(_hr_stage_kernel, W=Wh, compute_dtype=compute_dtype),
        out_shape=hr_out_shape,
        grid=(N,),
        in_specs=hr_in_specs,
        out_specs=pl.BlockSpec((1, out_ch, Hh * Wh), lambda n: (n, 0, 0)),
        scratch_shapes=[pltpu.VMEM((hr_cpad, _BASE + Hh * Wh + _TAIL), jnp.float32)],
        compiler_params=pltpu.CompilerParams(dimension_semantics=("parallel",)),
        cost_estimate=_cost_estimate(hr_inputs, hr_out_shape, Hh * Wh, N),
    )(*hr_inputs)

    return out.reshape(N, out_ch, Hh, Wh)                        # already NCHW


# ----------------------------------------------------------------------------
# Parameter construction (deterministic, synthetic)
# ----------------------------------------------------------------------------
def _conv_params(key, kh, kw, cin, cout):
    fan_in = kh * kw * cin
    w = jax.random.normal(key, (kh, kw, cin, cout), jnp.float32) * (1.0 / fan_in) ** 0.5
    if kh == 1 and kw == 1:
        w = w.reshape(cin, cout)
    b = jnp.zeros((cout,), jnp.float32)
    return {"w": w, "b": b}


def init_params(key, *, in_ch=3, num_init_features=8, growth_rate=4,
                bn_size=2, num_layers=2, compression_rate=0.5, max_channels=16):
    keys = iter(jax.random.split(key, 32))
    p = {}
    p["init_conv"] = _conv_params(next(keys), 3, 3, in_ch, num_init_features)

    feats = num_init_features
    layers = []
    for _ in range(num_layers):
        bott = bn_size * growth_rate
        layers.append({
            "conv1": _conv_params(next(keys), 1, 1, feats, bott),
            "conv2": _conv_params(next(keys), 3, 3, bott, growth_rate),
        })
        feats += growth_rate
    p["dense_layers"] = layers

    comp_out = int(compression_rate * feats)
    p["comp"] = _conv_params(next(keys), 1, 1, feats, comp_out)
    feats = comp_out

    # PixelShuffleUpsampler (scale 2): conv -> 4x channels -> shuffle -> ReLU
    p["ups_conv"] = _conv_params(next(keys), 3, 3, feats, 4 * feats)
    # adapt initial feature to final feature size
    p["adapt"] = _conv_params(next(keys), 1, 1, num_init_features, feats)

    # create_finalconv: feats <= max_channels branch
    assert feats <= max_channels
    p["final_conv"] = _conv_params(next(keys), 3, 3, feats, feats)
    # feature -> image
    p["img_conv"] = _conv_params(next(keys), 3, 3, feats, in_ch)
    return p


# ----------------------------------------------------------------------------
# Pure-JAX reference (same forward graph) for a correctness check
# ----------------------------------------------------------------------------
def _conv_ref(x, w, b):
    if w.ndim == 2:
        return jnp.einsum("nhwc,cd->nhwd", x, w) + b
    y = jax.lax.conv_general_dilated(
        x, w, window_strides=(1, 1), padding="SAME",
        dimension_numbers=("NHWC", "HWIO", "NHWC"))
    return y + b


def _forward_ref(params, x_nchw):
    x = jnp.transpose(x_nchw, (0, 2, 3, 1)).astype(jnp.float32)
    f0 = _conv_ref(x, params["init_conv"]["w"], params["init_conv"]["b"])
    feats = f0
    for lp in params["dense_layers"]:
        y = _conv_ref(jax.nn.relu(feats), lp["conv1"]["w"], lp["conv1"]["b"])
        y = _conv_ref(jax.nn.relu(y), lp["conv2"]["w"], lp["conv2"]["b"])
        feats = jnp.concatenate([feats, y], axis=-1)
    feats = _conv_ref(feats, params["comp"]["w"], params["comp"]["b"])
    up = _conv_ref(feats, params["ups_conv"]["w"], params["ups_conv"]["b"])
    N, H, W, Crr = up.shape
    r = 2
    C = Crr // (r * r)
    up = up.reshape(N, H, W, C, r, r)                 # PyTorch order: c*r*r + i*r + j
    up = jnp.transpose(up, (0, 1, 4, 2, 5, 3)).reshape(N, H * r, W * r, C)
    up = jax.nn.relu(up)
    skip = jnp.repeat(jnp.repeat(f0, 2, axis=1), 2, axis=2)
    skip = _conv_ref(skip, params["adapt"]["w"], params["adapt"]["b"])
    feat = up + skip
    feat = _conv_ref(feat, params["final_conv"]["w"], params["final_conv"]["b"])
    out = _conv_ref(feat, params["img_conv"]["w"], params["img_conv"]["b"])
    return jnp.transpose(out, (0, 3, 1, 2))


# ----------------------------------------------------------------------------
if __name__ == "__main__":
    key = jax.random.PRNGKey(0)
    kx, kp = jax.random.split(key)

    # small shapes: batch=2, 3-channel 16x16 LR image, scale 2 -> 32x32 output
    x = jax.random.normal(kx, (2, 3, 16, 16), jnp.float32)
    params = init_params(kp)

    fwd = jax.jit(densenet_generator_forward)     # default: bf16 operands, f32 accum
    out = jax.block_until_ready(fwd(params, x))

    assert out.shape == (2, 3, 32, 32), out.shape
    assert bool(jnp.all(jnp.isfinite(out)))

    ref = jax.block_until_ready(_forward_ref(params, x))
    max_err = float(jnp.max(jnp.abs(out - ref)))
    max_ref = float(jnp.max(jnp.abs(ref)))
    # Tolerance sized for the default bf16-operand path: ~9 chained convolutions with
    # bf16-rounded weights/activations (~2^-8 relative per matmul) on activations whose
    # magnitude reaches a few units; f32 accumulation keeps it well inside this bound.
    tol = 1e-3 + 3e-2 * max(1.0, max_ref)
    assert max_err < tol, f"max abs error vs reference = {max_err} (tol {tol})"

    print("KERNEL_OK")
</pallas_src>

<mosaic_0001>
module attributes {stable_mosaic.version = 11 : i64} {
  func.func @_lr_stage_kernel(%arg0: i32, %arg1: memref<1x8x256xf32, #tpu.memory_space<vmem>>, %arg2: memref<8x72xbf16, #tpu.memory_space<vmem>>, %arg3: memref<8x1xf32, #tpu.memory_space<vmem>>, %arg4: memref<8x8xbf16, #tpu.memory_space<vmem>>, %arg5: memref<8x1xf32, #tpu.memory_space<vmem>>, %arg6: memref<4x72xbf16, #tpu.memory_space<vmem>>, %arg7: memref<4x1xf32, #tpu.memory_space<vmem>>, %arg8: memref<8x12xbf16, #tpu.memory_space<vmem>>, %arg9: memref<8x1xf32, #tpu.memory_space<vmem>>, %arg10: memref<4x72xbf16, #tpu.memory_space<vmem>>, %arg11: memref<4x1xf32, #tpu.memory_space<vmem>>, %arg12: memref<8x16xbf16, #tpu.memory_space<vmem>>, %arg13: memref<8x1xf32, #tpu.memory_space<vmem>>, %arg14: memref<32x72xbf16, #tpu.memory_space<vmem>>, %arg15: memref<32x1xf32, #tpu.memory_space<vmem>>, %arg16: memref<8x8xbf16, #tpu.memory_space<vmem>>, %arg17: memref<8x1xf32, #tpu.memory_space<vmem>>, %arg18: memref<1x4x8x256xbf16, #tpu.memory_space<vmem>>, %arg19: memref<8x512xf32, #tpu.memory_space<vmem>>) attributes {dimension_semantics = [#tpu.dimension_semantics<parallel>], iteration_bounds = array<i64: 2>, scalar_prefetch = 0 : i64, scratch_operands = 1 : i64, tpu.core_type = #tpu.core_type<tc>, window_params = [{transform_indices = @transform_0, window_bounds = array<i64: 1, 8, 256>}, {pipeline_mode = #tpu.pipeline_mode<synchronous>, transform_indices = @transform_1, window_bounds = array<i64: 8, 72>}, {pipeline_mode = #tpu.pipeline_mode<synchronous>, transform_indices = @transform_2, window_bounds = array<i64: 8, 1>}, {pipeline_mode = #tpu.pipeline_mode<synchronous>, transform_indices = @transform_3, window_bounds = array<i64: 8, 8>}, {pipeline_mode = #tpu.pipeline_mode<synchronous>, transform_indices = @transform_4, window_bounds = array<i64: 8, 1>}, {pipeline_mode = #tpu.pipeline_mode<synchronous>, transform_indices = @transform_5, window_bounds = array<i64: 4, 72>}, {pipeline_mode = #tpu.pipeline_mode<synchronous>, transform_indices = @transform_6, window_bounds = array<i64: 4, 1>}, {pipeline_mode = #tpu.pipeline_mode<synchronous>, transform_indices = @transform_7, window_bounds = array<i64: 8, 12>}, {pipeline_mode = #tpu.pipeline_mode<synchronous>, transform_indices = @transform_8, window_bounds = array<i64: 8, 1>}, {pipeline_mode = #tpu.pipeline_mode<synchronous>, transform_indices = @transform_9, window_bounds = array<i64: 4, 72>}, {pipeline_mode = #tpu.pipeline_mode<synchronous>, transform_indices = @transform_10, window_bounds = array<i64: 4, 1>}, {pipeline_mode = #tpu.pipeline_mode<synchronous>, transform_indices = @transform_11, window_bounds = array<i64: 8, 16>}, {pipeline_mode = #tpu.pipeline_mode<synchronous>, transform_indices = @transform_12, window_bounds = array<i64: 8, 1>}, {pipeline_mode = #tpu.pipeline_mode<synchronous>, transform_indices = @transform_13, window_bounds = array<i64: 32, 72>}, {pipeline_mode = #tpu.pipeline_mode<synchronous>, transform_indices = @transform_14, window_bounds = array<i64: 32, 1>}, {pipeline_mode = #tpu.pipeline_mode<synchronous>, transform_indices = @transform_15, window_bounds = array<i64: 8, 8>}, {pipeline_mode = #tpu.pipeline_mode<synchronous>, transform_indices = @transform_16, window_bounds = array<i64: 8, 1>}, {transform_indices = @transform_17, window_bounds = array<i64: 1, 4, 8, 256>}]} {
    %cst = arith.constant 0.000000e+00 : f32
    %0 = vector.broadcast %cst : f32 to vector<8x128xf32>
    %c0 = arith.constant 0 : index
    %c0_0 = arith.constant 0 : index
    %1 = vector.load %arg19[%c0, %c0_0] : memref<8x512xf32, #tpu.memory_space<vmem>>, vector<8x128xf32>
    tpu.vector_store %arg19[%c0, %c0_0], %0 {strides = array<i32>} : memref<8x512xf32, #tpu.memory_space<vmem>>, vector<8x128xf32>,
    %cst_1 = arith.constant 0.000000e+00 : f32
    %2 = vector.broadcast %cst_1 : f32 to vector<8x128xf32>
    %c0_2 = arith.constant 0 : index
    %c384 = arith.constant 384 : index
    %3 = vector.load %arg19[%c0_2, %c384] : memref<8x512xf32, #tpu.memory_space<vmem>>, vector<8x128xf32>
    tpu.vector_store %arg19[%c0_2, %c384], %2 {strides = array<i32>} : memref<8x512xf32, #tpu.memory_space<vmem>>, vector<8x128xf32>,
    %4 = tpu.iota {dimensions = array<i32: 1>} : vector<1x256xi32>
    %c16_i32 = arith.constant 16 : i32
    %c0_i32 = arith.constant 0 : i32
    %5 = arith.cmpi eq, %c16_i32, %c0_i32 : i32
    %c1_i32 = arith.constant 1 : i32
    %6 = arith.select %5, %c1_i32, %c16_i32 : i32
    %7 = vector.broadcast %6 : i32 to vector<1x256xi32>
    %8 = arith.remsi %4, %7 : vector<1x256xi32>
    %c0_i32_3 = arith.constant 0 : i32
    %9 = vector.broadcast %c0_i32_3 : i32 to vector<1x256xi32>
    %10 = arith.cmpi ne, %8, %9 : vector<1x256xi32>
    %c0_i32_4 = arith.constant 0 : i32
    %11 = vector.broadcast %c0_i32_4 : i32 to vector<1x256xi32>
    %12 = arith.cmpi slt, %8, %11 : vector<1x256xi32>
    %c0_i32_5 = arith.constant 0 : i32
    %13 = arith.cmpi slt, %6, %c0_i32_5 : i32
    %14 = vector.broadcast %13 : i1 to vector<1x256xi1>
    %15 = vector.broadcast %14 : vector<1x256xi1> to vector<1x256xi1>
    %16 = arith.xori %12, %15 : vector<1x256xi1>
    %17 = arith.andi %16, %10 : vector<1x256xi1>
    %18 = vector.broadcast %6 : i32 to vector<1x256xi32>
    %19 = arith.addi %8, %18 : vector<1x256xi32>
    %20 = arith.select %17, %19, %8 : vector<1x256xi1>, vector<1x256xi32>
    %c0_i32_6 = arith.constant 0 : i32
    %21 = vector.broadcast %c0_i32_6 : i32 to vector<1x256xi32>
    %22 = arith.cmpi ne, %20, %21 : vector<1x256xi32>
    %c15_i32 = arith.constant 15 : i32
    %23 = vector.broadcast %c15_i32 : i32 to vector<1x256xi32>
    %24 = arith.cmpi ne, %20, %23 : vector<1x256xi32>
    %c0_7 = arith.constant 0 : index
    %c0_8 = arith.constant 0 : index
    %c0_9 = arith.constant 0 : index
    %25 = vector.load %arg1[%c0_7, %c0_8, %c0_9] : memref<1x8x256xf32, #tpu.memory_space<vmem>>, vector<1x8x256xf32>
    %26 = vector.shape_cast %25 : vector<1x8x256xf32> to vector<8x256xf32>
    %c0_10 = arith.constant 0 : index
    %c128 = arith.constant 128 : index
    %27 = vector.load %arg19[%c0_10, %c128] : memref<8x512xf32, #tpu.memory_space<vmem>>, vector<8x256xf32>
    tpu.vector_store %arg19[%c0_10, %c128], %26 {strides = array<i32>} : memref<8x512xf32, #tpu.memory_space<vmem>>, vector<8x256xf32>,
    %c0_11 = arith.constant 0 : index
    %c111 = arith.constant 111 : index
    %28 = vector.load %arg19[%c0_11, %c111] : memref<8x512xf32, #tpu.memory_space<vmem>>, vector<8x256xf32>
    %cst_12 = arith.constant 0.000000e+00 : f32
    %29 = vector.shape_cast %22 : vector<1x256xi1> to vector<1x256xi1>
    %30 = vector.broadcast %29 : vector<1x256xi1> to vector<8x256xi1>
    %31 = vector.broadcast %cst_12 : f32 to vector<8x256xf32>
    %32 = arith.select %30, %28, %31 : vector<8x256xi1>, vector<8x256xf32>
    %c0_13 = arith.constant 0 : index
    %c112 = arith.constant 112 : index
    %33 = vector.load %arg19[%c0_13, %c112] : memref<8x512xf32, #tpu.memory_space<vmem>>, vector<8x256xf32>
    %c0_14 = arith.constant 0 : index
    %c113 = arith.constant 113 : index
    %34 = vector.load %arg19[%c0_14, %c113] : memref<8x512xf32, #tpu.memory_space<vmem>>, vector<8x256xf32>
    %cst_15 = arith.constant 0.000000e+00 : f32
    %35 = vector.shape_cast %24 : vector<1x256xi1> to vector<1x256xi1>
    %36 = vector.broadcast %35 : vector<1x256xi1> to vector<8x256xi1>
    %37 = vector.broadcast %cst_15 : f32 to vector<8x256xf32>
    %38 = arith.select %36, %34, %37 : vector<8x256xi1>, vector<8x256xf32>
    %c0_16 = arith.constant 0 : index
    %c127 = arith.constant 127 : index
    %39 = vector.load %arg19[%c0_16, %c127] : memref<8x512xf32, #tpu.memory_space<vmem>>, vector<8x256xf32>
    %cst_17 = arith.constant 0.000000e+00 : f32
    %40 = vector.shape_cast %22 : vector<1x256xi1> to vector<1x256xi1>
    %41 = vector.broadcast %40 : vector<1x256xi1> to vector<8x256xi1>
    %42 = vector.broadcast %cst_17 : f32 to vector<8x256xf32>
    %43 = arith.select %41, %39, %42 : vector<8x256xi1>, vector<8x256xf32>
    %c0_18 = arith.constant 0 : index
    %c128_19 = arith.constant 128 : index
    %44 = vector.load %arg19[%c0_18, %c128_19] : memref<8x512xf32, #tpu.memory_space<vmem>>, vector<8x256xf32>
    %c0_20 = arith.constant 0 : index
    %c129 = arith.constant 129 : index
    %45 = vector.load %arg19[%c0_20, %c129] : memref<8x512xf32, #tpu.memory_space<vmem>>, vector<8x256xf32>
    %cst_21 = arith.constant 0.000000e+00 : f32
    %46 = vector.shape_cast %24 : vector<1x256xi1> to vector<1x256xi1>
    %47 = vector.broadcast %46 : vector<1x256xi1> to vector<8x256xi1>
    %48 = vector.broadcast %cst_21 : f32 to vector<8x256xf32>
    %49 = arith.select %47, %45, %48 : vector<8x256xi1>, vector<8x256xf32>
    %c0_22 = arith.constant 0 : index
    %c143 = arith.constant 143 : index
    %50 = vector.load %arg19[%c0_22, %c143] : memref<8x512xf32, #tpu.memory_space<vmem>>, vector<8x256xf32>
    %cst_23 = arith.constant 0.000000e+00 : f32
    %51 = vector.shape_cast %22 : vector<1x256xi1> to vector<1x256xi1>
    %52 = vector.broadcast %51 : vector<1x256xi1> to vector<8x256xi1>
    %53 = vector.broadcast %cst_23 : f32 to vector<8x256xf32>
    %54 = arith.select %52, %50, %53 : vector<8x256xi1>, vector<8x256xf32>
    %c0_24 = arith.constant 0 : index
    %c144 = arith.constant 144 : index
    %55 = vector.load %arg19[%c0_24, %c144] : memref<8x512xf32, #tpu.memory_space<vmem>>, vector<8x256xf32>
    %c0_25 = arith.constant 0 : index
    %c145 = arith.constant 145 : index
    %56 = vector.load %arg19[%c0_25, %c145] : memref<8x512xf32, #tpu.memory_space<vmem>>, vector<8x256xf32>
    %cst_26 = arith.constant 0.000000e+00 : f32
    %57 = vector.shape_cast %24 : vector<1x256xi1> to vector<1x256xi1>
    %58 = vector.broadcast %57 : vector<1x256xi1> to vector<8x256xi1>
    %59 = vector.broadcast %cst_26 : f32 to vector<8x256xf32>
    %60 = arith.select %58, %56, %59 : vector<8x256xi1>, vector<8x256xf32>
    %61 = tpu.concatenate %32, %33, %38, %43, %44, %49, %54, %55, %60 in 0 : vector<8x256xf32>, vector<8x256xf32>, vector<8x256xf32>, vector<8x256xf32>, vector<8x256xf32>, vector<8x256xf32>, vector<8x256xf32>, vector<8x256xf32>, vector<8x256xf32> -> vector<72x256xf32>
    %62 = arith.truncf %61 : vector<72x256xf32> to vector<72x256xbf16>
    %c0_27 = arith.constant 0 : index
    %c0_28 = arith.constant 0 : index
    %63 = vector.load %arg2[%c0_27, %c0_28] : memref<8x72xbf16, #tpu.memory_space<vmem>>, vector<8x72xbf16>
    %cst_29 = arith.constant dense<0.000000e+00> : vector<8x256xf32>
    %64 = tpu.matmul %63, %62, %cst_29 {dimension_numbers = #tpu.dot_dimension_numbers<[1], [0], [0], [1], [0, 0, 1, 1], [], []>} : vector<8x72xbf16>, vector<72x256xbf16>, vector<8x256xf32> -> vector<8x256xf32>
    %c0_30 = arith.constant 0 : index
    %c0_31 = arith.constant 0 : index
    %65 = vector.load %arg3[%c0_30, %c0_31] : memref<8x1xf32, #tpu.memory_space<vmem>>, vector<8x1xf32>
    %66 = vector.broadcast %65 : vector<8x1xf32> to vector<8x256xf32>
    %67 = arith.addf %64, %66 : vector<8x256xf32>
    %cst_32 = arith.constant 0.000000e+00 : f32
    %68 = vector.broadcast %cst_32 : f32 to vector<8x256xf32>
    %69 = arith.maximumf %67, %68 : vector<8x256xf32>
    %c0_33 = arith.constant 0 : index
    %c0_34 = arith.constant 0 : index
    %70 = vector.load %arg4[%c0_33, %c0_34] : memref<8x8xbf16, #tpu.memory_space<vmem>>, vector<8x8xbf16>
    %71 = arith.truncf %69 : vector<8x256xf32> to vector<8x256xbf16>
    %cst_35 = arith.constant dense<0.000000e+00> : vector<8x256xf32>
    %72 = tpu.matmul %70, %71, %cst_35 {dimension_numbers = #tpu.dot_dimension_numbers<[1], [0], [0], [1], [0, 0, 1, 1], [], []>} : vector<8x8xbf16>, vector<8x256xbf16>, vector<8x256xf32> -> vector<8x256xf32>
    %c0_36 = arith.constant 0 : index
    %c0_37 = arith.constant 0 : index
    %73 = vector.load %arg5[%c0_36, %c0_37] : memref<8x1xf32, #tpu.memory_space<vmem>>, vector<8x1xf32>
    %74 = vector.broadcast %73 : vector<8x1xf32> to vector<8x256xf32>
    %75 = arith.addf %72, %74 : vector<8x256xf32>
    %cst_38 = arith.constant 0.000000e+00 : f32
    %76 = vector.broadcast %cst_38 : f32 to vector<8x256xf32>
    %77 = arith.maximumf %75, %76 : vector<8x256xf32>
    %c0_39 = arith.constant 0 : index
    %c128_40 = arith.constant 128 : index
    %78 = vector.load %arg19[%c0_39, %c128_40] : memref<8x512xf32, #tpu.memory_space<vmem>>, vector<8x256xf32>
    tpu.vector_store %arg19[%c0_39, %c128_40], %77 {strides = array<i32>} : memref<8x512xf32, #tpu.memory_space<vmem>>, vector<8x256xf32>,
    %c0_41 = arith.constant 0 : index
    %c111_42 = arith.constant 111 : index
    %79 = vector.load %arg19[%c0_41, %c111_42] : memref<8x512xf32, #tpu.memory_space<vmem>>, vector<8x256xf32>
    %cst_43 = arith.constant 0.000000e+00 : f32
    %80 = vector.shape_cast %22 : vector<1x256xi1> to vector<1x256xi1>
    %81 = vector.broadcast %80 : vector<1x256xi1> to vector<8x256xi1>
    %82 = vector.broadcast %cst_43 : f32 to vector<8x256xf32>
    %83 = arith.select %81, %79, %82 : vector<8x256xi1>, vector<8x256xf32>
    %c0_44 = arith.constant 0 : index
    %c112_45 = arith.constant 112 : index
    %84 = vector.load %arg19[%c0_44, %c112_45] : memref<8x512xf32, #tpu.memory_space<vmem>>, vector<8x256xf32>
    %c0_46 = arith.constant 0 : index
    %c113_47 = arith.constant 113 : index
    %85 = vector.load %arg19[%c0_46, %c113_47] : memref<8x512xf32, #tpu.memory_space<vmem>>, vector<8x256xf32>
    %cst_48 = arith.constant 0.000000e+00 : f32
    %86 = vector.shape_cast %24 : vector<1x256xi1> to vector<1x256xi1>
    %87 = vector.broadcast %86 : vector<1x256xi1> to vector<8x256xi1>
    %88 = vector.broadcast %cst_48 : f32 to vector<8x256xf32>
    %89 = arith.select %87, %85, %88 : vector<8x256xi1>, vector<8x256xf32>
    %c0_49 = arith.constant 0 : index
    %c127_50 = arith.constant 127 : index
    %90 = vector.load %arg19[%c0_49, %c127_50] : memref<8x512xf32, #tpu.memory_space<vmem>>, vector<8x256xf32>
    %cst_51 = arith.constant 0.000000e+00 : f32
    %91 = vector.shape_cast %22 : vector<1x256xi1> to vector<1x256xi1>
    %92 = vector.broadcast %91 : vector<1x256xi1> to vector<8x256xi1>
    %93 = vector.broadcast %cst_51 : f32 to vector<8x256xf32>
    %94 = arith.select %92, %90, %93 : vector<8x256xi1>, vector<8x256xf32>
    %c0_52 = arith.constant 0 : index
    %c128_53 = arith.constant 128 : index
    %95 = vector.load %arg19[%c0_52, %c128_53] : memref<8x512xf32, #tpu.memory_space<vmem>>, vector<8x256xf32>
    %c0_54 = arith.constant 0 : index
    %c129_55 = arith.constant 129 : index
    %96 = vector.load %arg19[%c0_54, %c129_55] : memref<8x512xf32, #tpu.memory_space<vmem>>, vector<8x256xf32>
    %cst_56 = arith.constant 0.000000e+00 : f32
    %97 = vector.shape_cast %24 : vector<1x256xi1> to vector<1x256xi1>
    %98 = vector.broadcast %97 : vector<1x256xi1> to vector<8x256xi1>
    %99 = vector.broadcast %cst_56 : f32 to vector<8x256xf32>
    %100 = arith.select %98, %96, %99 : vector<8x256xi1>, vector<8x256xf32>
    %c0_57 = arith.constant 0 : index
    %c143_58 = arith.constant 143 : index
    %101 = vector.load %arg19[%c0_57, %c143_58] : memref<8x512xf32, #tpu.memory_space<vmem>>, vector<8x256xf32>
    %cst_59 = arith.constant 0.000000e+00 : f32
    %102 = vector.shape_cast %22 : vector<1x256xi1> to vector<1x256xi1>
    %103 = vector.broadcast %102 : vector<1x256xi1> to vector<8x256xi1>
    %104 = vector.broadcast %cst_59 : f32 to vector<8x256xf32>
    %105 = arith.select %103, %101, %104 : vector<8x256xi1>, vector<8x256xf32>
    %c0_60 = arith.constant 0 : index
    %c144_61 = arith.constant 144 : index
    %106 = vector.load %arg19[%c0_60, %c144_61] : memref<8x512xf32, #tpu.memory_space<vmem>>, vector<8x256xf32>
    %c0_62 = arith.constant 0 : index
    %c145_63 = arith.constant 145 : index
    %107 = vector.load %arg19[%c0_62, %c145_63] : memref<8x512xf32, #tpu.memory_space<vmem>>, vector<8x256xf32>
    %cst_64 = arith.constant 0.000000e+00 : f32
    %108 = vector.shape_cast %24 : vector<1x256xi1> to vector<1x256xi1>
    %109 = vector.broadcast %108 : vector<1x256xi1> to vector<8x256xi1>
    %110 = vector.broadcast %cst_64 : f32 to vector<8x256xf32>
    %111 = arith.select %109, %107, %110 : vector<8x256xi1>, vector<8x256xf32>
    %112 = tpu.concatenate %83, %84, %89, %94, %95, %100, %105, %106, %111 in 0 : vector<8x256xf32>, vector<8x256xf32>, vector<8x256xf32>, vector<8x256xf32>, vector<8x256xf32>, vector<8x256xf32>, vector<8x256xf32>, vector<8x256xf32>, vector<8x256xf32> -> vector<72x256xf32>
    %113 = arith.truncf %112 : vector<72x256xf32> to vector<72x256xbf16>
    %c0_65 = arith.constant 0 : index
    %c0_66 = arith.constant 0 : index
    %114 = vector.load %arg6[%c0_65, %c0_66] : memref<4x72xbf16, #tpu.memory_space<vmem>>, vector<4x72xbf16>
    %cst_67 = arith.constant dense<0.000000e+00> : vector<4x256xf32>
    %115 = tpu.matmul %114, %113, %cst_67 {dimension_numbers = #tpu.dot_dimension_numbers<[1], [0], [0], [1], [0, 0, 1, 1], [], []>} : vector<4x72xbf16>, vector<72x256xbf16>, vector<4x256xf32> -> vector<4x256xf32>
    %c0_68 = arith.constant 0 : index
    %c0_69 = arith.constant 0 : index
    %116 = vector.load %arg7[%c0_68, %c0_69] : memref<4x1xf32, #tpu.memory_space<vmem>>, vector<4x1xf32>
    %117 = vector.broadcast %116 : vector<4x1xf32> to vector<4x256xf32>
    %118 = arith.addf %115, %117 : vector<4x256xf32>
    %cst_70 = arith.constant 0.000000e+00 : f32
    %119 = vector.broadcast %cst_70 : f32 to vector<8x256xf32>
    %120 = arith.maximumf %67, %119 : vector<8x256xf32>
    %c0_71 = arith.constant 0 : index
    %c0_72 = arith.constant 0 : index
    %121 = vector.load %arg8[%c0_71, %c0_72] : memref<8x12xbf16, #tpu.memory_space<vmem>>, vector<8x8xbf16>
    %122 = arith.truncf %120 : vector<8x256xf32> to vector<8x256xbf16>
    %cst_73 = arith.constant dense<0.000000e+00> : vector<8x256xf32>
    %123 = tpu.matmul %121, %122, %cst_73 {dimension_numbers = #tpu.dot_dimension_numbers<[1], [0], [0], [1], [0, 0, 1, 1], [], []>} : vector<8x8xbf16>, vector<8x256xbf16>, vector<8x256xf32> -> vector<8x256xf32>
    %cst_74 = arith.constant 0.000000e+00 : f32
    %124 = vector.broadcast %cst_74 : f32 to vector<4x256xf32>
    %125 = arith.maximumf %118, %124 : vector<4x256xf32>
    %c0_75 = arith.constant 0 : index
    %c8 = arith.constant 8 : index
    %126 = vector.load %arg8[%c0_75, %c8] : memref<8x12xbf16, #tpu.memory_space<vmem>>, vector<8x4xbf16>
    %127 = arith.truncf %125 : vector<4x256xf32> to vector<4x256xbf16>
    %cst_76 = arith.constant dense<0.000000e+00> : vector<8x256xf32>
    %128 = tpu.matmul %126, %127, %cst_76 {dimension_numbers = #tpu.dot_dimension_numbers<[1], [0], [0], [1], [0, 0, 1, 1], [], []>} : vector<8x4xbf16>, vector<4x256xbf16>, vector<8x256xf32> -> vector<8x256xf32>
    %129 = arith.addf %123, %128 : vector<8x256xf32>
    %c0_77 = arith.constant 0 : index
    %c0_78 = arith.constant 0 : index
    %130 = vector.load %arg9[%c0_77, %c0_78] : memref<8x1xf32, #tpu.memory_space<vmem>>, vector<8x1xf32>
    %131 = vector.broadcast %130 : vector<8x1xf32> to vector<8x256xf32>
    %132 = arith.addf %129, %131 : vector<8x256xf32>
    %cst_79 = arith.constant 0.000000e+00 : f32
    %133 = vector.broadcast %cst_79 : f32 to vector<8x256xf32>
    %134 = arith.maximumf %132, %133 : vector<8x256xf32>
    %c0_80 = arith.constant 0 : index
    %c128_81 = arith.constant 128 : index
    %135 = vector.load %arg19[%c0_80, %c128_81] : memref<8x512xf32, #tpu.memory_space<vmem>>, vector<8x256xf32>
    tpu.vector_store %arg19[%c0_80, %c128_81], %134 {strides = array<i32>} : memref<8x512xf32, #tpu.memory_space<vmem>>, vector<8x256xf32>,
    %c0_82 = arith.constant 0 : index
    %c111_83 = arith.constant 111 : index
    %136 = vector.load %arg19[%c0_82, %c111_83] : memref<8x512xf32, #tpu.memory_space<vmem>>, vector<8x256xf32>
    %cst_84 = arith.constant 0.000000e+00 : f32
    %137 = vector.shape_cast %22 : vector<1x256xi1> to vector<1x256xi1>
    %138 = vector.broadcast %137 : vector<1x256xi1> to vector<8x256xi1>
    %139 = vector.broadcast %cst_84 : f32 to vector<8x256xf32>
    %140 = arith.select %138, %136, %139 : vector<8x256xi1>, vector<8x256xf32>
    %c0_85 = arith.constant 0 : index
    %c112_86 = arith.constant 112 : index
    %141 = vector.load %arg19[%c0_85, %c112_86] : memref<8x512xf32, #tpu.memory_space<vmem>>, vector<8x256xf32>
    %c0_87 = arith.constant 0 : index
    %c113_88 = arith.constant 113 : index
    %142 = vector.load %arg19[%c0_87, %c113_88] : memref<8x512xf32, #tpu.memory_space<vmem>>, vector<8x256xf32>
    %cst_89 = arith.constant 0.000000e+00 : f32
    %143 = vector.shape_cast %24 : vector<1x256xi1> to vector<1x256xi1>
    %144 = vector.broadcast %143 : vector<1x256xi1> to vector<8x256xi1>
    %145 = vector.broadcast %cst_89 : f32 to vector<8x256xf32>
    %146 = arith.select %144, %142, %145 : vector<8x256xi1>, vector<8x256xf32>
    %c0_90 = arith.constant 0 : index
    %c127_91 = arith.constant 127 : index
    %147 = vector.load %arg19[%c0_90, %c127_91] : memref<8x512xf32, #tpu.memory_space<vmem>>, vector<8x256xf32>
    %cst_92 = arith.constant 0.000000e+00 : f32
    %148 = vector.shape_cast %22 : vector<1x256xi1> to vector<1x256xi1>
    %149 = vector.broadcast %148 : vector<1x256xi1> to vector<8x256xi1>
    %150 = vector.broadcast %cst_92 : f32 to vector<8x256xf32>
    %151 = arith.select %149, %147, %150 : vector<8x256xi1>, vector<8x256xf32>
    %c0_93 = arith.constant 0 : index
    %c128_94 = arith.constant 128 : index
    %152 = vector.load %arg19[%c0_93, %c128_94] : memref<8x512xf32, #tpu.memory_space<vmem>>, vector<8x256xf32>
    %c0_95 = arith.constant 0 : index
    %c129_96 = arith.constant 129 : index
    %153 = vector.load %arg19[%c0_95, %c129_96] : memref<8x512xf32, #tpu.memory_space<vmem>>, vector<8x256xf32>
    %cst_97 = arith.constant 0.000000e+00 : f32
    %154 = vector.shape_cast %24 : vector<1x256xi1> to vector<1x256xi1>
    %155 = vector.broadcast %154 : vector<1x256xi1> to vector<8x256xi1>
    %156 = vector.broadcast %cst_97 : f32 to vector<8x256xf32>
    %157 = arith.select %155, %153, %156 : vector<8x256xi1>, vector<8x256xf32>
    %c0_98 = arith.constant 0 : index
    %c143_99 = arith.constant 143 : index
    %158 = vector.load %arg19[%c0_98, %c143_99] : memref<8x512xf32, #tpu.memory_space<vmem>>, vector<8x256xf32>
    %cst_100 = arith.constant 0.000000e+00 : f32
    %159 = vector.shape_cast %22 : vector<1x256xi1> to vector<1x256xi1>
    %160 = vector.broadcast %159 : vector<1x256xi1> to vector<8x256xi1>
    %161 = vector.broadcast %cst_100 : f32 to vector<8x256xf32>
    %162 = arith.select %160, %158, %161 : vector<8x256xi1>, vector<8x256xf32>
    %c0_101 = arith.constant 0 : index
    %c144_102 = arith.constant 144 : index
    %163 = vector.load %arg19[%c0_101, %c144_102] : memref<8x512xf32, #tpu.memory_space<vmem>>, vector<8x256xf32>
    %c0_103 = arith.constant 0 : index
    %c145_104 = arith.constant 145 : index
    %164 = vector.load %arg19[%c0_103, %c145_104] : memref<8x512xf32, #tpu.memory_space<vmem>>, vector<8x256xf32>
    %cst_105 = arith.constant 0.000000e+00 : f32
    %165 = vector.shape_cast %24 : vector<1x256xi1> to vector<1x256xi1>
    %166 = vector.broadcast %165 : vector<1x256xi1> to vector<8x256xi1>
    %167 = vector.broadcast %cst_105 : f32 to vector<8x256xf32>
    %168 = arith.select %166, %164, %167 : vector<8x256xi1>, vector<8x256xf32>
    %169 = tpu.concatenate %140, %141, %146, %151, %152, %157, %162, %163, %168 in 0 : vector<8x256xf32>, vector<8x256xf32>, vector<8x256xf32>, vector<8x256xf32>, vector<8x256xf32>, vector<8x256xf32>, vector<8x256xf32>, vector<8x256xf32>, vector<8x256xf32> -> vector<72x256xf32>
    %170 = arith.truncf %169 : vector<72x256xf32> to vector<72x256xbf16>
    %c0_106 = arith.constant 0 : index
    %c0_107 = arith.constant 0 : index
    %171 = vector.load %arg10[%c0_106, %c0_107] : memref<4x72xbf16, #tpu.memory_space<vmem>>, vector<4x72xbf16>
    %cst_108 = arith.constant dense<0.000000e+00> : vector<4x256xf32>
    %172 = tpu.matmul %171, %170, %cst_108 {dimension_numbers = #tpu.dot_dimension_numbers<[1], [0], [0], [1], [0, 0, 1, 1], [], []>} : vector<4x72xbf16>, vector<72x256xbf16>, vector<4x256xf32> -> vector<4x256xf32>
    %c0_109 = arith.constant 0 : index
    %c0_110 = arith.constant 0 : index
    %173 = vector.load %arg11[%c0_109, %c0_110] : memref<4x1xf32, #tpu.memory_space<vmem>>, vector<4x1xf32>
    %174 = vector.broadcast %173 : vector<4x1xf32> to vector<4x256xf32>
    %175 = arith.addf %172, %174 : vector<4x256xf32>
    %c0_111 = arith.constant 0 : index
    %c0_112 = arith.constant 0 : index
    %176 = vector.load %arg12[%c0_111, %c0_112] : memref<8x16xbf16, #tpu.memory_space<vmem>>, vector<8x8xbf16>
    %177 = arith.truncf %67 : vector<8x256xf32> to vector<8x256xbf16>
    %cst_113 = arith.constant dense<0.000000e+00> : vector<8x256xf32>
    %178 = tpu.matmul %176, %177, %cst_113 {dimension_numbers = #tpu.dot_dimension_numbers<[1], [0], [0], [1], [0, 0, 1, 1], [], []>} : vector<8x8xbf16>, vector<8x256xbf16>, vector<8x256xf32> -> vector<8x256xf32>
    %c0_114 = arith.constant 0 : index
    %c8_115 = arith.constant 8 : index
    %179 = vector.load %arg12[%c0_114, %c8_115] : memref<8x16xbf16, #tpu.memory_space<vmem>>, vector<8x4xbf16>
    %180 = arith.truncf %118 : vector<4x256xf32> to vector<4x256xbf16>
    %cst_116 = arith.constant dense<0.000000e+00> : vector<8x256xf32>
    %181 = tpu.matmul %179, %180, %cst_116 {dimension_numbers = #tpu.dot_dimension_numbers<[1], [0], [0], [1], [0, 0, 1, 1], [], []>} : vector<8x4xbf16>, vector<4x256xbf16>, vector<8x256xf32> -> vector<8x256xf32>
    %182 = arith.addf %178, %181 : vector<8x256xf32>
    %c0_117 = arith.constant 0 : index
    %c12 = arith.constant 12 : index
    %183 = vector.load %arg12[%c0_117, %c12] : memref<8x16xbf16, #tpu.memory_space<vmem>>, vector<8x4xbf16>
    %184 = arith.truncf %175 : vector<4x256xf32> to vector<4x256xbf16>
    %cst_118 = arith.constant dense<0.000000e+00> : vector<8x256xf32>
    %185 = tpu.matmul %183, %184, %cst_118 {dimension_numbers = #tpu.dot_dimension_numbers<[1], [0], [0], [1], [0, 0, 1, 1], [], []>} : vector<8x4xbf16>, vector<4x256xbf16>, vector<8x256xf32> -> vector<8x256xf32>
    %186 = arith.addf %182, %185 : vector<8x256xf32>
    %c0_119 = arith.constant 0 : index
    %c0_120 = arith.constant 0 : index
    %187 = vector.load %arg13[%c0_119, %c0_120] : memref<8x1xf32, #tpu.memory_space<vmem>>, vector<8x1xf32>
    %188 = vector.broadcast %187 : vector<8x1xf32> to vector<8x256xf32>
    %189 = arith.addf %186, %188 : vector<8x256xf32>
    %c0_121 = arith.constant 0 : index
    %c128_122 = arith.constant 128 : index
    %190 = vector.load %arg19[%c0_121, %c128_122] : memref<8x512xf32, #tpu.memory_space<vmem>>, vector<8x256xf32>
    tpu.vector_store %arg19[%c0_121, %c128_122], %189 {strides = array<i32>} : memref<8x512xf32, #tpu.memory_space<vmem>>, vector<8x256xf32>,
    %c0_123 = arith.constant 0 : index
    %c111_124 = arith.constant 111 : index
    %191 = vector.load %arg19[%c0_123, %c111_124] : memref<8x512xf32, #tpu.memory_space<vmem>>, vector<8x256xf32>
    %cst_125 = arith.constant 0.000000e+00 : f32
    %192 = vector.shape_cast %22 : vector<1x256xi1> to vector<1x256xi1>
    %193 = vector.broadcast %192 : vector<1x256xi1> to vector<8x256xi1>
    %194 = vector.broadcast %cst_125 : f32 to vector<8x256xf32>
    %195 = arith.select %193, %191, %194 : vector<8x256xi1>, vector<8x256xf32>
    %c0_126 = arith.constant 0 : index
    %c112_127 = arith.constant 112 : index
    %196 = vector.load %arg19[%c0_126, %c112_127] : memref<8x512xf32, #tpu.memory_space<vmem>>, vector<8x256xf32>
    %c0_128 = arith.constant 0 : index
    %c113_129 = arith.constant 113 : index
    %197 = vector.load %arg19[%c0_128, %c113_129] : memref<8x512xf32, #tpu.memory_space<vmem>>, vector<8x256xf32>
    %cst_130 = arith.constant 0.000000e+00 : f32
    %198 = vector.shape_cast %24 : vector<1x256xi1> to vector<1x256xi1>
    %199 = vector.broadcast %198 : vector<1x256xi1> to vector<8x256xi1>
    %200 = vector.broadcast %cst_130 : f32 to vector<8x256xf32>
    %201 = arith.select %199, %197, %200 : vector<8x256xi1>, vector<8x256xf32>
    %c0_131 = arith.constant 0 : index
    %c127_132 = arith.constant 127 : index
    %202 = vector.load %arg19[%c0_131, %c127_132] : memref<8x512xf32, #tpu.memory_space<vmem>>, vector<8x256xf32>
    %cst_133 = arith.constant 0.000000e+00 : f32
    %203 = vector.shape_cast %22 : vector<1x256xi1> to vector<1x256xi1>
    %204 = vector.broadcast %203 : vector<1x256xi1> to vector<8x256xi1>
    %205 = vector.broadcast %cst_133 : f32 to vector<8x256xf32>
    %206 = arith.select %204, %202, %205 : vector<8x256xi1>, vector<8x256xf32>
    %c0_134 = arith.constant 0 : index
    %c128_135 = arith.constant 128 : index
    %207 = vector.load %arg19[%c0_134, %c128_135] : memref<8x512xf32, #tpu.memory_space<vmem>>, vector<8x256xf32>
    %c0_136 = arith.constant 0 : index
    %c129_137 = arith.constant 129 : index
    %208 = vector.load %arg19[%c0_136, %c129_137] : memref<8x512xf32, #tpu.memory_space<vmem>>, vector<8x256xf32>
    %cst_138 = arith.constant 0.000000e+00 : f32
    %209 = vector.shape_cast %24 : vector<1x256xi1> to vector<1x256xi1>
    %210 = vector.broadcast %209 : vector<1x256xi1> to vector<8x256xi1>
    %211 = vector.broadcast %cst_138 : f32 to vector<8x256xf32>
    %212 = arith.select %210, %208, %211 : vector<8x256xi1>, vector<8x256xf32>
    %c0_139 = arith.constant 0 : index
    %c143_140 = arith.constant 143 : index
    %213 = vector.load %arg19[%c0_139, %c143_140] : memref<8x512xf32, #tpu.memory_space<vmem>>, vector<8x256xf32>
    %cst_141 = arith.constant 0.000000e+00 : f32
    %214 = vector.shape_cast %22 : vector<1x256xi1> to vector<1x256xi1>
    %215 = vector.broadcast %214 : vector<1x256xi1> to vector<8x256xi1>
    %216 = vector.broadcast %cst_141 : f32 to vector<8x256xf32>
    %217 = arith.select %215, %213, %216 : vector<8x256xi1>, vector<8x256xf32>
    %c0_142 = arith.constant 0 : index
    %c144_143 = arith.constant 144 : index
    %218 = vector.load %arg19[%c0_142, %c144_143] : memref<8x512xf32, #tpu.memory_space<vmem>>, vector<8x256xf32>
    %c0_144 = arith.constant 0 : index
    %c145_145 = arith.constant 145 : index
    %219 = vector.load %arg19[%c0_144, %c145_145] : memref<8x512xf32, #tpu.memory_space<vmem>>, vector<8x256xf32>
    %cst_146 = arith.constant 0.000000e+00 : f32
    %220 = vector.shape_cast %24 : vector<1x256xi1> to vector<1x256xi1>
    %221 = vector.broadcast %220 : vector<1x256xi1> to vector<8x256xi1>
    %222 = vector.broadcast %cst_146 : f32 to vector<8x256xf32>
    %223 = arith.select %221, %219, %222 : vector<8x256xi1>, vector<8x256xf32>
    %224 = tpu.concatenate %195, %196, %201, %206, %207, %212, %217, %218, %223 in 0 : vector<8x256xf32>, vector<8x256xf32>, vector<8x256xf32>, vector<8x256xf32>, vector<8x256xf32>, vector<8x256xf32>, vector<8x256xf32>, vector<8x256xf32>, vector<8x256xf32> -> vector<72x256xf32>
    %225 = arith.truncf %224 : vector<72x256xf32> to vector<72x256xbf16>
    %c0_147 = arith.constant 0 : index
    %c0_148 = arith.constant 0 : index
    %226 = vector.load %arg14[%c0_147, %c0_148] : memref<32x72xbf16, #tpu.memory_space<vmem>>, vector<32x72xbf16>
    %cst_149 = arith.constant dense<0.000000e+00> : vector<32x256xf32>
    %227 = tpu.matmul %226, %225, %cst_149 {dimension_numbers = #tpu.dot_dimension_numbers<[1], [0], [0], [1], [0, 0, 1, 1], [], []>} : vector<32x72xbf16>, vector<72x256xbf16>, vector<32x256xf32> -> vector<32x256xf32>
    %c0_150 = arith.constant 0 : index
    %c0_151 = arith.constant 0 : index
    %228 = vector.load %arg15[%c0_150, %c0_151] : memref<32x1xf32, #tpu.memory_space<vmem>>, vector<32x1xf32>
    %229 = vector.broadcast %228 : vector<32x1xf32> to vector<32x256xf32>
    %230 = arith.addf %227, %229 : vector<32x256xf32>
    %cst_152 = arith.constant 0.000000e+00 : f32
    %231 = vector.broadcast %cst_152 : f32 to vector<32x256xf32>
    %232 = arith.maximumf %230, %231 : vector<32x256xf32>
    %c0_153 = arith.constant 0 : index
    %c0_154 = arith.constant 0 : index
    %233 = vector.load %arg16[%c0_153, %c0_154] : memref<8x8xbf16, #tpu.memory_space<vmem>>, vector<8x8xbf16>
    %234 = arith.truncf %67 : vector<8x256xf32> to vector<8x256xbf16>
    %cst_155 = arith.constant dense<0.000000e+00> : vector<8x256xf32>
    %235 = tpu.matmul %233, %234, %cst_155 {dimension_numbers = #tpu.dot_dimension_numbers<[1], [0], [0], [1], [0, 0, 1, 1], [], []>} : vector<8x8xbf16>, vector<8x256xbf16>, vector<8x256xf32> -> vector<8x256xf32>
    %c0_156 = arith.constant 0 : index
    %c0_157 = arith.constant 0 : index
    %236 = vector.load %arg17[%c0_156, %c0_157] : memref<8x1xf32, #tpu.memory_space<vmem>>, vector<8x1xf32>
    %237 = vector.broadcast %236 : vector<8x1xf32> to vector<8x256xf32>
    %238 = arith.addf %235, %237 : vector<8x256xf32>
    %239 = vector.shape_cast %232 : vector<32x256xf32> to vector<4x8x256xf32>
    %240 = vector.shape_cast %238 : vector<8x256xf32> to vector<1x8x256xf32>
    %241 = vector.broadcast %240 : vector<1x8x256xf32> to vector<4x8x256xf32>
    %242 = arith.addf %239, %241 : vector<4x8x256xf32>
    %243 = arith.truncf %242 : vector<4x8x256xf32> to vector<4x8x256xbf16>
    %c0_158 = arith.constant 0 : index
    %c0_159 = arith.constant 0 : index
    %c0_160 = arith.constant 0 : index
    %c0_161 = arith.constant 0 : index
    %244 = vector.load %arg18[%c0_158, %c0_159, %c0_160, %c0_161] : memref<1x4x8x256xbf16, #tpu.memory_space<vmem>>, vector<1x4x8x256xbf16>
    %245 = vector.shape_cast %244 : vector<1x4x8x256xbf16> to vector<4x8x256xbf16>
    %246 = vector.shape_cast %243 : vector<4x8x256xbf16> to vector<1x4x8x256xbf16>
    tpu.vector_store %arg18[%c0_158, %c0_159, %c0_160, %c0_161], %246 {strides = array<i32>} : memref<1x4x8x256xbf16, #tpu.memory_space<vmem>>, vector<1x4x8x256xbf16>,
    return
  }
  func.func @transform_0(%arg0: i32) -> (i32, i32, i32) {
    %c0_i32 = arith.constant 0 : i32
    %c0_i32_0 = arith.constant 0 : i32
    %c0_i32_1 = arith.constant 0 : i32
    return %arg0, %c0_i32, %c0_i32_0 : i32, i32, i32
  }
  func.func @transform_1(%arg0: i32) -> (i32, i32) {
    %c0_i32 = arith.constant 0 : i32
    %c0_i32_0 = arith.constant 0 : i32
    %c0_i32_1 = arith.constant 0 : i32
    return %c0_i32, %c0_i32_0 : i32, i32
  }
  func.func @transform_2(%arg0: i32) -> (i32, i32) {
    %c0_i32 = arith.constant 0 : i32
    %c0_i32_0 = arith.constant 0 : i32
    %c0_i32_1 = arith.constant 0 : i32
    return %c0_i32, %c0_i32_0 : i32, i32
  }
  func.func @transform_3(%arg0: i32) -> (i32, i32) {
    %c0_i32 = arith.constant 0 : i32
    %c0_i32_0 = arith.constant 0 : i32
    %c0_i32_1 = arith.constant 0 : i32
    return %c0_i32, %c0_i32_0 : i32, i32
  }
  func.func @transform_4(%arg0: i32) -> (i32, i32) {
    %c0_i32 = arith.constant 0 : i32
    %c0_i32_0 = arith.constant 0 : i32
    %c0_i32_1 = arith.constant 0 : i32
    return %c0_i32, %c0_i32_0 : i32, i32
  }
  func.func @transform_5(%arg0: i32) -> (i32, i32) {
    %c0_i32 = arith.constant 0 : i32
    %c0_i32_0 = arith.constant 0 : i32
    %c0_i32_1 = arith.constant 0 : i32
    return %c0_i32, %c0_i32_0 : i32, i32
  }
  func.func @transform_6(%arg0: i32) -> (i32, i32) {
    %c0_i32 = arith.constant 0 : i32
    %c0_i32_0 = arith.constant 0 : i32
    %c0_i32_1 = arith.constant 0 : i32
    return %c0_i32, %c0_i32_0 : i32, i32
  }
  func.func @transform_7(%arg0: i32) -> (i32, i32) {
    %c0_i32 = arith.constant 0 : i32
    %c0_i32_0 = arith.constant 0 : i32
    %c0_i32_1 = arith.constant 0 : i32
    return %c0_i32, %c0_i32_0 : i32, i32
  }
  func.func @transform_8(%arg0: i32) -> (i32, i32) {
    %c0_i32 = arith.constant 0 : i32
    %c0_i32_0 = arith.constant 0 : i32
    %c0_i32_1 = arith.constant 0 : i32
    return %c0_i32, %c0_i32_0 : i32, i32
  }
  func.func @transform_9(%arg0: i32) -> (i32, i32) {
    %c0_i32 = arith.constant 0 : i32
    %c0_i32_0 = arith.constant 0 : i32
    %c0_i32_1 = arith.constant 0 : i32
    return %c0_i32, %c0_i32_0 : i32, i32
  }
  func.func @transform_10(%arg0: i32) -> (i32, i32) {
    %c0_i32 = arith.constant 0 : i32
    %c0_i32_0 = arith.constant 0 : i32
    %c0_i32_1 = arith.constant 0 : i32
    return %c0_i32, %c0_i32_0 : i32, i32
  }
  func.func @transform_11(%arg0: i32) -> (i32, i32) {
    %c0_i32 = arith.constant 0 : i32
    %c0_i32_0 = arith.constant 0 : i32
    %c0_i32_1 = arith.constant 0 : i32
    return %c0_i32, %c0_i32_0 : i32, i32
  }
  func.func @transform_12(%arg0: i32) -> (i32, i32) {
    %c0_i32 = arith.constant 0 : i32
    %c0_i32_0 = arith.constant 0 : i32
    %c0_i32_1 = arith.constant 0 : i32
    return %c0_i32, %c0_i32_0 : i32, i32
  }
  func.func @transform_13(%arg0: i32) -> (i32, i32) {
    %c0_i32 = arith.constant 0 : i32
    %c0_i32_0 = arith.constant 0 : i32
    %c0_i32_1 = arith.constant 0 : i32
    return %c0_i32, %c0_i32_0 : i32, i32
  }
  func.func @transform_14(%arg0: i32) -> (i32, i32) {
    %c0_i32 = arith.constant 0 : i32
    %c0_i32_0 = arith.constant 0 : i32
    %c0_i32_1 = arith.constant 0 : i32
    return %c0_i32, %c0_i32_0 : i32, i32
  }
  func.func @transform_15(%arg0: i32) -> (i32, i32) {
    %c0_i32 = arith.constant 0 : i32
    %c0_i32_0 = arith.constant 0 : i32
    %c0_i32_1 = arith.constant 0 : i32
    return %c0_i32, %c0_i32_0 : i32, i32
  }
  func.func @transform_16(%arg0: i32) -> (i32, i32) {
    %c0_i32 = arith.constant 0 : i32
    %c0_i32_0 = arith.constant 0 : i32
    %c0_i32_1 = arith.constant 0 : i32
    return %c0_i32, %c0_i32_0 : i32, i32
  }
  func.func @transform_17(%arg0: i32) -> (i32, i32, i32, i32) {
    %c0_i32 = arith.constant 0 : i32
    %c0_i32_0 = arith.constant 0 : i32
    %c0_i32_1 = arith.constant 0 : i32
    %c0_i32_2 = arith.constant 0 : i32
    return %arg0, %c0_i32, %c0_i32_0, %c0_i32_1 : i32, i32, i32, i32
  }
}

module attributes {stable_mosaic.version = 11 : i64} {
  func.func @_hr_stage_kernel(%arg0: i32, %arg1: memref<1x8x1024xbf16, #tpu.memory_space<vmem>>, %arg2: memref<8x72xbf16, #tpu.memory_space<vmem>>, %arg3: memref<8x1xf32, #tpu.memory_space<vmem>>, %arg4: memref<3x72xbf16, #tpu.memory_space<vmem>>, %arg5: memref<3x1xf32, #tpu.memory_space<vmem>>, %arg6: memref<1x3x1024xf32, #tpu.memory_space<vmem>>, %arg7: memref<8x1280xf32, #tpu.memory_space<vmem>>) attributes {dimension_semantics = [#tpu.dimension_semantics<parallel>], iteration_bounds = array<i64: 2>, scalar_prefetch = 0 : i64, scratch_operands = 1 : i64, tpu.core_type = #tpu.core_type<tc>, window_params = [{transform_indices = @transform_0, window_bounds = array<i64: 1, 8, 1024>}, {pipeline_mode = #tpu.pipeline_mode<synchronous>, transform_indices = @transform_1, window_bounds = array<i64: 8, 72>}, {pipeline_mode = #tpu.pipeline_mode<synchronous>, transform_indices = @transform_2, window_bounds = array<i64: 8, 1>}, {pipeline_mode = #tpu.pipeline_mode<synchronous>, transform_indices = @transform_3, window_bounds = array<i64: 3, 72>}, {pipeline_mode = #tpu.pipeline_mode<synchronous>, transform_indices = @transform_4, window_bounds = array<i64: 3, 1>}, {transform_indices = @transform_5, window_bounds = array<i64: 1, 3, 1024>}]} {
    %cst = arith.constant 0.000000e+00 : f32
    %0 = vector.broadcast %cst : f32 to vector<8x128xf32>
    %c0 = arith.constant 0 : index
    %c0_0 = arith.constant 0 : index
    %1 = vector.load %arg7[%c0, %c0_0] : memref<8x1280xf32, #tpu.memory_space<vmem>>, vector<8x128xf32>
    tpu.vector_store %arg7[%c0, %c0_0], %0 {strides = array<i32>} : memref<8x1280xf32, #tpu.memory_space<vmem>>, vector<8x128xf32>,
    %cst_1 = arith.constant 0.000000e+00 : f32
    %2 = vector.broadcast %cst_1 : f32 to vector<8x128xf32>
    %c0_2 = arith.constant 0 : index
    %c1152 = arith.constant 1152 : index
    %3 = vector.load %arg7[%c0_2, %c1152] : memref<8x1280xf32, #tpu.memory_space<vmem>>, vector<8x128xf32>
    tpu.vector_store %arg7[%c0_2, %c1152], %2 {strides = array<i32>} : memref<8x1280xf32, #tpu.memory_space<vmem>>, vector<8x128xf32>,
    %4 = tpu.iota {dimensions = array<i32: 1>} : vector<1x1024xi32>
    %c32_i32 = arith.constant 32 : i32
    %c0_i32 = arith.constant 0 : i32
    %5 = arith.cmpi eq, %c32_i32, %c0_i32 : i32
    %c1_i32 = arith.constant 1 : i32
    %6 = arith.select %5, %c1_i32, %c32_i32 : i32
    %7 = vector.broadcast %6 : i32 to vector<1x1024xi32>
    %8 = arith.remsi %4, %7 : vector<1x1024xi32>
    %c0_i32_3 = arith.constant 0 : i32
    %9 = vector.broadcast %c0_i32_3 : i32 to vector<1x1024xi32>
    %10 = arith.cmpi ne, %8, %9 : vector<1x1024xi32>
    %c0_i32_4 = arith.constant 0 : i32
    %11 = vector.broadcast %c0_i32_4 : i32 to vector<1x1024xi32>
    %12 = arith.cmpi slt, %8, %11 : vector<1x1024xi32>
    %c0_i32_5 = arith.constant 0 : i32
    %13 = arith.cmpi slt, %6, %c0_i32_5 : i32
    %14 = vector.broadcast %13 : i1 to vector<1x1024xi1>
    %15 = vector.broadcast %14 : vector<1x1024xi1> to vector<1x1024xi1>
    %16 = arith.xori %12, %15 : vector<1x1024xi1>
    %17 = arith.andi %16, %10 : vector<1x1024xi1>
    %18 = vector.broadcast %6 : i32 to vector<1x1024xi32>
    %19 = arith.addi %8, %18 : vector<1x1024xi32>
    %20 = arith.select %17, %19, %8 : vector<1x1024xi1>, vector<1x1024xi32>
    %c0_i32_6 = arith.constant 0 : i32
    %21 = vector.broadcast %c0_i32_6 : i32 to vector<1x1024xi32>
    %22 = arith.cmpi ne, %20, %21 : vector<1x1024xi32>
    %c31_i32 = arith.constant 31 : i32
    %23 = vector.broadcast %c31_i32 : i32 to vector<1x1024xi32>
    %24 = arith.cmpi ne, %20, %23 : vector<1x1024xi32>
    %c0_7 = arith.constant 0 : index
    %c0_8 = arith.constant 0 : index
    %c0_9 = arith.constant 0 : index
    %25 = vector.load %arg1[%c0_7, %c0_8, %c0_9] : memref<1x8x1024xbf16, #tpu.memory_space<vmem>>, vector<1x8x1024xbf16>
    %26 = vector.shape_cast %25 : vector<1x8x1024xbf16> to vector<8x1024xbf16>
    %27 = arith.extf %26 : vector<8x1024xbf16> to vector<8x1024xf32>
    %c0_10 = arith.constant 0 : index
    %c128 = arith.constant 128 : index
    %28 = vector.load %arg7[%c0_10, %c128] : memref<8x1280xf32, #tpu.memory_space<vmem>>, vector<8x1024xf32>
    tpu.vector_store %arg7[%c0_10, %c128], %27 {strides = array<i32>} : memref<8x1280xf32, #tpu.memory_space<vmem>>, vector<8x1024xf32>,
    %c0_11 = arith.constant 0 : index
    %c95 = arith.constant 95 : index
    %29 = vector.load %arg7[%c0_11, %c95] : memref<8x1280xf32, #tpu.memory_space<vmem>>, vector<8x1024xf32>
    %cst_12 = arith.constant 0.000000e+00 : f32
    %30 = vector.shape_cast %22 : vector<1x1024xi1> to vector<1x1024xi1>
    %31 = vector.broadcast %30 : vector<1x1024xi1> to vector<8x1024xi1>
    %32 = vector.broadcast %cst_12 : f32 to vector<8x1024xf32>
    %33 = arith.select %31, %29, %32 : vector<8x1024xi1>, vector<8x1024xf32>
    %c0_13 = arith.constant 0 : index
    %c96 = arith.constant 96 : index
    %34 = vector.load %arg7[%c0_13, %c96] : memref<8x1280xf32, #tpu.memory_space<vmem>>, vector<8x1024xf32>
    %c0_14 = arith.constant 0 : index
    %c97 = arith.constant 97 : index
    %35 = vector.load %arg7[%c0_14, %c97] : memref<8x1280xf32, #tpu.memory_space<vmem>>, vector<8x1024xf32>
    %cst_15 = arith.constant 0.000000e+00 : f32
    %36 = vector.shape_cast %24 : vector<1x1024xi1> to vector<1x1024xi1>
    %37 = vector.broadcast %36 : vector<1x1024xi1> to vector<8x1024xi1>
    %38 = vector.broadcast %cst_15 : f32 to vector<8x1024xf32>
    %39 = arith.select %37, %35, %38 : vector<8x1024xi1>, vector<8x1024xf32>
    %c0_16 = arith.constant 0 : index
    %c127 = arith.constant 127 : index
    %40 = vector.load %arg7[%c0_16, %c127] : memref<8x1280xf32, #tpu.memory_space<vmem>>, vector<8x1024xf32>
    %cst_17 = arith.constant 0.000000e+00 : f32
    %41 = vector.shape_cast %22 : vector<1x1024xi1> to vector<1x1024xi1>
    %42 = vector.broadcast %41 : vector<1x1024xi1> to vector<8x1024xi1>
    %43 = vector.broadcast %cst_17 : f32 to vector<8x1024xf32>
    %44 = arith.select %42, %40, %43 : vector<8x1024xi1>, vector<8x1024xf32>
    %c0_18 = arith.constant 0 : index
    %c128_19 = arith.constant 128 : index
    %45 = vector.load %arg7[%c0_18, %c128_19] : memref<8x1280xf32, #tpu.memory_space<vmem>>, vector<8x1024xf32>
    %c0_20 = arith.constant 0 : index
    %c129 = arith.constant 129 : index
    %46 = vector.load %arg7[%c0_20, %c129] : memref<8x1280xf32, #tpu.memory_space<vmem>>, vector<8x1024xf32>
    %cst_21 = arith.constant 0.000000e+00 : f32
    %47 = vector.shape_cast %24 : vector<1x1024xi1> to vector<1x1024xi1>
    %48 = vector.broadcast %47 : vector<1x1024xi1> to vector<8x1024xi1>
    %49 = vector.broadcast %cst_21 : f32 to vector<8x1024xf32>
    %50 = arith.select %48, %46, %49 : vector<8x1024xi1>, vector<8x1024xf32>
    %c0_22 = arith.constant 0 : index
    %c159 = arith.constant 159 : index
    %51 = vector.load %arg7[%c0_22, %c159] : memref<8x1280xf32, #tpu.memory_space<vmem>>, vector<8x1024xf32>
    %cst_23 = arith.constant 0.000000e+00 : f32
    %52 = vector.shape_cast %22 : vector<1x1024xi1> to vector<1x1024xi1>
    %53 = vector.broadcast %52 : vector<1x1024xi1> to vector<8x1024xi1>
    %54 = vector.broadcast %cst_23 : f32 to vector<8x1024xf32>
    %55 = arith.select %53, %51, %54 : vector<8x1024xi1>, vector<8x1024xf32>
    %c0_24 = arith.constant 0 : index
    %c160 = arith.constant 160 : index
    %56 = vector.load %arg7[%c0_24, %c160] : memref<8x1280xf32, #tpu.memory_space<vmem>>, vector<8x1024xf32>
    %c0_25 = arith.constant 0 : index
    %c161 = arith.constant 161 : index
    %57 = vector.load %arg7[%c0_25, %c161] : memref<8x1280xf32, #tpu.memory_space<vmem>>, vector<8x1024xf32>
    %cst_26 = arith.constant 0.000000e+00 : f32
    %58 = vector.shape_cast %24 : vector<1x1024xi1> to vector<1x1024xi1>
    %59 = vector.broadcast %58 : vector<1x1024xi1> to vector<8x1024xi1>
    %60 = vector.broadcast %cst_26 : f32 to vector<8x1024xf32>
    %61 = arith.select %59, %57, %60 : vector<8x1024xi1>, vector<8x1024xf32>
    %62 = tpu.concatenate %33, %34, %39, %44, %45, %50, %55, %56, %61 in 0 : vector<8x1024xf32>, vector<8x1024xf32>, vector<8x1024xf32>, vector<8x1024xf32>, vector<8x1024xf32>, vector<8x1024xf32>, vector<8x1024xf32>, vector<8x1024xf32>, vector<8x1024xf32> -> vector<72x1024xf32>
    %63 = arith.truncf %62 : vector<72x1024xf32> to vector<72x1024xbf16>
    %c0_27 = arith.constant 0 : index
    %c0_28 = arith.constant 0 : index
    %64 = vector.load %arg2[%c0_27, %c0_28] : memref<8x72xbf16, #tpu.memory_space<vmem>>, vector<8x72xbf16>
    %cst_29 = arith.constant dense<0.000000e+00> : vector<8x1024xf32>
    %65 = tpu.matmul %64, %63, %cst_29 {dimension_numbers = #tpu.dot_dimension_numbers<[1], [0], [0], [1], [0, 0, 1, 1], [], []>} : vector<8x72xbf16>, vector<72x1024xbf16>, vector<8x1024xf32> -> vector<8x1024xf32>
    %c0_30 = arith.constant 0 : index
    %c0_31 = arith.constant 0 : index
    %66 = vector.load %arg3[%c0_30, %c0_31] : memref<8x1xf32, #tpu.memory_space<vmem>>, vector<8x1xf32>
    %67 = vector.broadcast %66 : vector<8x1xf32> to vector<8x1024xf32>
    %68 = arith.addf %65, %67 : vector<8x1024xf32>
    %c0_32 = arith.constant 0 : index
    %c128_33 = arith.constant 128 : index
    %69 = vector.load %arg7[%c0_32, %c128_33] : memref<8x1280xf32, #tpu.memory_space<vmem>>, vector<8x1024xf32>
    tpu.vector_store %arg7[%c0_32, %c128_33], %68 {strides = array<i32>} : memref<8x1280xf32, #tpu.memory_space<vmem>>, vector<8x1024xf32>,
    %c0_34 = arith.constant 0 : index
    %c95_35 = arith.constant 95 : index
    %70 = vector.load %arg7[%c0_34, %c95_35] : memref<8x1280xf32, #tpu.memory_space<vmem>>, vector<8x1024xf32>
    %cst_36 = arith.constant 0.000000e+00 : f32
    %71 = vector.shape_cast %22 : vector<1x1024xi1> to vector<1x1024xi1>
    %72 = vector.broadcast %71 : vector<1x1024xi1> to vector<8x1024xi1>
    %73 = vector.broadcast %cst_36 : f32 to vector<8x1024xf32>
    %74 = arith.select %72, %70, %73 : vector<8x1024xi1>, vector<8x1024xf32>
    %c0_37 = arith.constant 0 : index
    %c96_38 = arith.constant 96 : index
    %75 = vector.load %arg7[%c0_37, %c96_38] : memref<8x1280xf32, #tpu.memory_space<vmem>>, vector<8x1024xf32>
    %c0_39 = arith.constant 0 : index
    %c97_40 = arith.constant 97 : index
    %76 = vector.load %arg7[%c0_39, %c97_40] : memref<8x1280xf32, #tpu.memory_space<vmem>>, vector<8x1024xf32>
    %cst_41 = arith.constant 0.000000e+00 : f32
    %77 = vector.shape_cast %24 : vector<1x1024xi1> to vector<1x1024xi1>
    %78 = vector.broadcast %77 : vector<1x1024xi1> to vector<8x1024xi1>
    %79 = vector.broadcast %cst_41 : f32 to vector<8x1024xf32>
    %80 = arith.select %78, %76, %79 : vector<8x1024xi1>, vector<8x1024xf32>
    %c0_42 = arith.constant 0 : index
    %c127_43 = arith.constant 127 : index
    %81 = vector.load %arg7[%c0_42, %c127_43] : memref<8x1280xf32, #tpu.memory_space<vmem>>, vector<8x1024xf32>
    %cst_44 = arith.constant 0.000000e+00 : f32
    %82 = vector.shape_cast %22 : vector<1x1024xi1> to vector<1x1024xi1>
    %83 = vector.broadcast %82 : vector<1x1024xi1> to vector<8x1024xi1>
    %84 = vector.broadcast %cst_44 : f32 to vector<8x1024xf32>
    %85 = arith.select %83, %81, %84 : vector<8x1024xi1>, vector<8x1024xf32>
    %c0_45 = arith.constant 0 : index
    %c128_46 = arith.constant 128 : index
    %86 = vector.load %arg7[%c0_45, %c128_46] : memref<8x1280xf32, #tpu.memory_space<vmem>>, vector<8x1024xf32>
    %c0_47 = arith.constant 0 : index
    %c129_48 = arith.constant 129 : index
    %87 = vector.load %arg7[%c0_47, %c129_48] : memref<8x1280xf32, #tpu.memory_space<vmem>>, vector<8x1024xf32>
    %cst_49 = arith.constant 0.000000e+00 : f32
    %88 = vector.shape_cast %24 : vector<1x1024xi1> to vector<1x1024xi1>
    %89 = vector.broadcast %88 : vector<1x1024xi1> to vector<8x1024xi1>
    %90 = vector.broadcast %cst_49 : f32 to vector<8x1024xf32>
    %91 = arith.select %89, %87, %90 : vector<8x1024xi1>, vector<8x1024xf32>
    %c0_50 = arith.constant 0 : index
    %c159_51 = arith.constant 159 : index
    %92 = vector.load %arg7[%c0_50, %c159_51] : memref<8x1280xf32, #tpu.memory_space<vmem>>, vector<8x1024xf32>
    %cst_52 = arith.constant 0.000000e+00 : f32
    %93 = vector.shape_cast %22 : vector<1x1024xi1> to vector<1x1024xi1>
    %94 = vector.broadcast %93 : vector<1x1024xi1> to vector<8x1024xi1>
    %95 = vector.broadcast %cst_52 : f32 to vector<8x1024xf32>
    %96 = arith.select %94, %92, %95 : vector<8x1024xi1>, vector<8x1024xf32>
    %c0_53 = arith.constant 0 : index
    %c160_54 = arith.constant 160 : index
    %97 = vector.load %arg7[%c0_53, %c160_54] : memref<8x1280xf32, #tpu.memory_space<vmem>>, vector<8x1024xf32>
    %c0_55 = arith.constant 0 : index
    %c161_56 = arith.constant 161 : index
    %98 = vector.load %arg7[%c0_55, %c161_56] : memref<8x1280xf32, #tpu.memory_space<vmem>>, vector<8x1024xf32>
    %cst_57 = arith.constant 0.000000e+00 : f32
    %99 = vector.shape_cast %24 : vector<1x1024xi1> to vector<1x1024xi1>
    %100 = vector.broadcast %99 : vector<1x1024xi1> to vector<8x1024xi1>
    %101 = vector.broadcast %cst_57 : f32 to vector<8x1024xf32>
    %102 = arith.select %100, %98, %101 : vector<8x1024xi1>, vector<8x1024xf32>
    %103 = tpu.concatenate %74, %75, %80, %85, %86, %91, %96, %97, %102 in 0 : vector<8x1024xf32>, vector<8x1024xf32>, vector<8x1024xf32>, vector<8x1024xf32>, vector<8x1024xf32>, vector<8x1024xf32>, vector<8x1024xf32>, vector<8x1024xf32>, vector<8x1024xf32> -> vector<72x1024xf32>
    %104 = arith.truncf %103 : vector<72x1024xf32> to vector<72x1024xbf16>
    %c0_58 = arith.constant 0 : index
    %c0_59 = arith.constant 0 : index
    %105 = vector.load %arg4[%c0_58, %c0_59] : memref<3x72xbf16, #tpu.memory_space<vmem>>, vector<3x72xbf16>
    %cst_60 = arith.constant dense<0.000000e+00> : vector<3x1024xf32>
    %106 = tpu.matmul %105, %104, %cst_60 {dimension_numbers = #tpu.dot_dimension_numbers<[1], [0], [0], [1], [0, 0, 1, 1], [], []>} : vector<3x72xbf16>, vector<72x1024xbf16>, vector<3x1024xf32> -> vector<3x1024xf32>
    %c0_61 = arith.constant 0 : index
    %c0_62 = arith.constant 0 : index
    %107 = vector.load %arg5[%c0_61, %c0_62] : memref<3x1xf32, #tpu.memory_space<vmem>>, vector<3x1xf32>
    %108 = vector.broadcast %107 : vector<3x1xf32> to vector<3x1024xf32>
    %109 = arith.addf %106, %108 : vector<3x1024xf32>
    %c0_63 = arith.constant 0 : index
    %c0_64 = arith.constant 0 : index
    %c0_65 = arith.constant 0 : index
    %110 = vector.load %arg6[%c0_63, %c0_64, %c0_65] : memref<1x3x1024xf32, #tpu.memory_space<vmem>>, vector<1x3x1024xf32>
    %111 = vector.shape_cast %110 : vector<1x3x1024xf32> to vector<3x1024xf32>
    %112 = vector.shape_cast %109 : vector<3x1024xf32> to vector<1x3x1024xf32>
    tpu.vector_store %arg6[%c0_63, %c0_64, %c0_65], %112 {strides = array<i32>} : memref<1x3x1024xf32, #tpu.memory_space<vmem>>, vector<1x3x1024xf32>,
    return
  }
  func.func @transform_0(%arg0: i32) -> (i32, i32, i32) {
    %c0_i32 = arith.constant 0 : i32
    %c0_i32_0 = arith.constant 0 : i32
    %c0_i32_1 = arith.constant 0 : i32
    return %arg0, %c0_i32, %c0_i32_0 : i32, i32, i32
  }
  func.func @transform_1(%arg0: i32) -> (i32, i32) {
    %c0_i32 = arith.constant 0 : i32
    %c0_i32_0 = arith.constant 0 : i32
    %c0_i32_1 = arith.constant 0 : i32
    return %c0_i32, %c0_i32_0 : i32, i32
  }
  func.func @transform_2(%arg0: i32) -> (i32, i32) {
    %c0_i32 = arith.constant 0 : i32
    %c0_i32_0 = arith.constant 0 : i32
    %c0_i32_1 = arith.constant 0 : i32
    return %c0_i32, %c0_i32_0 : i32, i32
  }
  func.func @transform_3(%arg0: i32) -> (i32, i32) {
    %c0_i32 = arith.constant 0 : i32
    %c0_i32_0 = arith.constant 0 : i32
    %c0_i32_1 = arith.constant 0 : i32
    return %c0_i32, %c0_i32_0 : i32, i32
  }
  func.func @transform_4(%arg0: i32) -> (i32, i32) {
    %c0_i32 = arith.constant 0 : i32
    %c0_i32_0 = arith.constant 0 : i32
    %c0_i32_1 = arith.constant 0 : i32
    return %c0_i32, %c0_i32_0 : i32, i32
  }
  func.func @transform_5(%arg0: i32) -> (i32, i32, i32) {
    %c0_i32 = arith.constant 0 : i32
    %c0_i32_0 = arith.constant 0 : i32
    %c0_i32_1 = arith.constant 0 : i32
    return %arg0, %c0_i32, %c0_i32_0 : i32, i32, i32
  }
}

</mosaic_0001>

<bundles_post_ra>
// kernel: densenet_generator_forward.2
= control target key start
LH: loop header
LB: loop body
LE: loop exit
PB: predicated region body
PF: predicated region fallthrough
CT: control target
= control target key end

     0   :  { %s2295_s24 = smov 0   ;;  %s2802_s0 = inlined_call_operand.vmem [shape: f32[2,8,256], index: 0, kind: input, shape index: {}]   ;;  %s2803_s1 = inlined_call_operand.vmem [shape: bf16[8,72], index: 1, kind: input, shape index: {}]   ;;  %s2804_s2 = inlined_call_operand.vmem [shape: f32[8,1], index: 2, kind: input, shape index: {}]   ;;  %s2805_s3 = inlined_call_operand.vmem [shape: bf16[8,8], index: 3, kind: input, shape index: {}]   ;;  %s2806_s4 = inlined_call_operand.vmem [shape: f32[8,1], index: 4, kind: input, shape index: {}]   ;;  %s2807_s5 = inlined_call_operand.vmem [shape: bf16[4,72], index: 5, kind: input, shape index: {}]   ;;  %s2808_s6 = inlined_call_operand.vmem [shape: f32[4,1], index: 6, kind: input, shape index: {}]   ;;  %s2809_s7 = inlined_call_operand.vmem [shape: bf16[8,12], index: 7, kind: input, shape index: {}]   ;;  %s2810_s8 = inlined_call_operand.vmem [shape: f32[8,1], index: 8, kind: input, shape index: {}]   ;;  %s2811_s9 = inlined_call_operand.vmem [shape: bf16[4,72], index: 9, kind: input, shape index: {}]   ;;  %s2812_s10 = inlined_call_operand.vmem [shape: f32[4,1], index: 10, kind: input, shape index: {}]   ;;  %s2813_s11 = inlined_call_operand.vmem [shape: bf16[8,16], index: 11, kind: input, shape index: {}]   ;;  %s2814_s12 = inlined_call_operand.vmem [shape: f32[8,1], index: 12, kind: input, shape index: {}]   ;;  %s2815_s13 = inlined_call_operand.vmem [shape: bf16[32,72], index: 13, kind: input, shape index: {}]   ;;  %s2816_s14 = inlined_call_operand.vmem [shape: f32[32,1], index: 14, kind: input, shape index: {}]   ;;  %s2817_s15 = inlined_call_operand.vmem [shape: bf16[8,8], index: 15, kind: input, shape index: {}]   ;;  %s2818_s16 = inlined_call_operand.vmem [shape: f32[8,1], index: 16, kind: input, shape index: {}]   ;;  %s2819_s17 = inlined_call_operand.vmem [shape: bf16[2,4,8,256], index: 17, kind: output, shape index: {}]  }
   0x1   :  { %2834 = sst [smem:[#allocation3_spill]] %s2802_s0 }
   0x2   :  { %2835 = sst [smem:[#allocation4_spill]] %s2803_s1 }
   0x3 LB: > { %s1853_s25 = sadd.s32 4294967295, %s2190_s24   ;;  %p1857_p0 = scmp.ge.s32.totalorder %s2190_s24, 1  ;;  %s2190_s24 = sphi %s2295_s24, %s27_s24  }
   0x4   : > { %p487_p1 = scmp.lt.s32.totalorder %s2190_s24, 3 }
   0x6   : > { %p488_p2 = pnand %p1857_p0, %p487_p1 }
   0x7   : > { %p539_p3 = scmp.lt.s32.totalorder (!%p488_p2), %s1853_s25, 1  ;;  %s2193_s26 = smov (!%p488_p2), 111  }
   0x8   : > { %491 = sbr.rel (%p488_p2) target bundleno = 2028 (0x7ec), region = 88  ;;  %s2836_s0 = sld [smem:[#allocation3_spill]] (!%p488_p2) }
   0x9   : > { %s2194_s18 = smov (!%p488_p2), 113   ;;  %s2195_s19 = smov (!%p488_p2), 112  }
   0xa   : > { %s2830_s1 = smov (!%p488_p2), 127   ;;  %s2197_s20 = smov (!%p488_p2), 15  }
   0xb   : > { %s2823_s21 = smov (!%p488_p2), 1   ;;  %s2200_s22 = smov (!%p488_p2), 17  }
   0xc   : > { %s2825_s23 = smov (!%p488_p2), 16   ;;  %s2867_s28 = smov (!%p488_p2), 16  }
   0xd   : > { %v2192_v0 = vmov 0.0   ;;  %s2895_s25 = smov (!%p539_p3, %s1853_s25), 1  ;;  %v2199_v5 = vmov 0   ;;  %v718_v6 = vld [vmem:[%s2804_s2] sm:$0xff]  ;;  %v552_v7 = vlaneseq  ;;  %vm2828_vm0 = vcmask 908288   ;;  %s2883_s29 = smov 127  }
   0xe   : > { %676 = vrot.lane.b32.xlu0 %v2192_v0, %s2193_s26  ;;  %s1991_s27 = sshll.u32 %s2895_s25, 4  ;;  %767 = vmatprep.mubr.bf16.mxu0 %v2199_v5  ;;  %vm2821_vm3 = vcmask 924672   ;;  %vm702_vm4 = vcmask 916480   ;;  %vm728_vm5 = vcmask 1043456   ;;  %vm2202_vm8 = vmmov 1   ;;  %v2182_v62 = vld [vmem:[%s2815_s13] sm:$0xff]  }
   0xf   : > { %s543_s30 = scalar_lea.vmem %s2836_s0, %s1991_s27  ;;  %2058 = vset.pattern.permute.xlu0 %v2199_v5  ;;  %2059 = vset.pattern.permute.xlu1 %v2199_v5  ;;  %v553_v8 = vand.u32 127, %v552_v7  ;;  %vm2820_vm10 = vcmask 1039360   ;;  %vm620_vm13 = vcmask 121856   ;;  %vm633_vm15 = vcmask 7168   ;;  %s2866_s27 = smov 1  }
  0x10   : > { %v2311_v1 = vld [vmem:[%s543_s30 + $0x8] sm:$0xff]  ;;  %v2313_v2 = vld [vmem:[%s543_s30] sm:$0xff]  ;;  %1004 = vmatprep.mubr.bf16.mxu1 %v2199_v5  ;;  %s2857_s30 = sld [smem:[#allocation4_spill]]  ;;  %s2204_s0 = smov 116  }
  0x11   : > { %v2023_v3 = vpack.i.bf16 %v2192_v0, %v2311_v1  ;;  %v2018_v4 = vpack.i.bf16 %v2311_v1, %v2313_v2  ;;  %v554_v9 = vadd.s32 128, %v553_v8  ;;  %v559_v12 = vand.u32 15, %v553_v8  ;;  %v2183_v8 = vld [vmem:[%s2815_s13 + $0x8] sm:$0xff]  }
  0x13   : > { %2024 = vrot.lane.b32.xlu1 %v2023_v3, %s2194_s18  ;;  %2019 = vrot.lane.b32.xlu0 %v2018_v4, %s2193_s26  ;;  %v566_v11 = vand.u32 15, %v554_v9  ;;  %vm2354_vm2 = vcmp.ne.s32.totalorder %v559_v12, 15  ;;  %vm2371_vm7 = vcmp.ne.s32.totalorder %v559_v12, 0 }
  0x14   : > { %vm2390_vm11 = vmpackc.low %vm2202_vm8, %vm2371_vm7 }
  0x15   : > { %vm2350_vm1 = vcmp.ne.s32.totalorder %v566_v11, 15  ;;  %vm2360_vm6 = vcmp.ne.s32.totalorder %v566_v11, 0  ;;  %vm2412_vm14 = vmpackc.low %vm2354_vm2, %vm2202_vm8 }
  0x16   : > { %vm2378_vm9 = vmpackc.low %vm2202_vm8, %vm2360_vm6 }
  0x17   : > { %2029 = vrot.lane.b32.xlu1 %v2023_v3, %s2195_s19  ;;  %659 = vrot.lane.b32.xlu0 %v2313_v2, %s2194_s18  ;;  %vm2398_vm12 = vmpackc.low %vm2350_vm1, %vm2202_vm8 }
  0x18   : > { %vm2424_vm8 = vmpackc.low %vm2360_vm6, %vm2350_vm1  ;;  %vm2829_vm6 = vcmask 138240  }
  0x1b   : > { %696 = vrot.lane.b32.xlu1 %v2313_v2, %s2195_s19  ;;  %2034 = vrot.lane.b32.xlu0 %v2023_v3, %s2830_s1 }
  0x1f   : > { %646 = vrot.lane.b32.xlu1 %v2313_v2, %s2830_s1  ;;  %2039 = vrot.lane.b32.xlu0 %v2018_v4, %s2197_s20 }
  0x23   : > { %2044 = vrot.lane.b32.xlu1 %v2018_v4, %s2823_s21  ;;  %614 = vrot.lane.b32.xlu0 %v2192_v0, %s2197_s20 }
  0x27   : > { %627 = vrot.lane.b32.xlu1 %v2192_v0, %s2823_s21  ;;  %2049 = vrot.lane.b32.xlu0 %v2018_v4, %s2200_s22 }
  0x2b   : > { %2054 = vrot.lane.b32.xlu1 %v2018_v4, %s2825_s23  ;;  %597 = vrot.lane.b32.xlu0 %v2192_v0, %s2200_s22 }
  0x2f   : > { %685 = vrot.lane.b32.xlu1 %v2192_v0, %s2825_s23  ;;  %721 = vperm.xlu0 %2058, %v718_v6  }
  0x33   : > { %918 = vrot.lane.b32.xlu0 %v2192_v0, %s2193_s26 }
  0x80   : > { %v677_v10 = vpop.permute.xlu0 %676 }
  0x85   : > { %v2025_v13 = vpop.permute.xlu1 %2024  ;;  %v2020_v14 = vpop.permute.xlu0 %2019 }
  0x86   : > { %v2022_v15 = vunpack.i.h.bf16 %v2020_v14  ;;  %v2021_v16 = vunpack.i.l.bf16 %v2020_v14  ;;  %v2027_v19 = vunpack.i.h.bf16 %v2025_v13  ;;  %v2026_v20 = vunpack.i.l.bf16 %v2025_v13 }
  0x88   : > { %v680_v21 = vsel %vm2828_vm0, %v2022_v15, %v677_v10  ;;  %v679_v22 = vsel %vm2828_vm0, %v2021_v16, %v2022_v15  ;;  %v667_v32 = vsel %vm2821_vm3, %v2026_v20, %v2027_v19 }
  0x89   : > { %v2030_v23 = vpop.permute.xlu1 %2029  ;;  %v660_v24 = vpop.permute.xlu0 %659  ;;  %v684_v26 = vsel %vm2350_vm1, %v680_v21, 0.0  ;;  %v683_v27 = vsel %vm2354_vm2, %v679_v22, 0.0 }
  0x8a   : > { %v2032_v28 = vunpack.i.h.bf16 %v2030_v23  ;;  %v2031_v29 = vunpack.i.l.bf16 %v2030_v23  ;;  %v716_v30 = vpack.c.bf16 %v684_v26, %v684_v26  ;;  %v715_v31 = vpack.c.bf16 %v683_v27, %v683_v27  ;;  %v717_v23 = vld [vmem:[%s2857_s30] sm:$0xf] }
  0x8b   : > { %v666_v40 = vsel %vm2821_vm3, %v660_v24, %v2026_v20  ;;  %vm691_vm3 = vcmask 130048   ;;  %v781_v24 = vld [vmem:[%s2806_s4] sm:$0xff] }
  0x8c   : > { %v704_v33 = vsel %vm702_vm4, %v2031_v29, %v2032_v28  ;;  %1862 = vmatprep.subr.msk.bf16.mxu0 %vm728_vm5, %v716_v30  ;;  %v730_v38 = vsel %vm728_vm5, %v715_v31, 0  ;;  %784 = vperm.xlu1 %2059, %v781_v24  }
  0x8d   : > { %v1864_v36 = vpack.c.bf16 %v704_v33, %v667_v32  ;;  %v697_v37 = vpop.permute.xlu1 %696  ;;  %v2035_v39 = vpop.permute.xlu0 %2034  ;;  %742 = vmatpush1.bf16.msra.mxu0 %v730_v38  ;;  %v778_v38 = vld [vmem:[%s2805_s3] sm:$0xf] }
  0x8e   : > { %v703_v41 = vsel %vm702_vm4, %v697_v37, %v2031_v29  ;;  %v2037_v42 = vunpack.i.h.bf16 %v2035_v39  ;;  %v2036_v43 = vunpack.i.l.bf16 %v2035_v39 }
  0x8f   : > { %v1867_v44 = vpack.c.bf16 %v703_v41, %v666_v40  ;;  %1865 = vmatprep.subr.msk.bf16.mxu0 %vm2378_vm9, %v1864_v36 }
  0x90   : > { %v654_v46 = vsel %vm2820_vm10, %v2036_v43, %v2037_v42  ;;  %860 = vrot.lane.b32.xlu1 %v2192_v0, %s2197_s20 }
  0x91   : > { %v1870_v48 = vpack.c.bf16 %v654_v46, %v2311_v1  ;;  %v647_v49 = vpop.permute.xlu1 %646  ;;  %v2040_v50 = vpop.permute.xlu0 %2039  ;;  %1868 = vmatpush1.bf16.msk.msra.mxu0 %vm2390_vm11, %v1867_v44 }
  0x92   : > { %v653_v51 = vsel %vm2820_vm10, %v647_v49, %v2036_v43  ;;  %v2042_v52 = vunpack.i.h.bf16 %v2040_v50  ;;  %v2041_v53 = vunpack.i.l.bf16 %v2040_v50  ;;  %vm2434_vm10 = vmpackc.low %vm2371_vm7, %vm2354_vm2  ;;  %vm2822_vm7 = vcmask 588800  }
  0x93   : > { %v1873_v54 = vpack.c.bf16 %v653_v51, %v2313_v2  ;;  %1871 = vmatprep.subr.msk.bf16.mxu0 %vm2398_vm12, %v1870_v48 }
  0x94   : > { %v622_v58 = vsel %vm620_vm13, %v2041_v53, %v2042_v52  ;;  %v957_v52 = vld [vmem:[%s2808_s6] sm:$0xf] }
  0x95   : > { %v2045_v56 = vpop.permute.xlu1 %2044  ;;  %v615_v57 = vpop.permute.xlu0 %614  ;;  %1874 = vmatpush1.bf16.msk.msra.mxu0 %vm2412_vm14, %v1873_v54 }
  0x96   : > { %v2047_v59 = vunpack.i.h.bf16 %v2045_v56  ;;  %v2046_v60 = vunpack.i.l.bf16 %v2045_v56  ;;  %v621_v3 = vsel %vm620_vm13, %v615_v57, %v2041_v53  ;;  %v2513_v53 = vld [vmem:[%s2809_s7] sm:$0xf] }
  0x97   : > { %v1916_v54 = vcombine.low %v2513_v53, %v2513_v53  ;;  %v1119_v56 = vld [vmem:[%s2810_s8] sm:$0xff] }
  0x98   : > { %v635_v61 = vsel %vm633_vm15, %v2046_v60, %v2047_v59 }
  0x99   : > { %v1876_v63 = vpack.c.bf16 %v635_v61, %v622_v58  ;;  %v628_v1 = vpop.permute.xlu1 %627  ;;  %v2050_v2 = vpop.permute.xlu0 %2049 }
  0x9a   : > { %v634_v4 = vsel %vm633_vm15, %v628_v1, %v2046_v60  ;;  %v2052_v6 = vunpack.i.h.bf16 %v2050_v2  ;;  %v2051_v7 = vunpack.i.l.bf16 %v2050_v2 }
  0x9b   : > { %v1879_v9 = vpack.c.bf16 %v634_v4, %v621_v3  ;;  %1877 = vmatprep.subr.msk.bf16.mxu0 %vm2424_vm8, %v1876_v63 }
  0x9c   : > { %v605_v11 = vsel %vm2829_vm6, %v2051_v7, %v2052_v6 }
  0x9d   : > { %v2055_v10 = vpop.permute.xlu1 %2054  ;;  %1880 = vmatpush1.bf16.msk.msra.mxu0 %vm2434_vm10, %v1879_v9  ;;  %v598_v14 = vpop.permute.xlu0 %597 }
  0x9e   : > { %v2057_v12 = vunpack.i.h.bf16 %v2055_v10  ;;  %v2056_v13 = vunpack.i.l.bf16 %v2055_v10  ;;  %v604_v20 = vsel %vm2829_vm6, %v598_v14, %v2051_v7  ;;  %vm2860_vm6 = vcmask 1039360  }
  0xa0   : > { %v693_v15 = vsel %vm691_vm3, %v2056_v13, %v2057_v12 }
  0xa1   : > { %v1882_v16 = vpack.c.bf16 %v693_v15, %v605_v11  ;;  %v686_v19 = vpop.permute.xlu1 %685 }
  0xa2   : > { %v692_v21 = vsel %vm691_vm3, %v686_v19, %v2056_v13 }
  0xa3   : > { %v1885_v22 = vpack.c.bf16 %v692_v21, %v604_v20  ;;  %1883 = vmatprep.subr.msk.bf16.mxu0 %vm2378_vm9, %v1882_v16 }
  0xa5   : > { %1886 = vmatpush1.bf16.msk.msra.mxu0 %vm2390_vm11, %v1885_v22 }
  0xa8   : > { %1887 = vmatmul.mubr.msk.bf16.vlgmr.msra.gmra.mxu0 %vm2822_vm7, %v717_v23  ;;  %vm2827_vm7 = vcmask 64512  }
  0xa9   : > { %829 = vmatprep.mubr.bf16.mxu0 %v2199_v5 }
  0xaa   : > { %v722_v25 = vpop.permute.xlu0 %721 }
  0xae   : > { %v919_v58 = vpop.permute.xlu0 %918 }
 0x107   : > { %v785_v39 = vpop.permute.xlu1 %784 }
 0x10b   : > { %v861_v57 = vpop.permute.xlu1 %860 }
 0x168   : > { %v769_v26 = vpop.f32.mrf.mxu0 }
 0x169   : > { %v2460_v27 = vadd.f32 %v769_v26, %v722_v25 }
 0x16a   : > { %v771_v28 = vpop.f32.mrf.mxu0 }
 0x16b   : > { %v776_v29 = vmax.f32 %v2460_v27, 0.0  ;;  %v2463_v30 = vadd.f32 %v771_v28, %v722_v25 }
 0x16c   : > { %v773_v31 = vpop.f32.mrf.mxu0 }
 0x16d   : > { %v779_v32 = vpack.c.bf16 %v776_v29, %v776_v29  ;;  %v777_v33 = vmax.f32 %v2463_v30, 0.0 }
 0x16e   : > { %v774_v34 = vpop.f32.mrf.mxu0 }
 0x16f   : > { %v2466_v36 = vpack.c.bf16 %v777_v33, %v777_v33  ;;  %v2471_v37 = vsel %vm728_vm5, %v779_v32, 0 }
 0x171   : > { %1888 = vmatprep.subr.msk.bf16.mxu0 %vm728_vm5, %v2466_v36 }
 0x172   : > { %812 = vmatpush1.bf16.msra.mxu0 %v2471_v37 }
 0x175   : > { %1889 = vmatmul.mubr.msk.bf16.vlgmr.msra.gmra.mxu0 %vm2827_vm7, %v778_v38  ;;  %vm2858_vm7 = vcmask 924672  }
 0x176   : > { %1066 = vmatprep.mubr.bf16.mxu0 %v2199_v5 }
 0x235   : > { %v831_v40 = vpop.f32.mrf.mxu0 }
 0x236   : > { %v832_v41 = vadd.f32 %v831_v40, %v785_v39 }
 0x237   : > { %v833_v42 = vpop.f32.mrf.mxu0 }
 0x238   : > { %v2479_v43 = vmax.f32 %v832_v41, 0.0  ;;  %v834_v44 = vadd.f32 %v833_v42, %v785_v39 }
 0x239   : > { %v835_v46 = vpop.f32.mrf.mxu0 }
 0x23a   : > { %v2481_v48 = vmax.f32 %v834_v44, 0.0  ;;  %936 = vrot.lane.b32.xlu0 %v2479_v43, %s2195_s19  ;;  %902 = vrot.lane.b32.xlu1 %v2479_v43, %s2194_s18 }
 0x23b   : > { %v836_v49 = vpop.f32.mrf.mxu0 }
 0x23c   : > { %v2060_v50 = vpack.i.bf16 %v2481_v48, %v2479_v43  ;;  %v2070_v51 = vpack.i.bf16 %v2192_v0, %v2481_v48 }
 0x23e   : > { %890 = vrot.lane.b32.xlu0 %v2479_v43, %s2830_s1  ;;  %2061 = vrot.lane.b32.xlu1 %v2060_v50, %s2193_s26 }
 0x242   : > { %2071 = vrot.lane.b32.xlu0 %v2070_v51, %s2195_s19  ;;  %2066 = vrot.lane.b32.xlu1 %v2070_v51, %s2194_s18 }
 0x246   : > { %872 = vrot.lane.b32.xlu0 %v2192_v0, %s2823_s21  ;;  %2076 = vrot.lane.b32.xlu1 %v2070_v51, %s2830_s1 }
 0x24a   : > { %2086 = vrot.lane.b32.xlu0 %v2060_v50, %s2823_s21  ;;  %2081 = vrot.lane.b32.xlu1 %v2060_v50, %s2197_s20 }
 0x24e   : > { %2096 = vrot.lane.b32.xlu0 %v2060_v50, %s2825_s23  ;;  %2091 = vrot.lane.b32.xlu1 %v2060_v50, %s2200_s22 }
 0x252   : > { %926 = vrot.lane.b32.xlu0 %v2192_v0, %s2825_s23  ;;  %848 = vrot.lane.b32.xlu1 %v2192_v0, %s2200_s22  ;;  %s2203_s23 = smov 120  }
 0x256   : > { %960 = vperm.xlu1 %2059, %v957_v52   ;;  %1021 = vrot.lane.b32.xlu0 %v1916_v54, %s2203_s23 }
 0x25a   : > { %1122 = vperm.xlu1 %2059, %v1119_v56   ;;  %1149 = vrot.lane.b32.xlu0 %v2192_v0, %s2197_s20 }
 0x25e   : > { %1207 = vrot.lane.b32.xlu1 %v2192_v0, %s2193_s26 }
 0x2ac   : > { %v937_v59 = vpop.permute.xlu0 %936  ;;  %v903_v60 = vpop.permute.xlu1 %902 }
 0x2b0   : > { %v891_v61 = vpop.permute.xlu0 %890  ;;  %v2062_v63 = vpop.permute.xlu1 %2061 }
 0x2b1   : > { %v2064_v1 = vunpack.i.h.bf16 %v2062_v63  ;;  %v2063_v2 = vunpack.i.l.bf16 %v2062_v63 }
 0x2b3   : > { %v921_v3 = vsel %vm2828_vm0, %v2064_v1, %v919_v58  ;;  %v920_v4 = vsel %vm2828_vm0, %v2063_v2, %v2064_v1  ;;  %vm2859_vm0 = vmmov %vm2858_vm7 }
 0x2b4   : > { %v2072_v6 = vpop.permute.xlu0 %2071  ;;  %v2067_v7 = vpop.permute.xlu1 %2066  ;;  %v925_v9 = vsel %vm2350_vm1, %v921_v3, 0.0  ;;  %v924_v10 = vsel %vm2354_vm2, %v920_v4, 0.0 }
 0x2b5   : > { %v2074_v11 = vunpack.i.h.bf16 %v2072_v6  ;;  %v2073_v12 = vunpack.i.l.bf16 %v2072_v6  ;;  %v2069_v13 = vunpack.i.h.bf16 %v2067_v7  ;;  %v2068_v14 = vunpack.i.l.bf16 %v2067_v7 }
 0x2b6   : > { %v955_v15 = vpack.c.bf16 %v925_v9, %v925_v9  ;;  %v954_v16 = vpack.c.bf16 %v924_v10, %v924_v10  ;;  %v956_v9 = vld [vmem:[%s2807_s5] sm:$0x3] }
 0x2b7   : > { %v943_v19 = vsel %vm702_vm4, %v2073_v12, %v2074_v11  ;;  %v909_v20 = vsel %vm2858_vm7, %v2068_v14, %v2069_v13  ;;  %v942_v21 = vsel %vm702_vm4, %v937_v59, %v2073_v12  ;;  %v908_v22 = vsel %vm2859_vm0, %v903_v60, %v2068_v14  ;;  %vm2861_vm7 = vmmov %vm2860_vm6 }
 0x2b8   : > { %v1892_v23 = vpack.c.bf16 %v943_v19, %v909_v20  ;;  %1890 = vmatprep.subr.msk.bf16.mxu1 %vm728_vm5, %v955_v15  ;;  %v873_v24 = vpop.permute.xlu0 %872  ;;  %v2077_v25 = vpop.permute.xlu1 %2076  ;;  %v967_v26 = vsel %vm728_vm5, %v954_v16, 0  ;;  %v1895_v31 = vpack.c.bf16 %v942_v21, %v908_v22  ;;  %vm2862_vm0 = vcmask 138240  }
 0x2b9   : > { %v2079_v28 = vunpack.i.h.bf16 %v2077_v25  ;;  %v2078_v29 = vunpack.i.l.bf16 %v2077_v25  ;;  %979 = vmatpush1.bf16.msra.mxu1 %v967_v26  ;;  %v2578_v22 = vpack.c.bf16 %v2463_v30, %v2463_v30 }
 0x2ba   : > { %1893 = vmatprep.subr.msk.bf16.mxu1 %vm2378_vm9, %v1892_v23 }
 0x2bb   : > { %v897_v32 = vsel %vm2860_vm6, %v2078_v29, %v2079_v28  ;;  %v896_v33 = vsel %vm2861_vm7, %v891_v61, %v2078_v29  ;;  %vm2863_vm6 = vmmov %vm2862_vm0  ;;  %vm2864_vm7 = vcmask 588800  }
 0x2bc   : > { %v1898_v34 = vpack.c.bf16 %v897_v32, %v2481_v48  ;;  %v2087_v38 = vpop.permute.xlu0 %2086  ;;  %v2082_v39 = vpop.permute.xlu1 %2081  ;;  %v1901_v46 = vpack.c.bf16 %v896_v33, %v2479_v43 }
 0x2bd   : > { %v2089_v40 = vunpack.i.h.bf16 %v2087_v38  ;;  %v2088_v41 = vunpack.i.l.bf16 %v2087_v38  ;;  %v2084_v42 = vunpack.i.h.bf16 %v2082_v39  ;;  %v2083_v44 = vunpack.i.l.bf16 %v2082_v39  ;;  %1896 = vmatpush1.bf16.msk.msra.mxu1 %vm2390_vm11, %v1895_v31 }
 0x2be   : > { %1899 = vmatprep.subr.msk.bf16.mxu1 %vm2398_vm12, %v1898_v34 }
 0x2bf   : > { %v879_v49 = vsel %vm633_vm15, %v2088_v41, %v2089_v40  ;;  %v867_v50 = vsel %vm620_vm13, %v2083_v44, %v2084_v42  ;;  %v878_v48 = vsel %vm633_vm15, %v873_v24, %v2088_v41  ;;  %v866_v51 = vsel %vm620_vm13, %v861_v57, %v2083_v44 }
 0x2c0   : > { %v1904_v52 = vpack.c.bf16 %v879_v49, %v867_v50  ;;  %v2097_v54 = vpop.permute.xlu0 %2096  ;;  %v2092_v56 = vpop.permute.xlu1 %2091  ;;  %v1907_v43 = vpack.c.bf16 %v878_v48, %v866_v51  ;;  %v2615_v48 = vld [vmem:[%s2813_s11] sm:$0xf] }
 0x2c1   : > { %v2099_v58 = vunpack.i.h.bf16 %v2097_v54  ;;  %v2098_v59 = vunpack.i.l.bf16 %v2097_v54  ;;  %v2094_v60 = vunpack.i.h.bf16 %v2092_v56  ;;  %v2093_v61 = vunpack.i.l.bf16 %v2092_v56  ;;  %1902 = vmatpush1.bf16.msk.msra.mxu1 %vm2412_vm14, %v1901_v46  ;;  %v1468_v54 = vld [vmem:[%s2814_s12] sm:$0xff] }
 0x2c2   : > { %1905 = vmatprep.subr.msk.bf16.mxu1 %vm2424_vm8, %v1904_v52  ;;  %v1947_v51 = vcombine.low %v2615_v48, %v2615_v48  ;;  %v1246_v52 = vld [vmem:[%s2812_s10] sm:$0xf] }
 0x2c3   : > { %v933_v63 = vsel %vm691_vm3, %v2098_v59, %v2099_v58  ;;  %v855_v1 = vsel %vm2862_vm0, %v2093_v61, %v2094_v60  ;;  %vm2865_vm0 = vcmask 64512  }
 0x2c4   : > { %v1910_v2 = vpack.c.bf16 %v933_v63, %v855_v1  ;;  %v927_v57 = vpop.permute.xlu0 %926  ;;  %v849_v3 = vpop.permute.xlu1 %848 }
 0x2c5   : > { %v932_v4 = vsel %vm691_vm3, %v927_v57, %v2098_v59  ;;  %v854_v6 = vsel %vm2863_vm6, %v849_v3, %v2093_v61  ;;  %1908 = vmatpush1.bf16.msk.msra.mxu1 %vm2434_vm10, %v1907_v43  ;;  %vm2832_vm6 = vcmask 1041408  }
 0x2c6   : > { %v1913_v7 = vpack.c.bf16 %v932_v4, %v854_v6  ;;  %1911 = vmatprep.subr.msk.bf16.mxu1 %vm2378_vm9, %v1910_v2 }
 0x2c8   : > { %v1022_v26 = vpop.permute.xlu0 %1021 }
 0x2c9   : > { %1914 = vmatpush1.bf16.msk.msra.mxu1 %vm2390_vm11, %v1913_v7 }
 0x2ca   : > { %1919 = vmatprep.subr.msk.bf16.mxu1 %vm728_vm5, %v2466_v36 }
 0x2cc   : > { %1915 = vmatmul.mubr.msk.bf16.vlgmr.msra.gmra.mxu1 %vm2864_vm7, %v956_v9  ;;  %vm2833_vm7 = vcmask 31744   ;;  %v1150_v56 = vpop.permute.xlu0 %1149 }
 0x2cd   : > { %1093 = vmatpush1.bf16.msra.mxu1 %v2471_v37  ;;  %1110 = vmatprep.mubr.bf16.mxu1 %v2199_v5 }
 0x2d1   : > { %v961_v10 = vpop.permute.xlu1 %960 }
 0x2d4   : > { %1920 = vmatmul.mubr.msk.bf16.vlgmr.msra.gmra.mxu1 %vm2865_vm0, %v2513_v53  ;;  %vm2868_vm0 = vcmask 908288  }
 0x2d5   : > { %1353 = vmatprep.mubr.bf16.mxu1 %v2199_v5  ;;  %v1123_v33 = vpop.permute.xlu1 %1122 }
 0x2d9   : > { %v1208_v58 = vpop.permute.xlu1 %1207 }
 0x38c   : > { %v1006_v11 = vpop.f32.mrf.mxu1 }
 0x38d   : > { %v1007_v12 = vadd.f32 %v1006_v11, %v961_v10 }
 0x38e   : > { %v1008_v13 = vpop.f32.mrf.mxu1 }
 0x38f   : > { %v1014_v14 = vmax.f32 %v1007_v12, 0.0  ;;  %v1305_v15 = vpack.c.bf16 %v1007_v12, %v1007_v12  ;;  %v1009_v16 = vadd.f32 %v1008_v13, %v961_v10 }
 0x390   : > { %v1010_v19 = vpop.f32.mrf.mxu1 }
 0x391   : > { %v1016_v36 = vpack.c.bf16 %v1014_v14, %v1014_v14  ;;  %v1015_v20 = vmax.f32 %v1009_v16, 0.0  ;;  %v1306_v21 = vpack.c.bf16 %v1009_v16, %v1009_v16  ;;  %v1316_v23 = vsel %vm2832_vm6, %v1305_v15, 0 }
 0x392   : > { %v1011_v37 = vpop.f32.mrf.mxu1 }
 0x393   : > { %v1017_v53 = vpack.c.bf16 %v1015_v20, %v1015_v20  ;;  %1948 = vmatprep.subr.msk.bf16.mxu1 %vm2832_vm6, %v1306_v21  ;;  %v1029_v25 = vsel %vm2832_vm6, %v1016_v36, 0 }
 0x394   : > { %1336 = vmatpush1.bf16.msra.mxu1 %v1316_v23  ;;  %v1112_v24 = vpop.f32.mrf.mxu1 }
 0x395   : > { %1917 = vmatprep.subr.msk.bf16.mxu0 %vm2832_vm6, %v1017_v53  ;;  %1950 = vmatprep.subr.msk.bf16.mxu1 %vm728_vm5, %v2578_v22  ;;  %vm2869_vm6 = vmmov %vm2868_vm0 }
 0x396   : > { %1049 = vmatpush1.bf16.msra.mxu0 %v1029_v25  ;;  %v1114_v28 = vpop.f32.mrf.mxu1 }
 0x398   : > { %v1116_v30 = vpop.f32.mrf.mxu1 }
 0x399   : > { %1918 = vmatmul.mubr.msk.bf16.vlgmr.msra.gmra.mxu0 %vm2833_vm7, %v1022_v26  ;;  %vm2870_vm7 = vcmask 924672  }
 0x39a   : > { %v1117_v29 = vpop.f32.mrf.mxu1  ;;  %1293 = vmatprep.mubr.bf16.mxu0 %v2199_v5 }
 0x459   : > { %v1068_v31 = vpop.f32.mrf.mxu0 }
 0x45a   : > { %v1113_v32 = vadd.f32 %v1112_v24, %v1068_v31 }
 0x45b   : > { %v1070_v34 = vpop.f32.mrf.mxu0 }
 0x45c   : > { %v1125_v38 = vadd.f32 %v1123_v33, %v1113_v32  ;;  %v1115_v39 = vadd.f32 %v1114_v28, %v1070_v34 }
 0x45d   : > { %v1072_v40 = vpop.f32.mrf.mxu0 }
 0x45e   : > { %v2588_v41 = vmax.f32 %v1125_v38, 0.0  ;;  %v1126_v42 = vadd.f32 %v1123_v33, %v1115_v39 }
 0x45f   : > { %v1073_v44 = vpop.f32.mrf.mxu0 }
 0x460   : > { %v2590_v46 = vmax.f32 %v1126_v42, 0.0  ;;  %1225 = vrot.lane.b32.xlu1 %v2588_v41, %s2195_s19  ;;  %1191 = vrot.lane.b32.xlu0 %v2588_v41, %s2194_s18 }
 0x462   : > { %v2100_v49 = vpack.i.bf16 %v2590_v46, %v2588_v41  ;;  %v2110_v50 = vpack.i.bf16 %v2192_v0, %v2590_v46 }
 0x464   : > { %1179 = vrot.lane.b32.xlu1 %v2588_v41, %s2830_s1  ;;  %2101 = vrot.lane.b32.xlu0 %v2100_v49, %s2193_s26 }
 0x468   : > { %2111 = vrot.lane.b32.xlu1 %v2110_v50, %s2195_s19  ;;  %2106 = vrot.lane.b32.xlu0 %v2110_v50, %s2194_s18 }
 0x46c   : > { %1161 = vrot.lane.b32.xlu1 %v2192_v0, %s2866_s27  ;;  %2116 = vrot.lane.b32.xlu0 %v2110_v50, %s2830_s1 }
 0x470   : > { %2126 = vrot.lane.b32.xlu1 %v2100_v49, %s2866_s27  ;;  %2121 = vrot.lane.b32.xlu0 %v2100_v49, %s2197_s20 }
 0x474   : > { %2136 = vrot.lane.b32.xlu1 %v2100_v49, %s2867_s28  ;;  %2131 = vrot.lane.b32.xlu0 %v2100_v49, %s2200_s22 }
 0x478   : > { %1215 = vrot.lane.b32.xlu1 %v2192_v0, %s2867_s28  ;;  %1137 = vrot.lane.b32.xlu0 %v2192_v0, %s2200_s22 }
 0x47c   : > { %1310 = vrot.lane.b32.xlu1 %v1947_v51, %s2203_s23  ;;  %1249 = vperm.xlu0 %2058, %v1246_v52  }
 0x480   : > { %1471 = vperm.xlu1 %2059, %v1468_v54   ;;  %1414 = vrot.lane.b32.xlu0 %v1947_v51, %s2204_s0 }
 0x484   : > { %1554 = vrot.lane.b32.xlu1 %v2192_v0, %s2193_s26  ;;  %1496 = vrot.lane.b32.xlu0 %v2192_v0, %s2197_s20 }
 0x4d2   : > { %v1226_v59 = vpop.permute.xlu1 %1225  ;;  %v1192_v60 = vpop.permute.xlu0 %1191 }
 0x4d6   : > { %v1180_v61 = vpop.permute.xlu1 %1179  ;;  %v2102_v43 = vpop.permute.xlu0 %2101 }
 0x4d7   : > { %v2104_v63 = vunpack.i.h.bf16 %v2102_v43  ;;  %v2103_v1 = vunpack.i.l.bf16 %v2102_v43 }
 0x4d9   : > { %v1210_v2 = vsel %vm2868_vm0, %v2104_v63, %v1208_v58  ;;  %v1209_v57 = vsel %vm2869_vm6, %v2103_v1, %v2104_v63  ;;  %vm2871_vm6 = vmmov %vm2870_vm7  ;;  %vm2872_vm0 = vcmask 1039360   ;;  %v1303_v1 = vpack.c.bf16 %v2460_v27, %v2460_v27  ;;  %v1245_v27 = vld [vmem:[%s2811_s9] sm:$0x3] }
 0x4da   : > { %v1214_v3 = vsel %vm2350_vm1, %v1210_v2, 0.0  ;;  %v2112_v4 = vpop.permute.xlu1 %2111  ;;  %v2107_v6 = vpop.permute.xlu0 %2106  ;;  %v1213_v7 = vsel %vm2354_vm2, %v1209_v57, 0.0 }
 0x4db   : > { %v2114_v9 = vunpack.i.h.bf16 %v2112_v4  ;;  %v2113_v10 = vunpack.i.l.bf16 %v2112_v4  ;;  %v2109_v11 = vunpack.i.h.bf16 %v2107_v6  ;;  %v2108_v12 = vunpack.i.l.bf16 %v2107_v6 }
 0x4dc   : > { %v1244_v13 = vpack.c.bf16 %v1214_v3, %v1214_v3  ;;  %v1243_v14 = vpack.c.bf16 %v1213_v7, %v1213_v7  ;;  %v1366_v6 = vsel %vm728_vm5, %v1303_v1, 0 }
 0x4dd   : > { %v1232_v15 = vsel %vm702_vm4, %v2113_v10, %v2114_v9  ;;  %v1198_v16 = vsel %vm2870_vm7, %v2108_v12, %v2109_v11  ;;  %v1231_v19 = vsel %vm702_vm4, %v1226_v59, %v2113_v10  ;;  %v1197_v36 = vsel %vm2871_vm6, %v1192_v60, %v2108_v12  ;;  %vm2873_vm7 = vmmov %vm2872_vm0 }
 0x4de   : > { %v1923_v20 = vpack.c.bf16 %v1232_v15, %v1198_v16  ;;  %1921 = vmatprep.subr.msk.bf16.mxu0 %vm728_vm5, %v1244_v13  ;;  %v1162_v21 = vpop.permute.xlu1 %1161  ;;  %v2117_v37 = vpop.permute.xlu0 %2116  ;;  %v1256_v53 = vsel %vm728_vm5, %v1243_v14, 0  ;;  %v1926_v25 = vpack.c.bf16 %v1231_v19, %v1197_v36  ;;  %vm2874_vm6 = vcmask 138240  }
 0x4df   : > { %v2119_v23 = vunpack.i.h.bf16 %v2117_v37  ;;  %v2118_v24 = vunpack.i.l.bf16 %v2117_v37  ;;  %1268 = vmatpush1.bf16.msra.mxu0 %v1256_v53 }
 0x4e0   : > { %1924 = vmatprep.subr.msk.bf16.mxu0 %vm2378_vm9, %v1923_v20 }
 0x4e1   : > { %v1186_v26 = vsel %vm2872_vm0, %v2118_v24, %v2119_v23  ;;  %v1185_v28 = vsel %vm2873_vm7, %v1180_v61, %v2118_v24  ;;  %vm2875_vm0 = vmmov %vm2874_vm6  ;;  %vm2876_vm7 = vcmask 31744  }
 0x4e2   : > { %v1929_v30 = vpack.c.bf16 %v1186_v26, %v2590_v46  ;;  %v2127_v29 = vpop.permute.xlu1 %2126  ;;  %v2122_v31 = vpop.permute.xlu0 %2121  ;;  %v1932_v39 = vpack.c.bf16 %v1185_v28, %v2588_v41 }
 0x4e3   : > { %v2129_v32 = vunpack.i.h.bf16 %v2127_v29  ;;  %v2128_v33 = vunpack.i.l.bf16 %v2127_v29  ;;  %v2124_v34 = vunpack.i.h.bf16 %v2122_v31  ;;  %v2123_v38 = vunpack.i.l.bf16 %v2122_v31  ;;  %1927 = vmatpush1.bf16.msk.msra.mxu0 %vm2390_vm11, %v1926_v25 }
 0x4e4   : > { %1930 = vmatprep.subr.msk.bf16.mxu0 %vm2398_vm12, %v1929_v30  ;;  %v1703_v30 = vld [vmem:[%s2817_s15] sm:$0xf] }
 0x4e5   : > { %v1168_v40 = vsel %vm633_vm15, %v2128_v33, %v2129_v32  ;;  %v1156_v42 = vsel %vm620_vm13, %v2123_v38, %v2124_v34  ;;  %v1167_v44 = vsel %vm633_vm15, %v1162_v21, %v2128_v33  ;;  %v1155_v46 = vsel %vm620_vm13, %v1150_v56, %v2123_v38 }
 0x4e6   : > { %v1935_v49 = vpack.c.bf16 %v1168_v40, %v1156_v42  ;;  %v2137_v50 = vpop.permute.xlu1 %2136  ;;  %v2132_v51 = vpop.permute.xlu0 %2131  ;;  %v1938_v41 = vpack.c.bf16 %v1167_v44, %v1155_v46  ;;  %v1597_v46 = vld [vmem:[%s2816_s14 + $0x8] sm:$0xff] }
 0x4e7   : > { %v2139_v52 = vunpack.i.h.bf16 %v2137_v50  ;;  %v2138_v54 = vunpack.i.l.bf16 %v2137_v50  ;;  %v2134_v58 = vunpack.i.h.bf16 %v2132_v51  ;;  %v2133_v59 = vunpack.i.l.bf16 %v2132_v51  ;;  %1933 = vmatpush1.bf16.msk.msra.mxu0 %vm2412_vm14, %v1932_v39  ;;  %v1599_v51 = vld [vmem:[%s2816_s14 + $0x18] sm:$0xff] }
 0x4e8   : > { %1936 = vmatprep.subr.msk.bf16.mxu0 %vm2424_vm8, %v1935_v49  ;;  %v1596_v49 = vld [vmem:[%s2816_s14] sm:$0xff] }
 0x4e9   : > { %v1222_v60 = vsel %vm691_vm3, %v2138_v54, %v2139_v52  ;;  %v1144_v61 = vsel %vm2874_vm6, %v2133_v59, %v2134_v58  ;;  %vm2877_vm6 = vcmask 588800  }
 0x4ea   : > { %v1941_v43 = vpack.c.bf16 %v1222_v60, %v1144_v61  ;;  %v1216_v56 = vpop.permute.xlu1 %1215  ;;  %v1138_v63 = vpop.permute.xlu0 %1137 }
 0x4eb   : > { %v1221_v2 = vsel %vm691_vm3, %v1216_v56, %v2138_v54  ;;  %v1143_v57 = vsel %vm2875_vm0, %v1138_v63, %v2133_v59  ;;  %1939 = vmatpush1.bf16.msk.msra.mxu0 %vm2434_vm10, %v1938_v41  ;;  %vm2878_vm0 = vcmask 64512   ;;  %v1704_v54 = vld [vmem:[%s2818_s16] sm:$0xff] }
 0x4ec   : > { %v1944_v3 = vpack.c.bf16 %v1221_v2, %v1143_v57  ;;  %1942 = vmatprep.subr.msk.bf16.mxu0 %vm2378_vm9, %v1941_v43 }
 0x4ee   : > { %v1311_v4 = vpop.permute.xlu1 %1310 }
 0x4ef   : > { %1945 = vmatpush1.bf16.msk.msra.mxu0 %vm2390_vm11, %v1944_v3  ;;  %1949 = vmatmul.mubr.msk.bf16.vlgmr.msra.gmra.mxu1 %vm2876_vm7, %v1311_v4  ;;  %vm2879_vm7 = vcmask 1041408  }
 0x4f0   : > { %1386 = vmatpush1.bf16.msra.mxu1 %v1366_v6  ;;  %1403 = vmatprep.mubr.bf16.mxu1 %v2199_v5 }
 0x4f2   : > { %1946 = vmatmul.mubr.msk.bf16.vlgmr.msra.gmra.mxu0 %vm2877_vm6, %v1245_v27  ;;  %vm2880_vm6 = vmmov %vm2879_vm7 }
 0x4f3   : > { %1457 = vmatprep.mubr.bf16.mxu0 %v2199_v5 }
 0x4f7   : > { %1951 = vmatmul.mubr.msk.bf16.vlgmr.msra.gmra.mxu1 %vm2878_vm0, %v2615_v48  ;;  %v1250_v10 = vpop.permute.xlu0 %1249  ;;  %vm2881_vm0 = vcmask 31744  }
 0x4f8   : > { %1674 = vmatprep.mubr.bf16.mxu1 %v2199_v5 }
 0x4fb   : > { %v1415_v24 = vpop.permute.xlu0 %1414  ;;  %v1472_v32 = vpop.permute.xlu1 %1471 }
 0x4ff   : > { %v1555_v41 = vpop.permute.xlu1 %1554  ;;  %v1497_v60 = vpop.permute.xlu0 %1496 }
 0x5af   : > { %v1355_v7 = vpop.f32.mrf.mxu1 }
 0x5b1   : > { %v1357_v9 = vpop.f32.mrf.mxu1 }
 0x5b2   : > { %v1295_v11 = vpop.f32.mrf.mxu0 }
 0x5b3   : > { %v1296_v12 = vadd.f32 %v1295_v11, %v1250_v10  ;;  %v1359_v13 = vpop.f32.mrf.mxu1 }
 0x5b4   : > { %v1297_v14 = vpop.f32.mrf.mxu0 }
 0x5b5   : > { %v1412_v15 = vpack.c.bf16 %v1296_v12, %v1296_v12  ;;  %v1298_v16 = vadd.f32 %v1297_v14, %v1250_v10  ;;  %v1360_v19 = vpop.f32.mrf.mxu1 }
 0x5b6   : > { %v1299_v36 = vpop.f32.mrf.mxu0 }
 0x5b7   : > { %v1413_v20 = vpack.c.bf16 %v1298_v16, %v1298_v16  ;;  %v1405_v21 = vpop.f32.mrf.mxu1  ;;  %v1420_v23 = vsel %vm2879_vm7, %v1412_v15, 0  ;;  %vm2882_vm7 = vcmask 64512  }
 0x5b8   : > { %v1300_v37 = vpop.f32.mrf.mxu0  ;;  %v1406_v53 = vadd.f32 %v1405_v21, %v1355_v7 }
 0x5b9   : > { %1952 = vmatprep.subr.msk.bf16.mxu0 %vm2880_vm6, %v1413_v20  ;;  %v1407_v48 = vpop.f32.mrf.mxu1  ;;  %vm2884_vm6 = vcmask 908288  }
 0x5ba   : > { %1440 = vmatpush1.bf16.msra.mxu0 %v1420_v23  ;;  %v1408_v25 = vadd.f32 %v1407_v48, %v1357_v9 }
 0x5bb   : > { %1983 = vmatprep.subr.msk.bf16.mxu0 %vm728_vm5, %v2578_v22  ;;  %v1409_v26 = vpop.f32.mrf.mxu1 }
 0x5bd   : > { %1953 = vmatmul.mubr.msk.bf16.vlgmr.msra.gmra.mxu0 %vm2881_vm0, %v1415_v24  ;;  %v1410_v28 = vpop.f32.mrf.mxu1  ;;  %vm2885_vm0 = vmmov %vm2884_vm6 }
 0x5be   : > { %1728 = vmatpush1.bf16.msra.mxu0 %v1366_v6  ;;  %1745 = vmatprep.mubr.bf16.mxu0 %v2199_v5 }
 0x5c5   : > { %1984 = vmatmul.mubr.msk.bf16.vlgmr.msra.gmra.mxu0 %vm2882_vm7, %v1703_v30  ;;  %vm2886_vm7 = vcmask 924672  }
 0x67d   : > { %v1459_v29 = vpop.f32.mrf.mxu0 }
 0x67e   : > { %v1466_v31 = vadd.f32 %v1459_v29, %v1406_v53 }
 0x67f   : > { %v1461_v33 = vpop.f32.mrf.mxu0 }
 0x680   : > { %v2697_v34 = vadd.f32 %v1472_v32, %v1466_v31  ;;  %v1467_v22 = vadd.f32 %v1461_v33, %v1408_v25 }
 0x681   : > { %v1463_v38 = vpop.f32.mrf.mxu0 }
 0x682   : > { %v2699_v39 = vadd.f32 %v1472_v32, %v1467_v22  ;;  %1572 = vrot.lane.b32.xlu1 %v2697_v34, %s2195_s19  ;;  %1538 = vrot.lane.b32.xlu0 %v2697_v34, %s2194_s18 }
 0x683   : > { %v1464_v40 = vpop.f32.mrf.mxu0 }
 0x684   : > { %v2140_v42 = vpack.i.bf16 %v2699_v39, %v2697_v34  ;;  %v2150_v44 = vpack.i.bf16 %v2192_v0, %v2699_v39 }
 0x685   : > { %v2731_v50 = vpop.f32.mrf.mxu0 }
 0x686   : > { %1526 = vrot.lane.b32.xlu1 %v2697_v34, %s2883_s29  ;;  %2141 = vrot.lane.b32.xlu0 %v2140_v42, %s2193_s26 }
 0x687   : > { %v2739_v52 = vpop.f32.mrf.mxu0 }
 0x689   : > { %v1751_v58 = vpop.f32.mrf.mxu0 }
 0x68a   : > { %2151 = vrot.lane.b32.xlu1 %v2150_v44, %s2195_s19  ;;  %2146 = vrot.lane.b32.xlu0 %v2150_v44, %s2194_s18  ;;  %s1992_s18 = sshll.u32 %s2895_s25, 5 }
 0x68b   : > { %v1752_v59 = vpop.f32.mrf.mxu0 }
 0x68e   : > { %1508 = vrot.lane.b32.xlu1 %v2192_v0, %s2866_s27  ;;  %2156 = vrot.lane.b32.xlu0 %v2150_v44, %s2883_s29 }
 0x692   : > { %2166 = vrot.lane.b32.xlu1 %v2140_v42, %s2866_s27  ;;  %2161 = vrot.lane.b32.xlu0 %v2140_v42, %s2197_s20  ;;  %s548_s20 = scalar_lea.vmem %s2819_s17, %s1992_s18 }
 0x696   : > { %2176 = vrot.lane.b32.xlu1 %v2140_v42, %s2867_s28  ;;  %2171 = vrot.lane.b32.xlu0 %v2140_v42, %s2200_s22 }
 0x69a   : > { %1562 = vrot.lane.b32.xlu1 %v2192_v0, %s2867_s28  ;;  %1484 = vrot.lane.b32.xlu0 %v2192_v0, %s2200_s22  ;;  %v1598_v0 = vld [vmem:[%s2816_s14 + $0x10] sm:$0xff] }
 0x69e   : > { %1607 = vperm.xlu1 %2059, %v1597_v46   ;;  %1602 = vperm.xlu0 %2058, %v1596_v49  }
 0x6a2   : > { %1617 = vperm.xlu1 %2059, %v1599_v51   ;;  %1612 = vperm.xlu0 %2058, %v1598_v0  }
 0x6a6   : > { %1707 = vperm.xlu0 %2058, %v1704_v54  }
 0x6f4   : > { %v1573_v61 = vpop.permute.xlu1 %1572  ;;  %v1539_v43 = vpop.permute.xlu0 %1538 }
 0x6f8   : > { %v1527_v56 = vpop.permute.xlu1 %1526  ;;  %v2142_v63 = vpop.permute.xlu0 %2141 }
 0x6f9   : > { %v2144_v1 = vunpack.i.h.bf16 %v2142_v63  ;;  %v2143_v2 = vunpack.i.l.bf16 %v2142_v63 }
 0x6fb   : > { %v1557_v57 = vsel %vm2884_vm6, %v2144_v1, %v1555_v41  ;;  %v1556_v3 = vsel %vm2885_vm0, %v2143_v2, %v2144_v1  ;;  %vm2887_vm6 = vmmov %vm2886_vm7 }
 0x6fc   : > { %v1561_v4 = vsel %vm2350_vm1, %v1557_v57, 0.0  ;;  %v2152_v6 = vpop.permute.xlu1 %2151  ;;  %v2147_v27 = vpop.permute.xlu0 %2146  ;;  %v1560_v7 = vsel %vm2354_vm2, %v1556_v3, 0.0  ;;  %vm2888_vm1 = vcmask 1039360  }
 0x6fd   : > { %v2154_v9 = vunpack.i.h.bf16 %v2152_v6  ;;  %v2153_v10 = vunpack.i.l.bf16 %v2152_v6  ;;  %v2149_v11 = vunpack.i.h.bf16 %v2147_v27  ;;  %v2148_v12 = vunpack.i.l.bf16 %v2147_v27  ;;  %vm2889_vm2 = vmmov %vm2888_vm1 }
 0x6fe   : > { %v1591_v13 = vpack.c.bf16 %v1561_v4, %v1561_v4  ;;  %v1590_v14 = vpack.c.bf16 %v1560_v7, %v1560_v7 }
 0x6ff   : > { %v1579_v15 = vsel %vm702_vm4, %v2153_v10, %v2154_v9  ;;  %v1545_v16 = vsel %vm2886_vm7, %v2148_v12, %v2149_v11  ;;  %v1578_v19 = vsel %vm702_vm4, %v1573_v61, %v2153_v10  ;;  %v1544_v17 = vsel %vm2887_vm6, %v1539_v43, %v2148_v12 }
 0x700   : > { %v1958_v36 = vpack.c.bf16 %v1579_v15, %v1545_v16  ;;  %1956 = vmatprep.subr.msk.bf16.mxu1 %vm728_vm5, %v1591_v13  ;;  %v1509_v20 = vpop.permute.xlu1 %1508  ;;  %v2157_v18 = vpop.permute.xlu0 %2156  ;;  %v1637_v21 = vsel %vm728_vm5, %v1590_v14, 0  ;;  %v1961_v23 = vpack.c.bf16 %v1578_v19, %v1544_v17  ;;  %vm2890_vm4 = vcmask 138240  }
 0x701   : > { %v2159_v37 = vunpack.i.h.bf16 %v2157_v18  ;;  %v2158_v53 = vunpack.i.l.bf16 %v2157_v18  ;;  %1649 = vmatpush1.bf16.msra.mxu1 %v1637_v21  ;;  %vm2891_vm5 = vmmov %vm2890_vm4 }
 0x702   : > { %1959 = vmatprep.subr.msk.bf16.mxu1 %vm2378_vm9, %v1958_v36 }
 0x703   : > { %v1533_v48 = vsel %vm2888_vm1, %v2158_v53, %v2159_v37  ;;  %v1532_v24 = vsel %vm2889_vm2, %v1527_v56, %v2158_v53 }
 0x704   : > { %v1964_v25 = vpack.c.bf16 %v1533_v48, %v2699_v39  ;;  %v2167_v26 = vpop.permute.xlu1 %2166  ;;  %v2162_v28 = vpop.permute.xlu0 %2161  ;;  %v1967_v33 = vpack.c.bf16 %v1532_v24, %v2697_v34 }
 0x705   : > { %v2169_v30 = vunpack.i.h.bf16 %v2167_v26  ;;  %v2168_v29 = vunpack.i.l.bf16 %v2167_v26  ;;  %v2164_v31 = vunpack.i.h.bf16 %v2162_v28  ;;  %v2163_v32 = vunpack.i.l.bf16 %v2162_v28  ;;  %1962 = vmatpush1.bf16.msk.msra.mxu1 %vm2390_vm11, %v1961_v23 }
 0x706   : > { %1965 = vmatprep.subr.msk.bf16.mxu1 %vm2398_vm12, %v1964_v25  ;;  %vm2892_vm12 = vcmask 588800  }
 0x707   : > { %v1515_v22 = vsel %vm633_vm15, %v2168_v29, %v2169_v30  ;;  %v1503_v38 = vsel %vm620_vm13, %v2163_v32, %v2164_v31  ;;  %v1514_v39 = vsel %vm633_vm15, %v1509_v20, %v2168_v29  ;;  %v1502_v40 = vsel %vm620_vm13, %v1497_v60, %v2163_v32 }
 0x708   : > { %v1970_v42 = vpack.c.bf16 %v1515_v22, %v1503_v38  ;;  %v2177_v44 = vpop.permute.xlu1 %2176  ;;  %v2172_v46 = vpop.permute.xlu0 %2171  ;;  %v1973_v47 = vpack.c.bf16 %v1514_v39, %v1502_v40 }
 0x709   : > { %v2179_v49 = vunpack.i.h.bf16 %v2177_v44  ;;  %v2178_v51 = vunpack.i.l.bf16 %v2177_v44  ;;  %v2174_v0 = vunpack.i.h.bf16 %v2172_v46  ;;  %v2173_v54 = vunpack.i.l.bf16 %v2172_v46  ;;  %1968 = vmatpush1.bf16.msk.msra.mxu1 %vm2412_vm14, %v1967_v33 }
 0x70a   : > { %1971 = vmatprep.subr.msk.bf16.mxu1 %vm2424_vm8, %v1970_v42 }
 0x70b   : > { %v1569_v34 = vsel %vm691_vm3, %v2178_v51, %v2179_v49  ;;  %v1491_v58 = vsel %vm2890_vm4, %v2173_v54, %v2174_v0 }
 0x70c   : > { %v1976_v59 = vpack.c.bf16 %v1569_v34, %v1491_v58  ;;  %v1563_v41 = vpop.permute.xlu1 %1562  ;;  %v1485_v60 = vpop.permute.xlu0 %1484 }
 0x70d   : > { %v1568_v61 = vsel %vm691_vm3, %v1563_v41, %v2178_v51  ;;  %v1490_v43 = vsel %vm2891_vm5, %v1485_v60, %v2173_v54  ;;  %1974 = vmatpush1.bf16.msk.msra.mxu1 %vm2434_vm10, %v1973_v47  ;;  %vm2893_vm3 = vmmov %vm2892_vm12 }
 0x70e   : > { %v1979_v55 = vpack.c.bf16 %v1568_v61, %v1490_v43  ;;  %1977 = vmatprep.subr.msk.bf16.mxu1 %vm2378_vm9, %v1976_v59 }
 0x711   : > { %1980 = vmatpush1.bf16.msk.msra.mxu1 %vm2390_vm11, %v1979_v55 }
 0x714   : > { %1981 = vmatmul.mubr.msk.bf16.vlgmr.msra.gmra.mxu1 %vm2892_vm12, %v2182_v62 }
 0x715   : > { %1684 = vmatprep.mubr.bf16.mxu1 %v2199_v5 }
 0x719   : > { %v1603_v35 = vpop.permute.xlu0 %1602  ;;  %v1608_v4 = vpop.permute.xlu1 %1607 }
 0x71c   : > { %1982 = vmatmul.mubr.msk.bf16.gmra.mxu1 %vm2893_vm3, %v2183_v8 }
 0x71d   : > { %v1613_v56 = vpop.permute.xlu0 %1612  ;;  %v1618_v21 = vpop.permute.xlu1 %1617 }
 0x721   : > { %v1708_v2 = vpop.permute.xlu0 %1707 }
 0x722   : > { %v1748_v27 = vadd.f32 %v2731_v50, %v1708_v2  ;;  %v1750_v5 = vadd.f32 %v2739_v52, %v1708_v2 }
 0x7d4   : > { %v1676_v63 = vpop.f32.mrf.mxu1 }
 0x7d5   : > { %v1677_v1 = vadd.f32 %v1676_v63, %v1603_v35 }
 0x7d6   : > { %v1678_v57 = vpop.f32.mrf.mxu1 }
 0x7d7   : > { %v1695_v3 = vmax.f32 %v1677_v1, 0.0  ;;  %v1679_v45 = vadd.f32 %v1678_v57, %v1603_v35 }
 0x7d8   : > { %v1680_v6 = vpop.f32.mrf.mxu1 }
 0x7d9   : > { %v1696_v7 = vmax.f32 %v1679_v45, 0.0  ;;  %v1681_v9 = vadd.f32 %v1680_v6, %v1608_v4  ;;  %v1754_v11 = vadd.f32 %v1748_v27, %v1695_v3 }
 0x7da   : > { %v1682_v10 = vpop.f32.mrf.mxu1 }
 0x7db   : > { %v1755_v12 = vadd.f32 %v1750_v5, %v1696_v7  ;;  %v1697_v13 = vmax.f32 %v1681_v9, 0.0  ;;  %v1683_v14 = vadd.f32 %v1682_v10, %v1608_v4 }
 0x7dc   : > { %v1686_v15 = vpop.f32.mrf.mxu1 }
 0x7dd   : > { %v1993_v16 = vpack.c.bf16 %v1755_v12, %v1754_v11  ;;  %v1698_v19 = vmax.f32 %v1683_v14, 0.0  ;;  %v1687_v17 = vadd.f32 %v1686_v15, %v1613_v56  ;;  %v1756_v50 = vadd.f32 %v1748_v27, %v1697_v13 }
 0x7de   : > { %v1688_v36 = vpop.f32.mrf.mxu1 }
 0x7df   : > { %1794 = vst [vmem:[%s548_s20] sm:$0xff] %v1993_v16  ;;  %v1757_v52 = vadd.f32 %v1750_v5, %v1698_v19  ;;  %v1699_v20 = vmax.f32 %v1687_v17, 0.0  ;;  %v1689_v18 = vadd.f32 %v1688_v36, %v1613_v56 }
 0x7e0   : > { %v1690_v37 = vpop.f32.mrf.mxu1 }
 0x7e1   : > { %v1994_v53 = vpack.c.bf16 %v1757_v52, %v1756_v50  ;;  %v1700_v23 = vmax.f32 %v1689_v18, 0.0  ;;  %v1691_v48 = vadd.f32 %v1690_v37, %v1618_v21  ;;  %v1758_v25 = vadd.f32 %v1748_v27, %v1699_v20 }
 0x7e2   : > { %v1692_v24 = vpop.f32.mrf.mxu1 }
 0x7e3   : > { %1795 = vst [vmem:[%s548_s20 + $0x8] sm:$0xff] %v1994_v53  ;;  %v1759_v26 = vadd.f32 %v1750_v5, %v1700_v23  ;;  %v1701_v28 = vmax.f32 %v1691_v48, 0.0  ;;  %v1693_v30 = vadd.f32 %v1692_v24, %v1618_v21 }
 0x7e5   : > { %v1995_v29 = vpack.c.bf16 %v1759_v26, %v1758_v25  ;;  %v1702_v31 = vmax.f32 %v1693_v30, 0.0  ;;  %v1760_v32 = vadd.f32 %v1748_v27, %v1701_v28 }
 0x7e7   : > { %1796 = vst [vmem:[%s548_s20 + $0x10] sm:$0xff] %v1995_v29  ;;  %v1761_v33 = vadd.f32 %v1750_v5, %v1702_v31 }
 0x7e9   : > { %v1996_v22 = vpack.c.bf16 %v1761_v33, %v1760_v32 }
 0x7eb   : > { %1797 = vst [vmem:[%s548_s20 + $0x18] sm:$0xff] %v1996_v22 }
 0x7ec PF: > { %s27_s24 = sadd.s32 1, %s2190_s24  }
 0x7ed   : > { %p24_p4 = scmp.ge.s32.totalorder %s27_s24, 4  }
 0x7ef   :  { %26 = sbr.rel (!%p24_p4) target bundleno = 3 (0x3), region = 118 }

// kernel: densenet_generator_forward.3
= control target key start
LH: loop header
LB: loop body
LE: loop exit
PB: predicated region body
PF: predicated region fallthrough
CT: control target
= control target key end

     0   :  { %s2292_s18 = smov 0   ;;  %s3414_s0 = inlined_call_operand.vmem [shape: bf16[2,8,1024], index: 0, kind: input, shape index: {}]   ;;  %s3415_s1 = inlined_call_operand.vmem [shape: bf16[8,72], index: 1, kind: input, shape index: {}]   ;;  %s3416_s2 = inlined_call_operand.vmem [shape: f32[8,1], index: 2, kind: input, shape index: {}]   ;;  %s3417_s3 = inlined_call_operand.vmem [shape: bf16[3,72], index: 3, kind: input, shape index: {}]   ;;  %s3418_s4 = inlined_call_operand.vmem [shape: f32[3,1], index: 4, kind: input, shape index: {}]   ;;  %s3419_s5 = inlined_call_operand.vmem [shape: f32[2,3,1024], index: 5, kind: output, shape index: {}]  }
   0x1 LB: > { %s1682_s19 = sadd.s32 4294967295, %s2249_s18   ;;  %p1686_p0 = scmp.ge.s32.totalorder %s2249_s18, 1  ;;  %s2249_s18 = sphi %s2292_s18, %s15_s18  }
   0x2   : > { %p187_p1 = scmp.lt.s32.totalorder %s2249_s18, 3 }
   0x4   : > { %p188_p2 = pnand %p1686_p0, %p187_p1 }
   0x6   : > { %191 = sbr.rel (%p188_p2) target bundleno = 802 (0x322), region = 40 }
   0xb   : > { %p215_p3 = scmp.lt.s32.totalorder %s1682_s19, 1  ;;  %s2251_s24 = smov 97   ;;  %v3477_v16 = vmov 0   ;;  %v3436_v19 = vmov 0.0   ;;  %v806_v22 = vld [vmem:[%s3416_s2] sm:$0xff]  ;;  %v228_v23 = vlaneseq  ;;  %vm3431_vm0 = vcmask 777216  }
   0xc   : > { %s2252_s25 = smov 95   ;;  %s2253_s26 = smov 96   ;;  %873 = vmatprep.mubr.bf16.mxu0 %v3477_v16  ;;  %914 = vmatprep.mubr.bf16.mxu1 %v3477_v16  ;;  %v3506_v32 = vmov 0  ;;  %v3508_v36 = vmov 0  ;;  %vm3447_vm3 = vcmask 785408   ;;  %vm3423_vm4 = vcmask 793600  }
   0xd   : > { %s3779_s19 = smov (!%p215_p3, %s1682_s19), 1  ;;  %s2254_s27 = smov 127   ;;  %2082 = vset.pattern.permute.xlu0 %v3477_v16  ;;  %v2404_v24 = vand.u32 127, %v228_v23  ;;  %v3510_v48 = vmov 0  ;;  %vm3424_vm6 = vcmask 1043456   ;;  %vm3420_vm7 = vcmask 1039360  }
   0xe   : > { %s1901_s20 = sshll.u32 %s3779_s19, 5  ;;  %s2255_s28 = smov 1   ;;  %vm3421_vm8 = vmmov 1   ;;  %v3512_v54 = vmov 0  ;;  %v3514_v55 = vmov 0  ;;  %vm3428_vm13 = vcmask 7168  }
   0xf   : > { %s2308_s23 = scalar_lea.vmem %s3414_s0, %s1901_s20  ;;  %s2256_s29 = smov 31   ;;  %v230_v25 = vadd.s32 128, %v2404_v24  ;;  %v241_v26 = vand.u32 31, %v2404_v24  ;;  %vm3427_vm14 = vcmask 252928  }
  0x10   : > { %v349_v0 = vld [vmem:[%s2308_s23] sm:$0xff]  ;;  %v350_v1 = vld [vmem:[%s2308_s23 + $0x8] sm:$0xff]  ;;  %v351_v10 = vld [vmem:[%s2308_s23 + $0x10] sm:$0xff]  ;;  %s2257_s30 = smov 32   ;;  %s2258_s6 = smov 33  }
  0x11   : > { %v2312_v2 = vunpack.c.h.bf16 %v349_v0  ;;  %v2314_v3 = vunpack.c.l.bf16 %v350_v1  ;;  %v2316_v4 = vunpack.c.h.bf16 %v350_v1  ;;  %v2318_v5 = vunpack.c.l.bf16 %v349_v0  ;;  %v352_v14 = vld [vmem:[%s2308_s23 + $0x18] sm:$0xff]  ;;  %s224_s17 = scalar_lea.vmem %s3419_s5, %s1901_s20 }
  0x12   : > { %v2343_v11 = vunpack.c.l.bf16 %v351_v10  ;;  %v2345_v12 = vunpack.c.h.bf16 %v351_v10  ;;  %v2355_v15 = vunpack.c.l.bf16 %v352_v14  ;;  %v2381_v18 = vunpack.c.h.bf16 %v352_v14 }
  0x13   : > { %v1932_v6 = vpack.i.bf16 %v2314_v3, %v2312_v2  ;;  %v1922_v7 = vpack.i.bf16 %v2312_v2, %v2318_v5  ;;  %v1927_v8 = vpack.i.bf16 %v2316_v4, %v2314_v3  ;;  %v1947_v9 = vpack.i.bf16 %v2316_v4, %v2318_v5 }
  0x14   : > { %v1997_v13 = vpack.i.bf16 %v2345_v12, %v2343_v11  ;;  %v2027_v17 = vpack.i.bf16 %v2343_v11, %v2316_v4  ;;  %v2047_v20 = vpack.i.bf16 %v3436_v19, %v2381_v18  ;;  %v2067_v21 = vpack.i.bf16 %v2381_v18, %v2355_v15 }
  0x15   : > { %1933 = vrot.lane.b32.xlu1 %v1932_v6, %s2251_s24  ;;  %1923 = vrot.lane.b32.xlu0 %v1922_v7, %s2252_s25  ;;  %v248_v29 = vand.u32 31, %v230_v25  ;;  %vm2410_vm1 = vcmp.ne.s32.totalorder %v241_v26, 31  ;;  %vm2458_vm10 = vcmp.ne.s32.totalorder %v241_v26, 0  ;;  %v3516_v1 = vmov 0 }
  0x16   : > { %v3507_v32 = vsel %vm2410_vm1, 4294967295, %v3506_v32  ;;  %v3515_v55 = vsel %vm2458_vm10, 4294967295, %v3514_v55  ;;  %vm2478_vm11 = vmpackc.low %vm3421_vm8, %vm2458_vm10 }
  0x17   : > { %vm2419_vm2 = vcmp.ne.s32.totalorder %v248_v29, 31  ;;  %vm2439_vm5 = vcmp.ne.s32.totalorder %v248_v29, 0  ;;  %v3517_v1 = vsel %vm2478_vm11, 4294967295, %v3516_v1  ;;  %vm2512_vm15 = vmpackc.low %vm2410_vm1, %vm3421_vm8 }
  0x18   : > { %v3509_v36 = vsel %vm2419_vm2, 4294967295, %v3508_v36  ;;  %v3511_v48 = vsel %vm2439_vm5, 4294967295, %v3510_v48  ;;  %vm2454_vm9 = vmpackc.low %vm3421_vm8, %vm2439_vm5 }
  0x19   : > { %1938 = vrot.lane.b32.xlu1 %v1932_v6, %s2253_s26  ;;  %1928 = vrot.lane.b32.xlu0 %v1927_v8, %s2252_s25  ;;  %v3513_v54 = vsel %vm2454_vm9, 4294967295, %v3512_v54  ;;  %vm2488_vm12 = vmpackc.low %vm2419_vm2, %vm3421_vm8  ;;  %v3518_v8 = vmov 0  ;;  %vm3429_vm8 = vcmask 261120  }
  0x1a   : > { %v3519_v8 = vsel %vm2488_vm12, 4294967295, %v3518_v8 }
  0x1d   : > { %1948 = vrot.lane.b32.xlu1 %v1947_v9, %s2253_s26  ;;  %1943 = vrot.lane.b32.xlu0 %v1947_v9, %s2251_s24 }
  0x21   : > { %1958 = vrot.lane.b32.xlu1 %v1947_v9, %s2254_s27  ;;  %1953 = vrot.lane.b32.xlu0 %v1932_v6, %s2254_s27  ;;  %v2493_v9 = vadd.s32 256, %v2404_v24 }
  0x23   : > { %v255_v29 = vand.u32 31, %v2493_v9 }
  0x25   : > { %1968 = vrot.lane.b32.xlu1 %v1922_v7, %s2255_s28  ;;  %1963 = vrot.lane.b32.xlu0 %v1922_v7, %s2256_s29 }
  0x29   : > { %1978 = vrot.lane.b32.xlu1 %v2314_v3, %s2255_s28  ;;  %1973 = vrot.lane.b32.xlu0 %v2314_v3, %s2256_s29 }
  0x2d   : > { %1988 = vrot.lane.b32.xlu1 %v1922_v7, %s2257_s30  ;;  %1983 = vrot.lane.b32.xlu0 %v1922_v7, %s2258_s6 }
  0x31   : > { %1998 = vrot.lane.b32.xlu1 %v1997_v13, %s2252_s25  ;;  %1993 = vrot.lane.b32.xlu0 %v2314_v3, %s2258_s6 }
  0x35   : > { %664 = vrot.lane.b32.xlu1 %v2355_v15, %s2252_s25  ;;  %2003 = vrot.lane.b32.xlu0 %v2314_v3, %s2257_s30 }
  0x39   : > { %2013 = vrot.lane.b32.xlu1 %v1997_v13, %s2253_s26  ;;  %2008 = vrot.lane.b32.xlu0 %v1997_v13, %s2251_s24 }
  0x3d   : > { %742 = vrot.lane.b32.xlu1 %v2355_v15, %s2253_s26  ;;  %621 = vrot.lane.b32.xlu0 %v2355_v15, %s2251_s24 }
  0x41   : > { %578 = vrot.lane.b32.xlu1 %v2355_v15, %s2254_s27  ;;  %2018 = vrot.lane.b32.xlu0 %v1997_v13, %s2254_s27 }
  0x45   : > { %2028 = vrot.lane.b32.xlu1 %v2027_v17, %s2255_s28  ;;  %2023 = vrot.lane.b32.xlu0 %v2027_v17, %s2256_s29 }
  0x49   : > { %517 = vrot.lane.b32.xlu1 %v2345_v12, %s2255_s28  ;;  %474 = vrot.lane.b32.xlu0 %v2345_v12, %s2256_s29 }
  0x4d   : > { %2038 = vrot.lane.b32.xlu1 %v2027_v17, %s2257_s30  ;;  %2033 = vrot.lane.b32.xlu0 %v2027_v17, %s2258_s6 }
  0x51   : > { %707 = vrot.lane.b32.xlu1 %v2345_v12, %s2257_s30  ;;  %415 = vrot.lane.b32.xlu0 %v2345_v12, %s2258_s6 }
  0x55   : > { %2048 = vrot.lane.b32.xlu1 %v2047_v20, %s2251_s24  ;;  %2043 = vrot.lane.b32.xlu0 %v2047_v20, %s2252_s25 }
  0x59   : > { %2058 = vrot.lane.b32.xlu1 %v2047_v20, %s2254_s27  ;;  %2053 = vrot.lane.b32.xlu0 %v2047_v20, %s2253_s26 }
  0x5d   : > { %2068 = vrot.lane.b32.xlu1 %v2067_v21, %s2255_s28  ;;  %2063 = vrot.lane.b32.xlu0 %v2067_v21, %s2256_s29 }
  0x61   : > { %2078 = vrot.lane.b32.xlu1 %v2067_v21, %s2257_s30  ;;  %2073 = vrot.lane.b32.xlu0 %v2067_v21, %s2258_s6 }
  0x65   : > { %809 = vperm.xlu0 %2082, %v806_v22  }
  0x87   : > { %v2408_v27 = vpop.permute.xlu1 %1933  ;;  %v1924_v28 = vpop.permute.xlu0 %1923 }
  0x88   : > { %v1926_v30 = vunpack.i.h.bf16 %v1924_v28  ;;  %v1925_v31 = vunpack.i.l.bf16 %v1924_v28  ;;  %v1936_v41 = vunpack.i.h.bf16 %v2408_v27  ;;  %v1935_v42 = vunpack.i.l.bf16 %v2408_v27 }
  0x89   : > { %v3539_v27 = vmov 0 }
  0x8a   : > { %v671_v33 = vsel %vm3431_vm0, %v1925_v31, %v1926_v30  ;;  %v629_v53 = vsel %vm3423_vm4, %v1935_v42, %v1936_v41 }
  0x8b   : > { %v2415_v34 = vpop.permute.xlu1 %1938  ;;  %v2417_v35 = vpop.permute.xlu0 %1928  ;;  %v687_v40 = vsel %vm2410_vm1, %v671_v33, 0.0 }
  0x8c   : > { %v1941_v37 = vunpack.i.h.bf16 %v2415_v34  ;;  %v1940_v38 = vunpack.i.l.bf16 %v2415_v34  ;;  %v1930_v39 = vunpack.i.l.bf16 %v2417_v35  ;;  %v797_v47 = vpack.c.bf16 %v687_v40, %v687_v40 }
  0x8e   : > { %v672_v43 = vsel %vm3431_vm0, %v1926_v30, %v1930_v39  ;;  %v750_v49 = vsel %vm3447_vm3, %v1940_v38, %v1941_v37  ;;  %v818_v61 = vsel %vm3424_vm6, %v797_v47, 0  ;;  %v1931_v30 = vunpack.i.h.bf16 %v2417_v35 }
  0x8f   : > { %v2433_v44 = vpop.permute.xlu1 %1948  ;;  %v2435_v45 = vpop.permute.xlu0 %1943  ;;  %v688_v46 = vsel %vm2419_vm2, %v672_v43, 0.0  ;;  %v1693_v56 = vpack.c.bf16 %v750_v49, %v629_v53  ;;  %v2544_v43 = vadd.s32 640, %v2404_v24 }
  0x90   : > { %v1950_v50 = vunpack.i.l.bf16 %v2433_v44  ;;  %v1945_v51 = vunpack.i.l.bf16 %v2435_v45  ;;  %v798_v52 = vpack.c.bf16 %v688_v46, %v688_v46  ;;  %v2547_v46 = vadd.s32 512, %v2404_v24 }
  0x92   : > { %v749_v57 = vsel %vm3447_vm3, %v1950_v50, %v1940_v38  ;;  %v628_v58 = vsel %vm3423_vm4, %v1945_v51, %v1935_v42  ;;  %1691 = vmatprep.subr.msk.bf16.mxu0 %vm3424_vm6, %v798_v52  ;;  %v232_v38 = vadd.s32 384, %v2404_v24  ;;  %vm3426_vm4 = vmpackc.low %vm2458_vm10, %vm2410_vm1  ;;  %vm2555_vm6 = vcmp.ne.s32.totalorder %v255_v29, 31  ;;  %v3203_v50 = vld [vmem:[%s3417_s3] sm:$0x3] }
  0x93   : > { %v2465_v59 = vpop.permute.xlu1 %1958  ;;  %v2467_v60 = vpop.permute.xlu0 %1953  ;;  %848 = vmatpush1.bf16.msra.mxu0 %v818_v61  ;;  %v1696_v6 = vpack.c.bf16 %v749_v57, %v628_v58  ;;  %v673_v57 = vsel %vm3431_vm0, %v1930_v39, %v1931_v30  ;;  %v269_v35 = vand.u32 31, %v2547_v46  ;;  %vm3535_vm10 = vcmask 261120  }
  0x94   : > { %v1960_v62 = vunpack.i.l.bf16 %v2465_v59  ;;  %v1956_v63 = vunpack.i.h.bf16 %v2467_v60  ;;  %v1955_v0 = vunpack.i.l.bf16 %v2467_v60  ;;  %1694 = vmatprep.subr.msk.bf16.mxu0 %vm2454_vm9, %v1693_v56  ;;  %v262_v56 = vand.u32 31, %v232_v38 }
  0x95   : > { %v3528_v38 = vmov 0  ;;  %vm3555_vm1 = vcmask 588800  }
  0x96   : > { %v586_v7 = vsel %vm3420_vm7, %v1955_v0, %v1956_v63  ;;  %v585_v10 = vsel %vm3420_vm7, %v1960_v62, %v1955_v0  ;;  %vm3425_vm7 = vmpackc.low %vm2439_vm5, %vm2419_vm2  ;;  %vm3536_vm5 = vcmask 1043456  }
  0x97   : > { %v1699_v13 = vpack.c.bf16 %v586_v7, %v2312_v2  ;;  %v2497_v14 = vpop.permute.xlu1 %1968  ;;  %v2499_v17 = vpop.permute.xlu0 %1963  ;;  %1697 = vmatpush1.bf16.msk.msra.mxu0 %vm2478_vm11, %v1696_v6  ;;  %v3520_v2 = vmov 0  ;;  %v1702_v25 = vpack.c.bf16 %v585_v10, %v2318_v5  ;;  %v276_v6 = vand.u32 31, %v2544_v43 }
  0x98   : > { %v1971_v20 = vunpack.i.h.bf16 %v2497_v14  ;;  %v1970_v21 = vunpack.i.l.bf16 %v2497_v14  ;;  %v1966_v22 = vunpack.i.h.bf16 %v2499_v17  ;;  %v1965_v23 = vunpack.i.l.bf16 %v2499_v17 }
  0x99   : > { %1700 = vmatprep.subr.msk.bf16.mxu0 %vm2488_vm12, %v1699_v13  ;;  %v3521_v2 = vsel %vm2512_vm15, 4294967295, %v3520_v2  ;;  %vm3538_vm12 = vcmask 793600  }
  0x9a   : > { %v525_v26 = vsel %vm3428_vm13, %v1970_v21, %v1971_v20  ;;  %v482_v28 = vsel %vm3427_vm14, %v1965_v23, %v1966_v22 }
  0x9b   : > { %v1705_v31 = vpack.c.bf16 %v525_v26, %v482_v28  ;;  %v2529_v33 = vpop.permute.xlu1 %1978  ;;  %v2531_v5 = vpop.permute.xlu0 %1973  ;;  %1703 = vmatpush1.bf16.msk.msra.mxu0 %vm2512_vm15, %v1702_v25  ;;  %v1951_v28 = vunpack.i.h.bf16 %v2433_v44  ;;  %v1946_v44 = vunpack.i.h.bf16 %v2435_v45  ;;  %v3530_v45 = vmov 0  ;;  %vm3537_vm15 = vmmov %vm3536_vm5 }
  0x9c   : > { %v1980_v40 = vunpack.i.l.bf16 %v2529_v33  ;;  %v1975_v42 = vunpack.i.l.bf16 %v2531_v5 }
  0x9d   : > { %1706 = vmatprep.subr.msk.bf16.mxu0 %vm3425_vm7, %v1705_v31  ;;  %vm3430_vm7 = vcmask 269312   ;;  %v3526_v31 = vmov 0 }
  0x9e   : > { %v524_v47 = vsel %vm3428_vm13, %v1980_v40, %v1970_v21  ;;  %v481_v49 = vsel %vm3427_vm14, %v1975_v42, %v1965_v23  ;;  %v689_v21 = vsel %vm2555_vm6, %v673_v57, 0.0  ;;  %vm2594_vm14 = vcmp.ne.s32.totalorder %v276_v6, 31 }
  0x9f   : > { %v1708_v51 = vpack.c.bf16 %v524_v47, %v481_v49  ;;  %v2559_v52 = vpop.permute.xlu1 %1988  ;;  %v2561_v53 = vpop.permute.xlu0 %1983  ;;  %v3527_v31 = vsel %vm2594_vm14, 4294967295, %v3526_v31  ;;  %vm2598_vm13 = vcmp.ne.s32.totalorder %v269_v35, 31  ;;  %v799_v46 = vpack.c.bf16 %v689_v21, %v689_v21 }
  0xa0   : > { %v1991_v58 = vunpack.i.h.bf16 %v2559_v52  ;;  %v1990_v61 = vunpack.i.l.bf16 %v2559_v52  ;;  %v3438_v62 = vunpack.i.h.bf16 %v2561_v53  ;;  %v1985_v0 = vunpack.i.l.bf16 %v2561_v53 }
  0xa1   : > { %1709 = vmatpush1.bf16.msk.msra.mxu0 %vm3426_vm4, %v1708_v51  ;;  %vm2587_vm4 = vcmp.ne.s32.totalorder %v262_v56, 31  ;;  %v3529_v38 = vsel %vm2598_vm13, 4294967295, %v3528_v38  ;;  %v751_v21 = vsel %vm3447_vm3, %v1941_v37, %v1951_v28 }
  0xa2   : > { %v715_v39 = vsel %vm3429_vm8, %v1990_v61, %v1991_v58  ;;  %v423_v7 = vsel %vm3430_vm7, %v1985_v0, %v3438_v62  ;;  %vm2619_vm8 = vcmp.ne.s32.totalorder %v262_v56, 0  ;;  %vm2623_vm7 = vcmp.ne.s32.totalorder %v255_v29, 0 }
  0xa3   : > { %v1711_v9 = vpack.c.bf16 %v715_v39, %v423_v7  ;;  %v1999_v10 = vpop.permute.xlu1 %1998  ;;  %v2583_v13 = vpop.permute.xlu0 %1993  ;;  %v3531_v45 = vsel %vm2619_vm8, 4294967295, %v3530_v45  ;;  %v630_v56 = vsel %vm3538_vm12, %v1936_v41, %v1946_v44 }
  0xa4   : > { %v2001_v23 = vunpack.i.h.bf16 %v1999_v10  ;;  %v2000_v25 = vunpack.i.l.bf16 %v1999_v10  ;;  %v1995_v42 = vunpack.i.l.bf16 %v2583_v13  ;;  %v3532_v10 = vmov 0 }
  0xa5   : > { %1712 = vmatprep.subr.msk.bf16.mxu0 %vm2454_vm9, %v1711_v9  ;;  %v3533_v10 = vsel %vm2623_vm7, 4294967295, %v3532_v10  ;;  %vm2658_vm9 = vcmp.ne.s32.totalorder %v269_v35, 0 }
  0xa6   : > { %v675_v40 = vsel %vm3431_vm0, %v2000_v25, %v2001_v23  ;;  %v674_v43 = vsel %vm3431_vm0, %v1931_v30, %v2000_v25 }
  0xa7   : > { %v2606_v47 = vpop.permute.xlu1 %664  ;;  %v2608_v49 = vpop.permute.xlu0 %2003  ;;  %v690_v51 = vsel %vm2587_vm4, %v674_v43, 0.0  ;;  %v691_v9 = vsel %vm2598_vm13, %v675_v40, 0.0  ;;  %v824_v40 = vsel %vm3537_vm15, %v799_v46, 0  ;;  %v3545_v46 = vmov 0 }
  0xa8   : > { %v676_v57 = vsel %vm3431_vm0, %v2001_v23, %v2606_v47  ;;  %v2005_v39 = vunpack.i.l.bf16 %v2608_v49  ;;  %v800_v7 = vpack.c.bf16 %v690_v51, %v690_v51  ;;  %vm3534_vm0 = vcmask 269312  }
  0xa9   : > { %v692_v30 = vsel %vm2594_vm14, %v676_v57, 0.0  ;;  %v422_v23 = vsel %vm3534_vm0, %v1995_v42, %v1985_v0  ;;  %v801_v34 = vpack.c.bf16 %v691_v9, %v691_v9  ;;  %vm3553_vm0 = vcmask 793600  }
  0xaa   : > { %v714_v25 = vsel %vm3535_vm10, %v2005_v39, %v1990_v61  ;;  %1717 = vmatprep.subr.msk.bf16.mxu1 %vm3536_vm5, %v800_v7  ;;  %v802_v29 = vpack.c.bf16 %v692_v30, %v692_v30  ;;  %v2642_v61 = vld [vmem:[%s3415_s1] sm:$0xf]  ;;  %vm2644_vm5 = vcmp.ne.s32.totalorder %v276_v6, 0  ;;  %vm3542_vm10 = vmmov %vm3538_vm12  ;;  %v3547_v39 = vmov 0 }
  0xab   : > { %v1714_v43 = vpack.c.bf16 %v714_v25, %v422_v23  ;;  %v2014_v51 = vpop.permute.xlu1 %2013  ;;  %v2009_v57 = vpop.permute.xlu0 %2008  ;;  %889 = vmatpush1.bf16.msra.mxu1 %v824_v40  ;;  %v3540_v27 = vsel %vm2644_vm5, 4294967295, %v3539_v27  ;;  %vm3543_vm12 = vmmov %vm3537_vm15  ;;  %vm3544_vm15 = vmmov 1   ;;  %v3548_v39 = vsel %vm2658_vm9, 4294967295, %v3547_v39 }
  0xac   : > { %v2016_v19 = vunpack.i.h.bf16 %v2014_v51  ;;  %v2015_v37 = vunpack.i.l.bf16 %v2014_v51  ;;  %v2011_v62 = vunpack.i.h.bf16 %v2009_v57  ;;  %v2010_v0 = vunpack.i.l.bf16 %v2009_v57  ;;  %3541 = vst [vmem:[#allocation3_spill] sm:$0xff] %v3540_v27  ;;  %3549 = vst [vmem:[#allocation4_spill] sm:$0xff] %v3548_v39 }
  0xad   : > { %1715 = vmatpush1.bf16.msk.msra.mxu0 %vm2478_vm11, %v1714_v43  ;;  %vm2654_vm11 = vmpackc.low %vm3544_vm15, %vm2619_vm8  ;;  %v1722_v6 = vpack.c.bf16 %v751_v21, %v630_v56  ;;  %v1961_v7 = vunpack.i.h.bf16 %v2465_v59  ;;  %v3551_v23 = vmov 0  ;;  %v3556_v40 = vmov 0 }
  0xae   : > { %v752_v41 = vsel %vm3447_vm3, %v1951_v28, %v2015_v37  ;;  %v631_v42 = vsel %vm3542_vm10, %v1946_v44, %v2010_v0  ;;  %1743 = vmatprep.subr.msk.bf16.mxu0 %vm3543_vm12, %v802_v29  ;;  %v3546_v46 = vsel %vm2654_vm11, 4294967295, %v3545_v46  ;;  %vm3550_vm10 = vmmov %vm3543_vm12  ;;  %v753_v35 = vsel %vm3447_vm3, %v2015_v37, %v2016_v19 }
  0xaf   : > { %v1719_v9 = vpack.c.bf16 %v752_v41, %v631_v42  ;;  %v2663_v28 = vpop.permute.xlu1 %742  ;;  %v2665_v44 = vpop.permute.xlu0 %621  ;;  %v830_v30 = vsel %vm3550_vm10, %v801_v34, 0  ;;  %vm2671_vm12 = vmpackc.low %vm3544_vm15, %vm2623_vm7  ;;  %v632_v21 = vsel %vm3553_vm0, %v2010_v0, %v2011_v62  ;;  %v1981_v37 = vunpack.i.h.bf16 %v2529_v33 }
  0xb0   : > { %v3552_v23 = vsel %vm2671_vm12, 4294967295, %v3551_v23  ;;  %v754_v59 = vsel %vm3447_vm3, %v2016_v19, %v2663_v28  ;;  %vm3554_vm2 = vmmov %vm3553_vm0  ;;  %1716 = vmatmul.mubr.msk.bf16.vlgmr.msra.gmra.mxu0 %vm3555_vm1, %v2642_v61  ;;  %v3559_v19 = vmov 0  ;;  %vm3562_vm1 = vcmask 1039360  }
  0xb1   : > { %v633_v25 = vsel %vm3554_vm2, %v2011_v62, %v2665_v44  ;;  %vm2686_vm10 = vmpackc.low %vm3544_vm15, %vm2644_vm5  ;;  %1720 = vmatprep.subr.msk.bf16.mxu1 %vm2654_vm11, %v1719_v9  ;;  %930 = vmatpush1.bf16.msra.mxu0 %v830_v30  ;;  %v1748_v62 = vpack.c.bf16 %v753_v35, %v632_v21  ;;  %v587_v51 = vsel %vm3562_vm1, %v1956_v63, %v1961_v7  ;;  %v1976_v0 = vunpack.i.h.bf16 %v2531_v5 }
  0xb2   : > { %v3557_v40 = vsel %vm2686_vm10, 4294967295, %v3556_v40  ;;  %v1745_v56 = vpack.c.bf16 %v754_v59, %v633_v25  ;;  %1723 = vmatpush1.bf16.msk.msra.mxu1 %vm2671_vm12, %v1722_v6  ;;  %vm2697_vm2 = vmpackc.low %vm3544_vm15, %vm2658_vm9  ;;  %955 = vmatprep.mubr.bf16.mxu0 %v3477_v16  ;;  %v3563_v41 = vmov 0  ;;  %v3567_v33 = vmov 0 }
  0xb3   : > { %3558 = vst [vmem:[#allocation5_spill] sm:$0xff] %v3557_v40  ;;  %v3560_v19 = vsel %vm2697_vm2, 4294967295, %v3559_v19  ;;  %v2702_v29 = vpop.permute.xlu1 %578  ;;  %v2019_v43 = vpop.permute.xlu0 %2018  ;;  %vm2716_vm0 = vmpackc.low %vm2587_vm4, %vm3544_vm15  ;;  %v1728_v5 = vpack.c.bf16 %v587_v51, %v2314_v3  ;;  %v3572_v3 = vmov 0 }
  0xb4   : > { %3561 = vst [vmem:[#allocation6_spill] sm:$0xff] %v3560_v19  ;;  %1746 = vmatprep.subr.msk.bf16.mxu0 %vm2686_vm10, %v1745_v56  ;;  %v2021_v57 = vunpack.i.h.bf16 %v2019_v43  ;;  %v2020_v34 = vunpack.i.l.bf16 %v2019_v43  ;;  %v3564_v41 = vsel %vm2716_vm0, 4294967295, %v3563_v41  ;;  %vm3565_vm3 = vmmov %vm3562_vm1 }
  0xb5   : > { %1749 = vmatpush1.bf16.msk.msra.mxu0 %vm2697_vm2, %v1748_v62  ;;  %vm3566_vm10 = vmmov %vm3562_vm1  ;;  %vm3576_vm2 = vcmask 252928  }
  0xb6   : > { %v590_v60 = vsel %vm3565_vm3, %v2021_v57, %v2702_v29  ;;  %v588_v63 = vsel %vm3562_vm1, %v1961_v7, %v2020_v34  ;;  %v589_v42 = vsel %vm3566_vm10, %v2020_v34, %v2021_v57  ;;  %vm2727_vm12 = vmpackc.low %vm2594_vm14, %vm3544_vm15  ;;  %v3570_v7 = vmov 0 }
  0xb7   : > { %v3568_v33 = vsel %vm2727_vm12, 4294967295, %v3567_v33  ;;  %v1751_v6 = vpack.c.bf16 %v590_v60, %v2345_v12  ;;  %v1725_v9 = vpack.c.bf16 %v588_v63, %v2316_v4  ;;  %v1754_v30 = vpack.c.bf16 %v589_v42, %v2343_v11  ;;  %v2029_v35 = vpop.permute.xlu1 %2028  ;;  %v2024_v21 = vpop.permute.xlu0 %2023  ;;  %vm2738_vm3 = vmpackc.low %vm2555_vm6, %vm3544_vm15 }
  0xb8   : > { %3569 = vst [vmem:[#allocation7_spill] sm:$0xff] %v3568_v33  ;;  %v3571_v7 = vsel %vm2738_vm3, 4294967295, %v3570_v7  ;;  %v2031_v59 = vunpack.i.h.bf16 %v2029_v35  ;;  %v2030_v25 = vunpack.i.l.bf16 %v2029_v35  ;;  %v2026_v56 = vunpack.i.h.bf16 %v2024_v21  ;;  %vm2745_vm10 = vmpackc.low %vm2598_vm13, %vm3544_vm15 }
  0xb9   : > { %v2025_v62 = vunpack.i.l.bf16 %v2024_v21  ;;  %v3573_v3 = vsel %vm2745_vm10, 4294967295, %v3572_v3  ;;  %vm3575_vm1 = vcmask 7168   ;;  %v483_v11 = vsel %vm3576_vm2, %v1966_v22, %v1976_v0  ;;  %1726 = vmatprep.subr.msk.bf16.mxu1 %vm2716_vm0, %v1725_v9  ;;  %1752 = vmatprep.subr.msk.bf16.mxu0 %vm2727_vm12, %v1751_v6  ;;  %vm3578_vm15 = vmmov %vm3576_vm2 }
  0xba   : > { %3574 = vst [vmem:[#allocation8_spill] sm:$0xff] %v3573_v3  ;;  %v526_v4 = vsel %vm3575_vm1, %v1971_v20, %v1981_v37  ;;  %vm3577_vm11 = vmmov %vm3575_vm1  ;;  %1729 = vmatpush1.bf16.msk.msra.mxu1 %vm2738_vm3, %v1728_v5  ;;  %1755 = vmatpush1.bf16.msk.msra.mxu0 %vm2745_vm10, %v1754_v30  ;;  %v1996_v42 = vunpack.i.h.bf16 %v2583_v13  ;;  %v235_v9 = vadd.s32 768, %v2404_v24  ;;  %vm3626_vm3 = vcmask 1039360  }
  0xbb   : > { %v527_v12 = vsel %vm3577_vm11, %v1981_v37, %v2030_v25  ;;  %v484_v43 = vsel %vm3578_vm15, %v1976_v0, %v2025_v62  ;;  %vm3459_vm1 = vmpackc.low %vm2619_vm8, %vm2587_vm4  ;;  %v485_v17 = vsel %vm3576_vm2, %v2025_v62, %v2026_v56  ;;  %v2771_v22 = vpop.permute.xlu1 %517  ;;  %v2773_v51 = vpop.permute.xlu0 %474  ;;  %v1734_v57 = vpack.c.bf16 %v526_v4, %v483_v11 }
  0xbc   : > { %vm3579_vm9 = vmmov %vm3577_vm11  ;;  %v1731_v20 = vpack.c.bf16 %v527_v12, %v484_v43  ;;  %v2006_v0 = vunpack.i.h.bf16 %v2608_v49  ;;  %v236_v49 = vadd.s32 896, %v2404_v24  ;;  %v3587_v24 = vunpack.i.h.bf16 %v2561_v53 }
  0xbd   : > { %v528_v14 = vsel %vm3579_vm9, %v2030_v25, %v2031_v59  ;;  %vm3580_vm15 = vmmov %vm3579_vm9  ;;  %vm3619_vm8 = vcmask 793600  }
  0xbe   : > { %v529_v34 = vsel %vm3580_vm15, %v2031_v59, %v2771_v22  ;;  %vm3581_vm9 = vmmov %vm3576_vm2  ;;  %1732 = vmatprep.subr.msk.bf16.mxu1 %vm3459_vm1, %v1731_v20  ;;  %vm3582_vm15 = vnez %v3548_v39  ;;  %v1760_v63 = vpack.c.bf16 %v528_v14, %v485_v17  ;;  %v290_v62 = vand.u32 31, %v236_v49 }
  0xbf   : > { %v486_v37 = vsel %vm3581_vm9, %v2026_v56, %v2773_v51  ;;  %vm3461_vm2 = vmpackc.low %vm2644_vm5, %vm2594_vm14  ;;  %v2039_v5 = vpop.permute.xlu1 %2038  ;;  %v2034_v6 = vpop.permute.xlu0 %2033  ;;  %vm3586_vm5 = vcmask 269312  }
  0xc0   : > { %v1757_v60 = vpack.c.bf16 %v529_v34, %v486_v37  ;;  %vm3464_vm11 = vmpackc.low %vm3582_vm15, %vm2598_vm13  ;;  %v2041_v30 = vunpack.i.h.bf16 %v2039_v5  ;;  %v2040_v35 = vunpack.i.l.bf16 %v2039_v5  ;;  %v2036_v21 = vunpack.i.h.bf16 %v2034_v6 }
  0xc1   : > { %vm3583_vm9 = vmpackc.low %vm2623_vm7, %vm2555_vm6  ;;  %v2035_v59 = vunpack.i.l.bf16 %v2034_v6  ;;  %vm3602_vm15 = vcmask 777216   ;;  %vm3616_vm7 = vmmov 1  }
  0xc2   : > { %1735 = vmatpush1.bf16.msk.msra.mxu1 %vm3583_vm9, %v1734_v57  ;;  %1758 = vmatprep.subr.msk.bf16.mxu0 %vm3461_vm2, %v1757_v60  ;;  %vm3584_vm9 = vcmask 261120   ;;  %vm3588_vm2 = vmmov %vm3586_vm5  ;;  %v283_v57 = vand.u32 31, %v235_v9 }
  0xc3   : > { %1761 = vmatpush1.bf16.msk.msra.mxu0 %vm3464_vm11, %v1760_v63  ;;  %v716_v13 = vsel %vm3584_vm9, %v1991_v58, %v2006_v0  ;;  %vm3585_vm1 = vmmov %vm3584_vm9  ;;  %v425_v56 = vsel %vm3586_vm5, %v1996_v42, %v2035_v59  ;;  %v424_v4 = vsel %vm3588_vm2, %v3587_v24, %v1996_v42  ;;  %v2825_v14 = vpop.permute.xlu1 %707  ;;  %v2827_v17 = vpop.permute.xlu0 %415  ;;  %vm3601_vm11 = vcmask 588800  }
  0xc4   : > { %v717_v25 = vsel %vm3585_vm1, %v2006_v0, %v2040_v35  ;;  %vm3589_vm10 = vmmov %vm3585_vm1  ;;  %v1740_v52 = vpack.c.bf16 %v716_v13, %v424_v4 }
  0xc5   : > { %v718_v11 = vsel %vm3589_vm10, %v2040_v35, %v2041_v30  ;;  %vm3590_vm12 = vmmov %vm3588_vm2  ;;  %v1737_v43 = vpack.c.bf16 %v717_v25, %v425_v56  ;;  %vm2837_vm10 = vcmp.ne.s32.totalorder %v290_v62, 31 }
  0xc6   : > { %v426_v12 = vsel %vm3590_vm12, %v2035_v59, %v2036_v21  ;;  %vm3591_vm9 = vmmov %vm3585_vm1  ;;  %vm3593_vm1 = vnez %v3546_v46  ;;  %vm3594_vm12 = vnez %v3552_v23 }
  0xc7   : > { %v719_v58 = vsel %vm3591_vm9, %v2041_v30, %v2825_v14  ;;  %vm3592_vm5 = vmmov %vm3588_vm2  ;;  %1738 = vmatprep.subr.msk.bf16.mxu1 %vm3593_vm1, %v1737_v43  ;;  %v1766_v34 = vpack.c.bf16 %v718_v11, %v426_v12  ;;  %v2049_v37 = vpop.permute.xlu1 %2048  ;;  %v2044_v60 = vpop.permute.xlu0 %2043  ;;  %vm3597_vm2 = vnez %v3557_v40  ;;  %vm3598_vm9 = vnez %v3560_v19 }
  0xc8   : > { %v427_v20 = vsel %vm3592_vm5, %v2036_v21, %v2827_v17  ;;  %1741 = vmatpush1.bf16.msk.msra.mxu1 %vm3594_vm12, %v1740_v52  ;;  %v2051_v63 = vunpack.i.h.bf16 %v2049_v37  ;;  %v2046_v49 = vunpack.i.h.bf16 %v2044_v60  ;;  %v2045_v42 = vunpack.i.l.bf16 %v2044_v60  ;;  %vm3603_vm13 = vmmov %vm3602_vm15 }
  0xc9   : > { %v1763_v53 = vpack.c.bf16 %v719_v58, %v427_v20  ;;  %vm2845_vm5 = vcmp.ne.s32.totalorder %v283_v57, 31  ;;  %v2050_v6 = vunpack.i.l.bf16 %v2049_v37  ;;  %v3606_v12 = vmov 0 }
  0xca   : > { %v677_v9 = vsel %vm3602_vm15, %v2606_v47, %v2045_v42  ;;  %v678_v30 = vsel %vm3603_vm13, %v2045_v42, %v2046_v49  ;;  %vm2863_vm13 = vcmp.ne.s32.totalorder %v290_v62, 0  ;;  %vm3609_vm15 = vcmask 785408  }
  0xcb   : > { %1764 = vmatprep.subr.msk.bf16.mxu0 %vm3597_vm2, %v1763_v53  ;;  %1742 = vmatmul.mubr.msk.bf16.vlgmr.msra.gmra.mxu1 %vm3601_vm11, %v2642_v61  ;;  %v694_v35 = vsel %vm2837_vm10, %v678_v30, 0.0  ;;  %v2059_v21 = vpop.permute.xlu1 %2058  ;;  %v2054_v59 = vpop.permute.xlu0 %2053  ;;  %v693_v13 = vsel %vm2845_vm5, %v677_v9, 0.0  ;;  %v3607_v12 = vsel %vm2863_vm13, 4294967295, %v3606_v12  ;;  %vm3614_vm2 = vcmask 1039360   ;;  %vm3615_vm14 = vmmov %vm3609_vm15 }
  0xcc   : > { %1767 = vmatpush1.bf16.msk.msra.mxu0 %vm3598_vm9, %v1766_v34  ;;  %996 = vmatprep.mubr.bf16.mxu1 %v3477_v16  ;;  %vm3604_vm9 = vmmov %vm3601_vm11  ;;  %vm3605_vm11 = vcmask 793600   ;;  %v2061_v56 = vunpack.i.h.bf16 %v2059_v21  ;;  %v2056_v24 = vunpack.i.h.bf16 %v2054_v59  ;;  %v2055_v47 = vunpack.i.l.bf16 %v2054_v59  ;;  %3608 = vst [vmem:[#allocation9_spill] sm:$0xff] %v3607_v12 }
  0xcd   : > { %v635_v25 = vsel %vm3605_vm11, %v2050_v6, %v2051_v63  ;;  %v804_v4 = vpack.c.bf16 %v694_v35, %v694_v35  ;;  %v803_v11 = vpack.c.bf16 %v693_v13, %v693_v13  ;;  %v2060_v43 = vunpack.i.l.bf16 %v2059_v21  ;;  %vm3476_vm0 = vmpackc.low %vm2863_vm13, %vm2837_vm10 }
  0xce   : > { %v756_v52 = vsel %vm3609_vm15, %v2055_v47, %v2056_v24  ;;  %vm2869_vm11 = vcmp.ne.s32.totalorder %v283_v57, 0  ;;  %v3611_v34 = vmov 0  ;;  %v755_v62 = vsel %vm3615_vm14, %v2663_v28, %v2055_v47  ;;  %vm2879_vm15 = vmpackc.low %vm3616_vm7, %vm2863_vm13 }
  0xcf   : > { %1768 = vmatmul.mubr.msk.bf16.vlgmr.msra.gmra.mxu0 %vm3604_vm9, %v2642_v61  ;;  %v1771_v58 = vpack.c.bf16 %v756_v52, %v635_v25  ;;  %vm3610_vm9 = vcmask 1043456   ;;  %v2069_v20 = vpop.permute.xlu1 %2068  ;;  %v2064_v53 = vpop.permute.xlu0 %2063  ;;  %v3612_v34 = vsel %vm2869_vm11, 4294967295, %v3611_v34  ;;  %v592_v37 = vsel %vm3614_vm2, %v2060_v43, %v2061_v56  ;;  %vm2892_vm14 = vmpackc.low %vm3616_vm7, %vm2869_vm11 }
  0xd0   : > { %1475 = vmatprep.mubr.bf16.mxu0 %v3477_v16  ;;  %1769 = vmatprep.subr.msk.bf16.mxu1 %vm3610_vm9, %v804_v4  ;;  %3613 = vst [vmem:[#allocation10_spill] sm:$0xff] %v3612_v34  ;;  %v2071_v60 = vunpack.i.h.bf16 %v2069_v20  ;;  %v2066_v63 = vunpack.i.h.bf16 %v2064_v53  ;;  %v836_v42 = vsel %vm3610_vm9, %v803_v11, 0  ;;  %v634_v57 = vsel %vm3619_vm8, %v2665_v44, %v2050_v6  ;;  %vm2901_vm9 = vmpackc.low %vm2837_vm10, %vm3616_vm7 }
  0xd1   : > { %v2070_v9 = vunpack.i.l.bf16 %v2069_v20  ;;  %v2065_v30 = vunpack.i.l.bf16 %v2064_v53  ;;  %971 = vmatpush1.bf16.msra.mxu1 %v836_v42  ;;  %v1777_v35 = vpack.c.bf16 %v592_v37, %v2381_v18  ;;  %v1774_v28 = vpack.c.bf16 %v755_v62, %v634_v57 }
  0xd2   : > { %1772 = vmatprep.subr.msk.bf16.mxu1 %vm2879_vm15, %v1771_v58  ;;  %v3620_v21 = vmov 0  ;;  %vm3622_vm2 = vcmask 7168   ;;  %vm3623_vm8 = vcmask 252928   ;;  %v3624_v18 = vmov 0 }
  0xd3   : > { %v3621_v21 = vsel %vm2892_vm14, 4294967295, %v3620_v21  ;;  %v2079_v59 = vpop.permute.xlu1 %2078  ;;  %v2074_v13 = vpop.permute.xlu0 %2073  ;;  %v531_v44 = vsel %vm3622_vm2, %v2070_v9, %v2071_v60  ;;  %v488_v6 = vsel %vm3623_vm8, %v2065_v30, %v2066_v63  ;;  %v3625_v18 = vsel %vm2901_vm9, 4294967295, %v3624_v18  ;;  %vm2914_vm2 = vmpackc.low %vm2845_vm5, %vm3616_vm7 }
  0xd4   : > { %v2081_v25 = vunpack.i.h.bf16 %v2079_v59  ;;  %v2076_v56 = vunpack.i.h.bf16 %v2074_v13  ;;  %v591_v24 = vsel %vm3626_vm3, %v2702_v29, %v2060_v43  ;;  %v2080_v47 = vunpack.i.l.bf16 %v2079_v59  ;;  %vm3475_vm7 = vmpackc.low %vm2869_vm11, %vm2845_vm5 }
  0xd5   : > { %1775 = vmatpush1.bf16.msk.msra.mxu1 %vm2892_vm14, %v1774_v28  ;;  %v2075_v4 = vunpack.i.l.bf16 %v2074_v13  ;;  %v1783_v11 = vpack.c.bf16 %v531_v44, %v488_v6  ;;  %v3627_v52 = vmov 0  ;;  %v1780_v58 = vpack.c.bf16 %v591_v24, %v2355_v15 }
  0xd6   : > { %1778 = vmatprep.subr.msk.bf16.mxu1 %vm2901_vm9, %v1777_v35  ;;  %v3628_v52 = vsel %vm2914_vm2, 4294967295, %v3627_v52  ;;  %vm3629_vm8 = vcmask 261120   ;;  %vm3630_vm3 = vcmask 269312   ;;  %vm3631_vm9 = vcmask 7168  }
  0xd7   : > { %v721_v29 = vsel %vm3629_vm8, %v2080_v47, %v2081_v25  ;;  %v429_v43 = vsel %vm3630_vm3, %v2075_v4, %v2076_v56  ;;  %v530_v20 = vsel %vm3631_vm9, %v2771_v22, %v2070_v9  ;;  %vm3632_vm12 = vcmask 252928   ;;  %vm3633_vm9 = vmmov %vm3629_vm8 }
  0xd8   : > { %v487_v53 = vsel %vm3632_vm12, %v2773_v51, %v2065_v30  ;;  %v1789_v37 = vpack.c.bf16 %v721_v29, %v429_v43  ;;  %v720_v22 = vsel %vm3633_vm9, %v2825_v14, %v2080_v47  ;;  %vm3634_vm12 = vmmov %vm3630_vm3  ;;  %vm3635_vm8 = vcmask 588800  }
  0xd9   : > { %1781 = vmatpush1.bf16.msk.msra.mxu1 %vm2914_vm2, %v1780_v58  ;;  %v1786_v15 = vpack.c.bf16 %v530_v20, %v487_v53  ;;  %v428_v51 = vsel %vm3634_vm12, %v2827_v17, %v2075_v4  ;;  %v3638_v43 = vmov 0.0   ;;  %vm3639_vm3 = vcmask 777216  }
  0xda   : > { %1784 = vmatprep.subr.msk.bf16.mxu1 %vm3476_vm0, %v1783_v11  ;;  %v1792_v62 = vpack.c.bf16 %v720_v22, %v428_v51  ;;  %vm3640_vm9 = vnez %v3507_v32  ;;  %vm3641_vm12 = vmmov %vm3639_vm3  ;;  %vm3646_vm0 = vcmask 785408   ;;  %vm3658_vm13 = vcmask 1039360  }
  0xdd   : > { %1787 = vmatpush1.bf16.msk.msra.mxu1 %vm3475_vm7, %v1786_v15  ;;  %vm3645_vm7 = vcmask 793600  }
  0xde   : > { %1790 = vmatprep.subr.msk.bf16.mxu1 %vm2879_vm15, %v1789_v37 }
  0xe0   : > { %v810_v14 = vpop.permute.xlu0 %809 }
  0xe1   : > { %1793 = vmatpush1.bf16.msk.msra.mxu1 %vm2892_vm14, %v1792_v62  ;;  %vm3674_vm14 = vcmask 261120  }
  0xe4   : > { %1794 = vmatmul.mubr.msk.bf16.vlgmr.msra.gmra.mxu1 %vm3635_vm8, %v2642_v61  ;;  %vm3642_vm8 = vnez %v3509_v36 }
  0xe5   : > { %1516 = vmatprep.mubr.bf16.mxu1 %v3477_v16 }
 0x170   : > { %v875_v17 = vpop.f32.mrf.mxu0 }
 0x171   : > { %v2956_v60 = vadd.f32 %v875_v17, %v810_v14 }
 0x172   : > { %v877_v63 = vpop.f32.mrf.mxu0 }
 0x173   : > { %v2958_v42 = vadd.f32 %v877_v63, %v810_v14 }
 0x174   : > { %v879_v57 = vpop.f32.mrf.mxu0 }
 0x175   : > { %v2108_v9 = vpack.i.bf16 %v2958_v42, %v2956_v60 }
 0x176   : > { %v880_v30 = vpop.f32.mrf.mxu0 }
 0x177   : > { %2109 = vrot.lane.b32.xlu0 %v2108_v9, %s2256_s29  ;;  %2084 = vrot.lane.b32.xlu1 %v2108_v9, %s2252_s25 }
 0x17b   : > { %2119 = vrot.lane.b32.xlu0 %v2108_v9, %s2255_s28 }
 0x17f   : > { %2129 = vrot.lane.b32.xlu0 %v2108_v9, %s2258_s6 }
 0x183   : > { %2139 = vrot.lane.b32.xlu0 %v2108_v9, %s2257_s30  ;;  %v1410_v9 = vld [vmem:[%s3418_s4] sm:$0x7] }
 0x18b   : > { %v916_v61 = vpop.f32.mrf.mxu1 }
 0x18c   : > { %v2967_v59 = vadd.f32 %v916_v61, %v810_v14 }
 0x18d   : > { %v918_v35 = vpop.f32.mrf.mxu1 }
 0x18e   : > { %v2969_v13 = vadd.f32 %v918_v35, %v810_v14  ;;  %v2093_v58 = vpack.i.bf16 %v2967_v59, %v2958_v42 }
 0x18f   : > { %v957_v28 = vpop.f32.mrf.mxu0  ;;  %v920_v6 = vpop.f32.mrf.mxu1 }
 0x190   : > { %v2971_v44 = vadd.f32 %v957_v28, %v810_v14  ;;  %v2088_v24 = vpack.i.bf16 %v2969_v13, %v2967_v59 }
 0x191   : > { %v959_v25 = vpop.f32.mrf.mxu0  ;;  %v921_v47 = vpop.f32.mrf.mxu1 }
 0x192   : > { %3636 = vst [vmem:[#allocation11_spill] sm:$0xff] %v2971_v44  ;;  %v2148_v56 = vpack.i.bf16 %v2971_v44, %v2969_v13  ;;  %2089 = vrot.lane.b32.xlu1 %v2088_v24, %s2252_s25  ;;  %v2985_v29 = vadd.f32 %v959_v25, %v810_v14  ;;  %v2163_v20 = vpack.i.bf16 %v2971_v44, %v3638_v43 }
 0x193   : > { %v961_v4 = vpop.f32.mrf.mxu0 }
 0x194   : > { %2149 = vrot.lane.b32.xlu0 %v2148_v56, %s2251_s24  ;;  %3637 = vst [vmem:[#allocation12_spill] sm:$0xff] %v2985_v29  ;;  %v2173_v53 = vpack.i.bf16 %v2985_v29, %v2971_v44  ;;  %v2183_v15 = vpack.i.bf16 %v2985_v29, %v2956_v60 }
 0x195   : > { %v962_v11 = vpop.f32.mrf.mxu0 }
 0x196   : > { %2094 = vrot.lane.b32.xlu1 %v2093_v58, %s2251_s24 }
 0x198   : > { %2154 = vrot.lane.b32.xlu0 %v2148_v56, %s2253_s26 }
 0x19a   : > { %2099 = vrot.lane.b32.xlu1 %v2093_v58, %s2253_s26 }
 0x19c   : > { %2159 = vrot.lane.b32.xlu0 %v2148_v56, %s2254_s27 }
 0x19e   : > { %2104 = vrot.lane.b32.xlu1 %v2093_v58, %s2254_s27 }
 0x1a0   : > { %2164 = vrot.lane.b32.xlu0 %v2163_v20, %s2256_s29 }
 0x1a2   : > { %2114 = vrot.lane.b32.xlu1 %v2088_v24, %s2256_s29 }
 0x1a4   : > { %2174 = vrot.lane.b32.xlu0 %v2173_v53, %s2252_s25  ;;  %v998_v37 = vpop.f32.mrf.mxu1 }
 0x1a5   : > { %v3000_v51 = vadd.f32 %v998_v37, %v810_v14 }
 0x1a6   : > { %2124 = vrot.lane.b32.xlu1 %v2088_v24, %s2255_s28  ;;  %v1000_v22 = vpop.f32.mrf.mxu1 }
 0x1a7   : > { %v3002_v62 = vadd.f32 %v1000_v22, %v810_v14  ;;  %v2213_v14 = vpack.i.bf16 %v3000_v51, %v2985_v29 }
 0x1a8   : > { %1031 = vrot.lane.b32.xlu0 %v3638_v43, %s2258_s6  ;;  %v1002_v17 = vpop.f32.mrf.mxu1 }
 0x1a9   : > { %v2193_v63 = vpack.i.bf16 %v3002_v62, %v3000_v51 }
 0x1aa   : > { %2134 = vrot.lane.b32.xlu1 %v2088_v24, %s2258_s6  ;;  %v1003_v57 = vpop.f32.mrf.mxu1 }
 0x1ac   : > { %2184 = vrot.lane.b32.xlu0 %v2183_v15, %s2253_s26 }
 0x1ae   : > { %2144 = vrot.lane.b32.xlu1 %v2088_v24, %s2257_s30 }
 0x1b0   : > { %2194 = vrot.lane.b32.xlu0 %v2193_v63, %s2252_s25 }
 0x1b2   : > { %2169 = vrot.lane.b32.xlu1 %v2163_v20, %s2255_s28 }
 0x1b4   : > { %2199 = vrot.lane.b32.xlu0 %v2193_v63, %s2251_s24 }
 0x1b6   : > { %1301 = vrot.lane.b32.xlu1 %v3638_v43, %s2257_s30 }
 0x1b8   : > { %2204 = vrot.lane.b32.xlu0 %v2193_v63, %s2253_s26 }
 0x1ba   : > { %1275 = vrot.lane.b32.xlu1 %v3638_v43, %s2252_s25 }
 0x1bc   : > { %2209 = vrot.lane.b32.xlu0 %v2193_v63, %s2254_s27 }
 0x1be   : > { %2179 = vrot.lane.b32.xlu1 %v2183_v15, %s2251_s24 }
 0x1c0   : > { %2214 = vrot.lane.b32.xlu0 %v2213_v14, %s2256_s29 }
 0x1c2   : > { %2189 = vrot.lane.b32.xlu1 %v2183_v15, %s2254_s27 }
 0x1c4   : > { %2219 = vrot.lane.b32.xlu0 %v2213_v14, %s2255_s28 }
 0x1c6   : > { %1233 = vrot.lane.b32.xlu1 %v3638_v43, %s2251_s24 }
 0x1c8   : > { %2224 = vrot.lane.b32.xlu0 %v2173_v53, %s2258_s6 }
 0x1ca   : > { %1351 = vrot.lane.b32.xlu1 %v3638_v43, %s2253_s26 }
 0x1cc   : > { %2234 = vrot.lane.b32.xlu0 %v2173_v53, %s2257_s30 }
 0x1ce   : > { %1191 = vrot.lane.b32.xlu1 %v3638_v43, %s2254_s27 }
 0x1d0   : > { %1413 = vperm.xlu0 %2082, %v1410_v9  }
 0x1d2   : > { %1089 = vrot.lane.b32.xlu1 %v3002_v62, %s2256_s29 }
 0x1d6   : > { %1131 = vrot.lane.b32.xlu1 %v3002_v62, %s2255_s28 }
 0x1da   : > { %2229 = vrot.lane.b32.xlu1 %v2193_v63, %s2258_s6 }
 0x1de   : > { %2239 = vrot.lane.b32.xlu1 %v2193_v63, %s2257_s30 }
 0x1e9   : > { %v3041_v30 = vpop.permute.xlu0 %2109  ;;  %v2085_v28 = vpop.permute.xlu1 %2084 }
 0x1ea   : > { %v2087_v6 = vunpack.i.h.bf16 %v2085_v28  ;;  %v2086_v25 = vunpack.i.l.bf16 %v2085_v28 }
 0x1ec   : > { %v1277_v24 = vsel %vm3639_vm3, %v2086_v25, %v2087_v6  ;;  %vm3643_vm3 = vcmask 1043456  }
 0x1ed   : > { %v3043_v61 = vpop.permute.xlu0 %2119  ;;  %v1293_v58 = vsel %vm3640_vm9, %v1277_v24, 0.0 }
 0x1ee   : > { %v1401_v15 = vpack.c.bf16 %v1293_v58, %v1293_v58 }
 0x1f1   : > { %v3045_v35 = vpop.permute.xlu0 %2129 }
 0x1f5   : > { %v3047_v56 = vpop.permute.xlu0 %2139 }
 0x204   : > { %v2090_v4 = vpop.permute.xlu1 %2089 }
 0x205   : > { %v2091_v11 = vunpack.i.l.bf16 %v2090_v4  ;;  %v2092_v28 = vunpack.i.h.bf16 %v2090_v4 }
 0x206   : > { %v3050_v47 = vpop.permute.xlu0 %2149 }
 0x207   : > { %v1278_v43 = vsel %vm3641_vm12, %v2087_v6, %v2091_v11  ;;  %vm3644_vm12 = vmmov %vm3643_vm3  ;;  %v3652_v12 = vunpack.i.h.bf16 %v3050_v47 }
 0x208   : > { %v1294_v20 = vsel %vm3642_vm8, %v1278_v43, 0.0  ;;  %v3059_v37 = vpop.permute.xlu1 %2094  ;;  %v1420_v9 = vsel %vm3644_vm12, %v1401_v15, 0  ;;  %vm3648_vm12 = vnez %v3513_v54 }
 0x209   : > { %v1402_v22 = vpack.c.bf16 %v1294_v20, %v1294_v20  ;;  %v2097_v17 = vunpack.i.h.bf16 %v3059_v37  ;;  %v3479_v63 = vunpack.i.l.bf16 %v3059_v37 }
 0x20a   : > { %v3057_v53 = vpop.permute.xlu0 %2154 }
 0x20b   : > { %1795 = vmatprep.subr.msk.bf16.mxu0 %vm3643_vm3, %v1402_v22  ;;  %v1236_v24 = vsel %vm3645_vm7, %v3479_v63, %v2097_v17  ;;  %vm3647_vm3 = vcmask 777216   ;;  %v3650_v39 = vunpack.i.h.bf16 %v3057_v53  ;;  %vm3651_vm7 = vcmask 785408  }
 0x20c   : > { %v3066_v14 = vpop.permute.xlu1 %2099  ;;  %1450 = vmatpush1.bf16.msra.mxu0 %v1420_v9  ;;  %v1279_v4 = vsel %vm3647_vm3, %v2091_v11, %v2092_v28  ;;  %v2156_v9 = vunpack.i.l.bf16 %v3057_v53  ;;  %v2151_v11 = vunpack.i.l.bf16 %v3050_v47 }
 0x20d   : > { %v2102_v6 = vunpack.i.h.bf16 %v3066_v14  ;;  %v3480_v25 = vunpack.i.l.bf16 %v3066_v14 }
 0x20e   : > { %v3064_v57 = vpop.permute.xlu0 %2159  ;;  %v1356_v27 = vsel %vm3651_vm7, %v2156_v9, %v3650_v39 }
 0x20f   : > { %v1354_v58 = vsel %vm3646_vm0, %v3480_v25, %v2102_v6  ;;  %vm3649_vm0 = vmmov %vm3647_vm3  ;;  %v2161_v44 = vunpack.i.l.bf16 %v3064_v57  ;;  %vm3653_vm3 = vcmask 793600  }
 0x210   : > { %v1797_v43 = vpack.c.bf16 %v1354_v58, %v1236_v24  ;;  %v3079_v22 = vpop.permute.xlu1 %2104  ;;  %v1295_v24 = vsel %vm2555_vm6, %v1279_v4, 0.0 }
 0x211   : > { %v1403_v15 = vpack.c.bf16 %v1295_v24, %v1295_v24  ;;  %v3497_v39 = vunpack.i.h.bf16 %v3079_v22 }
 0x212   : > { %v3077_v20 = vpop.permute.xlu0 %2164  ;;  %1798 = vmatprep.subr.msk.bf16.mxu0 %vm3648_vm12, %v1797_v43 }
 0x214   : > { %v3088_v63 = vpop.permute.xlu1 %2114 }
 0x215   : > { %v3757_v5 = vunpack.i.h.bf16 %v3088_v63 }
 0x216   : > { %v3086_v16 = vpop.permute.xlu0 %2174 }
 0x217   : > { %v3488_v58 = vunpack.i.l.bf16 %v3086_v16 }
 0x218   : > { %v3107_v25 = vpop.permute.xlu1 %2124 }
 0x219   : > { %v1280_v43 = vsel %vm3649_vm0, %v2092_v28, %v3488_v58  ;;  %v1238_v28 = vsel %vm3653_vm3, %v2151_v11, %v3652_v12  ;;  %vm3654_vm0 = vmmov %vm3651_vm7  ;;  %vm3655_vm7 = vcmask 1043456   ;;  %v3496_v29 = vunpack.i.h.bf16 %v3107_v25 }
 0x21a   : > { %v1296_v4 = vsel %vm2587_vm4, %v1280_v43, 0.0  ;;  %v3105_v34 = vpop.permute.xlu0 %1031  ;;  %v1823_v24 = vpack.c.bf16 %v1356_v27, %v1238_v28  ;;  %v1355_v58 = vsel %vm3654_vm0, %v2102_v6, %v2156_v9  ;;  %vm3656_vm11 = vmmov %vm3655_vm7  ;;  %v3657_v43 = vunpack.i.h.bf16 %v3064_v57 }
 0x21b   : > { %v1404_v33 = vpack.c.bf16 %v1296_v4, %v1296_v4  ;;  %v1426_v3 = vsel %vm3656_vm11, %v1403_v15, 0  ;;  %v2126_v4 = vunpack.i.l.bf16 %v3107_v25  ;;  %v1237_v27 = vsel %vm3653_vm3, %v2097_v17, %v2151_v11 }
 0x21c   : > { %v1196_v19 = vsel %vm3658_vm13, %v2161_v44, %v3657_v43  ;;  %v3123_v12 = vpop.permute.xlu1 %2134  ;;  %v3498_v6 = vunpack.i.h.bf16 %v3088_v63  ;;  %v2116_v15 = vunpack.i.l.bf16 %v3088_v63  ;;  %v1195_v28 = vsel %vm3658_vm13, %v3497_v39, %v2161_v44 }
 0x21d   : > { %1821 = vmatprep.subr.msk.bf16.mxu1 %vm3655_vm7, %v1404_v33  ;;  %3659 = vst [vmem:[#allocation13_spill] sm:$0xff] %v3123_v12  ;;  %v1826_v33 = vpack.c.bf16 %v1355_v58, %v1237_v27  ;;  %v1829_v9 = vpack.c.bf16 %v1196_v19, %v2969_v13  ;;  %vm3660_vm11 = vcmask 7168   ;;  %vm3662_vm0 = vnez %v3552_v23 }
 0x21e   : > { %v3121_v40 = vpop.permute.xlu0 %2184  ;;  %1491 = vmatpush1.bf16.msra.mxu1 %v1426_v3  ;;  %v1136_v3 = vsel %vm3660_vm11, %v2126_v4, %v3496_v29  ;;  %v2112_v58 = vunpack.i.h.bf16 %v3041_v30  ;;  %v3500_v11 = vunpack.i.h.bf16 %v3043_v61  ;;  %vm3663_vm7 = vnez %v3564_v41  ;;  %vm3665_vm13 = vmmov %vm3660_vm11 }
 0x21f   : > { %1824 = vmatprep.subr.msk.bf16.mxu1 %vm3593_vm1, %v1823_v24  ;;  %v1832_v44 = vpack.c.bf16 %v1195_v28, %v2967_v59  ;;  %vm3664_vm3 = vcmask 252928   ;;  %vm3667_vm11 = vcmask 261120   ;;  %v2142_v27 = vunpack.i.h.bf16 %v3047_v56 }
 0x220   : > { %v3139_v17 = vpop.permute.xlu1 %2144  ;;  %v1094_v24 = vsel %vm3664_vm3, %v2116_v15, %v3498_v6  ;;  %v1135_v29 = vsel %vm3665_vm13, %v3500_v11, %v2126_v4  ;;  %v1093_v4 = vsel %vm3664_vm3, %v2112_v58, %v2116_v15  ;;  %vm3669_vm13 = vnez %v3531_v45 }
 0x221   : > { %3661 = vst [vmem:[#allocation14_spill] sm:$0xff] %v3139_v17  ;;  %v2146_v13 = vunpack.i.l.bf16 %v3139_v17  ;;  %v1835_v39 = vpack.c.bf16 %v1136_v3, %v1094_v24  ;;  %vm3670_vm2 = vmpackc.low %vm3669_vm13, %vm2587_vm4  ;;  %v1838_v3 = vpack.c.bf16 %v1135_v29, %v1093_v4  ;;  %v3671_v24 = vunpack.i.h.bf16 %v3123_v12 }
 0x222   : > { %v3137_v43 = vpop.permute.xlu0 %2194  ;;  %1827 = vmatpush1.bf16.msk.msra.mxu1 %vm3662_vm0, %v1826_v33  ;;  %v2136_v33 = vunpack.i.l.bf16 %v3123_v12  ;;  %v2132_v11 = vunpack.i.h.bf16 %v3045_v35  ;;  %vm3675_vm3 = vnez %v3533_v10  ;;  %v2186_v23 = vunpack.i.l.bf16 %v3121_v40 }
 0x223   : > { %1830 = vmatprep.subr.msk.bf16.mxu1 %vm3663_vm7, %v1829_v9  ;;  %v2197_v19 = vunpack.i.h.bf16 %v3137_v43  ;;  %v3504_v41 = vunpack.i.l.bf16 %v3137_v43  ;;  %v3666_v9 = vunpack.i.h.bf16 %v3139_v17  ;;  %vm3668_vm7 = vnez %v3571_v7  ;;  %vm3676_vm4 = vmpackc.low %vm3675_vm3, %vm2555_vm6 }
 0x224   : > { %v3165_v6 = vpop.permute.xlu1 %2169  ;;  %vm3684_vm13 = vcmask 1039360   ;;  %vm3689_vm3 = vcmask 252928  }
 0x225   : > { %v1322_v59 = vsel %vm3667_vm11, %v2146_v13, %v3666_v9  ;;  %vm3672_vm11 = vcmask 269312  }
 0x226   : > { %v3163_v28 = vpop.permute.xlu0 %2199  ;;  %1833 = vmatpush1.bf16.msk.msra.mxu1 %vm3668_vm7, %v1832_v44  ;;  %v1052_v9 = vsel %vm3672_vm11, %v2136_v33, %v3671_v24  ;;  %vm3673_vm7 = vcmask 777216   ;;  %v1321_v44 = vsel %vm3674_vm14, %v2142_v27, %v2146_v13  ;;  %vm3681_vm14 = vcmask 1043456  }
 0x227   : > { %1836 = vmatprep.subr.msk.bf16.mxu1 %vm3670_vm2, %v1835_v39  ;;  %v1283_v7 = vsel %vm3673_vm7, %v3504_v41, %v2197_v19  ;;  %v1841_v15 = vpack.c.bf16 %v1322_v59, %v1052_v9  ;;  %vm3677_vm2 = vmmov %vm3672_vm11  ;;  %v2106_v59 = vunpack.i.l.bf16 %v3079_v22  ;;  %v3680_v9 = vmov 0  }
 0x228   : > { %v3184_v17 = vpop.permute.xlu1 %1301  ;;  %v1051_v26 = vsel %vm3677_vm2, %v2132_v11, %v2136_v33  ;;  %v1299_v39 = vsel %vm2845_vm5, %v1283_v7, 0.0  ;;  %vm3678_vm6 = vmmov %vm3673_vm7  ;;  %vm3686_vm11 = vcmask 785408   ;;  %vm3688_vm7 = vcmask 793600  }
 0x229   : > { %v1844_v45 = vpack.c.bf16 %v1321_v44, %v1051_v26  ;;  %v1407_v33 = vpack.c.bf16 %v1299_v39, %v1299_v39  ;;  %v2111_v44 = vunpack.i.l.bf16 %v3041_v30  ;;  %v3685_v39 = vunpack.i.l.bf16 %v3066_v14 }
 0x22a   : > { %1839 = vmatpush1.bf16.msk.msra.mxu1 %vm3676_vm4, %v1838_v3  ;;  %v3194_v29 = vpop.permute.xlu0 %2204  ;;  %v2131_v41 = vunpack.i.l.bf16 %v3045_v35  ;;  %v2141_v14 = vunpack.i.l.bf16 %v3047_v56  ;;  %vm3690_vm4 = vnez %v3517_v1  ;;  %vm3692_vm2 = vcmask 7168  }
 0x22b   : > { %1842 = vmatprep.subr.msk.bf16.mxu1 %vm3593_vm1, %v1841_v15  ;;  %vm3679_vm1 = vcmask 588800   ;;  %v3683_v15 = vunpack.i.h.bf16 %v3079_v22  ;;  %v2177_v56 = vunpack.i.h.bf16 %v3086_v16 }
 0x22c   : > { %v1276_v13 = vpop.permute.xlu1 %1275 }
 0x22d   : > { %v1284_v10 = vsel %vm3678_vm6, %v2197_v19, %v1276_v13  ;;  %v1194_v26 = vsel %vm3684_vm13, %v2106_v59, %v3683_v15  ;;  %v1353_v13 = vsel %vm3686_vm11, %v2186_v23, %v3685_v39  ;;  %v1092_v15 = vsel %vm3689_vm3, %v2111_v44, %v2112_v58  ;;  %vm3698_vm11 = vmmov %vm3689_vm3 }
 0x22e   : > { %1845 = vmatpush1.bf16.msk.msra.mxu1 %vm3662_vm0, %v1844_v45  ;;  %v1300_v46 = vsel %vm2837_vm10, %v1284_v10, 0.0  ;;  %v3212_v3 = vpop.permute.xlu0 %2209  ;;  %vm3682_vm0 = vmmov %vm3681_vm14  ;;  %v2121_v45 = vunpack.i.l.bf16 %v3043_v61  ;;  %v3687_v10 = vunpack.i.l.bf16 %v3059_v37  ;;  %v2171_v23 = vunpack.i.l.bf16 %v3165_v6 }
 0x22f   : > { %v1408_v4 = vpack.c.bf16 %v1300_v46, %v1300_v46  ;;  %v1438_v7 = vsel %vm3682_vm0, %v1407_v33, 0  ;;  %v3691_v37 = vunpack.i.h.bf16 %v3043_v61  ;;  %v2206_v39 = vunpack.i.l.bf16 %v3194_v29 }
 0x230   : > { %v3214_v24 = vpop.permute.xlu1 %2179  ;;  %vm3693_vm6 = vnez %v3519_v8  ;;  %v2201_v61 = vunpack.i.l.bf16 %v3163_v28  ;;  %vm3696_vm0 = vcmask 261120   ;;  %v2212_v12 = vunpack.i.h.bf16 %v3212_v3 }
 0x231   : > { %1846 = vmatmul.mubr.msk.bf16.vlgmr.msra.gmra.mxu1 %vm3679_vm1, %v3203_v50  ;;  %v2181_v19 = vunpack.i.l.bf16 %v3214_v24  ;;  %1873 = vmatprep.subr.msk.bf16.mxu1 %vm3681_vm14, %v1408_v4  ;;  %vm3694_vm1 = vmmov %vm3684_vm13  ;;  %vm3695_vm14 = vcmask 269312   ;;  %vm3700_vm3 = vnez %v3521_v2  ;;  %v2182_v36 = vunpack.i.h.bf16 %v3214_v24 }
 0x232   : > { %1598 = vmatprep.mubr.bf16.mxu1 %v3680_v9  ;;  %1573 = vmatpush1.bf16.msra.mxu1 %v1438_v7  ;;  %v1803_v7 = vpack.c.bf16 %v1194_v26, %v2958_v42  ;;  %v3234_v30 = vpop.permute.xlu0 %2214  ;;  %v2166_v42 = vunpack.i.l.bf16 %v3077_v20  ;;  %v2207_v26 = vunpack.i.h.bf16 %v3194_v29  ;;  %vm3697_vm13 = vmmov %vm3692_vm2 }
 0x233   : > { %v1235_v46 = vsel %vm3688_vm7, %v2181_v19, %v3687_v10  ;;  %v1134_v19 = vsel %vm3692_vm2, %v2121_v45, %v3691_v37  ;;  %v1320_v37 = vsel %vm3696_vm0, %v2141_v14, %v2142_v27  ;;  %v1133_v29 = vsel %vm3697_vm13, %v2171_v23, %v2121_v45 }
 0x234   : > { %v3231_v4 = vpop.permute.xlu1 %2189  ;;  %v1800_v33 = vpack.c.bf16 %v1353_v13, %v1235_v46  ;;  %v2202_v13 = vunpack.i.h.bf16 %v3163_v28  ;;  %v1809_v46 = vpack.c.bf16 %v1134_v19, %v1092_v15  ;;  %v1091_v8 = vsel %vm3698_vm11, %v2166_v42, %v2111_v44 }
 0x235   : > { %v2191_v22 = vunpack.i.l.bf16 %v3231_v4  ;;  %vm3699_vm7 = vcmask 785408   ;;  %vm3702_vm2 = vcmask 777216   ;;  %v3703_v28 = vunpack.i.l.bf16 %v3137_v43 }
 0x236   : > { %1801 = vmatpush1.bf16.msk.msra.mxu0 %vm3690_vm4, %v1800_v33  ;;  %v1050_v33 = vsel %vm3695_vm14, %v2131_v41, %v2132_v11  ;;  %v3701_v11 = vunpack.i.l.bf16 %v3086_v16  ;;  %vm3706_vm14 = vnez %v3511_v48  ;;  %vm3708_vm13 = vmmov %vm3699_vm7  ;;  %v1812_v15 = vpack.c.bf16 %v1133_v29, %v1091_v8 }
 0x237   : > { %1804 = vmatprep.subr.msk.bf16.mxu0 %vm3693_vm6, %v1803_v7  ;;  %v1193_v58 = vsel %vm3694_vm1, %v2191_v22, %v2106_v59  ;;  %v1359_v7 = vsel %vm3699_vm7, %v2206_v39, %v2207_v26  ;;  %v2211_v59 = vunpack.i.l.bf16 %v3212_v3  ;;  %v3263_v22 = vpop.permute.xlu0 %2219  ;;  %vm3704_vm6 = vmmov %vm3702_vm2  ;;  %vm3705_vm1 = vcmask 793600  }
 0x238   : > { %v1234_v35 = vpop.permute.xlu1 %1233  ;;  %v1806_v10 = vpack.c.bf16 %v1193_v58, %v2956_v60  ;;  %v1281_v27 = vsel %vm3702_vm2, %v3701_v11, %v2177_v56  ;;  %v1282_v44 = vsel %vm3704_vm6, %v2177_v56, %v3703_v28  ;;  %vm3707_vm0 = vmpackc.low %vm3706_vm14, %vm3642_vm8  ;;  %v1815_v23 = vpack.c.bf16 %v1320_v37, %v1050_v33  ;;  %v3738_v28 = vld [vmem:[#allocation12_spill] sm:$0xff] }
 0x239   : > { %v1242_v45 = vsel %vm3705_vm1, %v2202_v13, %v1234_v35  ;;  %vm3709_vm11 = vmmov %vm3705_vm1  ;;  %vm3710_vm7 = vcmask 261120   ;;  %vm3712_vm2 = vcmask 1039360   ;;  %vm3713_vm8 = vnez %v3515_v55 }
 0x23a   : > { %1807 = vmatpush1.bf16.msk.msra.mxu0 %vm3700_vm3, %v1806_v10  ;;  %v1241_v3 = vsel %vm3709_vm11, %v2201_v61, %v2202_v13  ;;  %v1319_v43 = vsel %vm3710_vm7, %v3184_v17, %v2141_v14  ;;  %vm3711_vm3 = vnez %v3527_v31  ;;  %v1199_v48 = vsel %vm3712_vm2, %v2211_v59, %v2212_v12  ;;  %vm3714_vm6 = vmpackc.low %vm3713_vm8, %vm3640_vm9 }
 0x23b   : > { %1810 = vmatprep.subr.msk.bf16.mxu0 %vm3707_vm0, %v1809_v46  ;;  %v1878_v19 = vpack.c.bf16 %v1359_v7, %v1241_v3  ;;  %v1298_v42 = vsel %vm3711_vm3, %v1282_v44, 0.0  ;;  %vm3715_vm1 = vnez %v3529_v38  ;;  %vm3716_vm14 = vcmask 269312   ;;  %vm3717_vm0 = vmmov %vm3712_vm2  ;;  %v3303_v55 = vpop.permute.xlu0 %2224  ;;  %v3732_v7 = vld [vmem:[#allocation5_spill] sm:$0xff] }
 0x23c   : > { %v1352_v60 = vpop.permute.xlu1 %1351  ;;  %v1297_v17 = vsel %vm3715_vm1, %v1281_v27, 0.0  ;;  %v1049_v14 = vsel %vm3716_vm14, %v3105_v34, %v2131_v41  ;;  %v2187_v56 = vunpack.i.h.bf16 %v3121_v40  ;;  %v1884_v58 = vpack.c.bf16 %v1199_v48, %v3000_v51  ;;  %vm3719_vm9 = vmmov %vm3709_vm11 }
 0x23d   : > { %v1360_v2 = vsel %vm3708_vm13, %v2207_v26, %v1352_v60  ;;  %vm3718_vm13 = vnez %v3621_v21  ;;  %v1818_v32 = vpack.c.bf16 %v1319_v43, %v1049_v14  ;;  %v1406_v13 = vpack.c.bf16 %v1298_v42, %v1298_v42  ;;  %vm3725_vm8 = vmmov %vm3719_vm9  ;;  %v3745_v43 = vld [vmem:[#allocation7_spill] sm:$0xff] }
 0x23e   : > { %v1875_v16 = vpack.c.bf16 %v1360_v2, %v1242_v45  ;;  %1813 = vmatpush1.bf16.msk.msra.mxu0 %vm3714_vm6, %v1812_v15  ;;  %v1405_v10 = vpack.c.bf16 %v1297_v17, %v1297_v17  ;;  %v1240_v34 = vsel %vm3719_vm9, %v2182_v36, %v2201_v61  ;;  %v2222_v54 = vunpack.i.h.bf16 %v3263_v22  ;;  %v3740_v15 = vld [vmem:[#allocation6_spill] sm:$0xff] }
 0x23f   : > { %1816 = vmatprep.subr.msk.bf16.mxu0 %vm3648_vm12, %v1815_v23  ;;  %v2192_v41 = vunpack.i.h.bf16 %v3231_v4  ;;  %vm3720_vm12 = vnez %v3625_v18  ;;  %vm3721_vm11 = vcmask 1043456   ;;  %vm3722_vm7 = vnez %v3628_v52  ;;  %v2235_v37 = vpop.permute.xlu0 %2234  ;;  %v3742_v23 = vld [vmem:[#allocation9_spill] sm:$0xff] }
 0x240   : > { %v1192_v26 = vpop.permute.xlu1 %1191  ;;  %1876 = vmatprep.subr.msk.bf16.mxu1 %vm2879_vm15, %v1875_v16  ;;  %vm3723_vm2 = vcmask 785408   ;;  %v2217_v51 = vunpack.i.h.bf16 %v3234_v30  ;;  %v3724_v4 = vunpack.i.h.bf16 %v3050_v47  ;;  %vm3727_vm6 = vmmov %vm3721_vm11  ;;  %vm3728_vm14 = vcmask 7168  }
 0x241   : > { %v1200_v24 = vsel %vm3717_vm0, %v2212_v12, %v1192_v26  ;;  %1879 = vmatpush1.bf16.msk.msra.mxu1 %vm3718_vm13, %v1878_v19  ;;  %v2221_v12 = vunpack.i.l.bf16 %v3263_v22  ;;  %v1358_v40 = vsel %vm3723_vm2, %v2187_v56, %v2206_v39  ;;  %v1432_v18 = vsel %vm3727_vm6, %v1405_v10, 0  ;;  %vm3730_vm9 = vmmov %vm3723_vm2 }
 0x242   : > { %v1881_v35 = vpack.c.bf16 %v1200_v24, %v3002_v62  ;;  %1819 = vmatpush1.bf16.msk.msra.mxu0 %vm3690_vm4, %v1818_v32  ;;  %v2216_v62 = vunpack.i.l.bf16 %v3234_v30  ;;  %v1239_v1 = vsel %vm3725_vm8, %v3724_v4, %v2182_v36  ;;  %v1849_v61 = vpack.c.bf16 %v1358_v40, %v1240_v34  ;;  %vm3737_vm8 = vmmov %vm3717_vm0  ;;  %v3753_v36 = vld [vmem:[#allocation11_spill] sm:$0xff] }
 0x243   : > { %1847 = vmatprep.subr.msk.bf16.mxu0 %vm3721_vm11, %v1406_v13  ;;  %vm3726_vm4 = vcmask 588800   ;;  %v1139_v33 = vsel %vm3728_vm14, %v2221_v12, %v2222_v54  ;;  %v1198_v52 = vsel %vm3717_vm0, %v2192_v41, %v2211_v59  ;;  %v3729_v30 = vunpack.i.h.bf16 %v3057_v53 }
 0x244   : > { %v1090_v46 = vpop.permute.xlu1 %1089  ;;  %1882 = vmatprep.subr.msk.bf16.mxu1 %vm3720_vm12, %v1881_v35  ;;  %v2172_v29 = vunpack.i.h.bf16 %v3165_v6  ;;  %vm3731_vm12 = vcmask 252928   ;;  %vm3733_vm11 = vnez %v3732_v7  ;;  %v3736_v11 = vunpack.i.h.bf16 %v3064_v57 }
 0x245   : > { %1885 = vmatpush1.bf16.msk.msra.mxu1 %vm3722_vm7, %v1884_v58  ;;  %1820 = vmatmul.mubr.msk.bf16.vlgmr.msra.gmra.mxu0 %vm3726_vm4, %v3203_v50  ;;  %v1357_v47 = vsel %vm3730_vm9, %v3729_v30, %v2187_v56  ;;  %v1098_v8 = vsel %vm3731_vm12, %v2217_v51, %v1090_v46  ;;  %vm3734_vm7 = vmmov %vm3728_vm14  ;;  %v1855_v44 = vpack.c.bf16 %v1198_v52, %v3738_v28  ;;  %v2237_v45 = vunpack.i.h.bf16 %v2235_v37  ;;  %v3760_v58 = vld [vmem:[#allocation3_spill] sm:$0xff] }
 0x246   : > { %1532 = vmatpush1.bf16.msra.mxu0 %v1432_v18  ;;  %1557 = vmatprep.mubr.bf16.mxu0 %v3680_v9  ;;  %vm3735_vm2 = vmmov %vm3731_vm12  ;;  %v1852_v60 = vpack.c.bf16 %v1357_v47, %v1239_v1  ;;  %v1197_v9 = vsel %vm3737_vm8, %v3736_v11, %v2192_v41  ;;  %v2236_v6 = vunpack.i.l.bf16 %v2235_v37  ;;  %v2167_v2 = vunpack.i.h.bf16 %v3077_v20  ;;  %v3747_v20 = vld [vmem:[#allocation10_spill] sm:$0xff]  ;;  %v3770_v1 = vld [vmem:[#allocation4_spill] sm:$0xff] }
 0x247   : > { %1850 = vmatprep.subr.msk.bf16.mxu0 %vm3733_vm11, %v1849_v61  ;;  %v1097_v59 = vsel %vm3735_vm2, %v2216_v62, %v2217_v51  ;;  %vm3739_vm4 = vmmov %vm3734_vm7  ;;  %vm3741_vm6 = vnez %v3740_v15  ;;  %vm3743_vm14 = vnez %v3742_v23  ;;  %v2227_v57 = vunpack.i.h.bf16 %v3303_v55  ;;  %v3773_v61 = vld [vmem:[#allocation13_spill] sm:$0xff] }
 0x248   : > { %v1132_v39 = vpop.permute.xlu1 %1131  ;;  %v1890_v53 = vpack.c.bf16 %v1139_v33, %v1097_v59  ;;  %v1138_v3 = vsel %vm3739_vm4, %v2172_v29, %v2221_v12  ;;  %vm3744_vm0 = vmpackc.low %vm3743_vm14, %vm2837_vm10  ;;  %v2226_v19 = vunpack.i.l.bf16 %v3303_v55  ;;  %vm3746_vm9 = vnez %v3745_v43  ;;  %v3755_v55 = vld [vmem:[#allocation8_spill] sm:$0xff] }
 0x249   : > { %v1140_v22 = vsel %vm3734_vm7, %v2222_v54, %v1132_v39  ;;  %vm3748_vm12 = vnez %v3747_v20  ;;  %v3750_v42 = vunpack.i.h.bf16 %v3107_v25  ;;  %vm3751_vm2 = vmmov %vm3739_vm4  ;;  %vm3752_vm8 = vcmask 252928   ;;  %v3763_v54 = vld [vmem:[#allocation14_spill] sm:$0xff] }
 0x24a   : > { %v1887_v27 = vpack.c.bf16 %v1140_v22, %v1098_v8  ;;  %1853 = vmatpush1.bf16.msk.msra.mxu0 %vm3741_vm6, %v1852_v60  ;;  %vm3749_vm7 = vmpackc.low %vm3748_vm12, %vm2845_vm5  ;;  %v1096_v0 = vsel %vm3752_vm8, %v2167_v2, %v2216_v62  ;;  %v1858_v26 = vpack.c.bf16 %v1197_v9, %v3753_v36  ;;  %vm3754_vm10 = vcmask 261120  }
 0x24b   : > { %1856 = vmatprep.subr.msk.bf16.mxu0 %vm3746_vm9, %v1855_v44  ;;  %v1137_v48 = vsel %vm3751_vm2, %v3750_v42, %v2172_v29  ;;  %v1861_v17 = vpack.c.bf16 %v1138_v3, %v1096_v0  ;;  %v1324_v14 = vsel %vm3754_vm10, %v2236_v6, %v2237_v45  ;;  %vm3756_vm4 = vnez %v3755_v55  ;;  %vm3758_vm5 = vmmov %vm3752_vm8  ;;  %v1414_v37 = vpop.permute.xlu0 %1413 }
 0x24c   : > { %v2230_v16 = vpop.permute.xlu1 %2229  ;;  %1888 = vmatprep.subr.msk.bf16.mxu1 %vm3744_vm0, %v1887_v27  ;;  %v1095_v56 = vsel %vm3758_vm5, %v3757_v5, %v2167_v2  ;;  %vm3759_vm14 = vcmask 269312   ;;  %vm3761_vm0 = vnez %v3760_v58  ;;  %v3764_v12 = vunpack.i.h.bf16 %v3763_v54  ;;  %vm3765_vm12 = vmmov %vm3754_vm10 }
 0x24d   : > { %1891 = vmatpush1.bf16.msk.msra.mxu1 %vm3749_vm7, %v1890_v53  ;;  %v2232_v24 = vunpack.i.h.bf16 %v2230_v16  ;;  %v2231_v32 = vunpack.i.l.bf16 %v2230_v16  ;;  %v1054_v25 = vsel %vm3759_vm14, %v2226_v19, %v2227_v57  ;;  %vm3762_vm9 = vmpackc.low %vm3761_vm0, %vm3711_vm3  ;;  %v1864_v34 = vpack.c.bf16 %v1137_v48, %v1095_v56 }
 0x24e   : > { %1859 = vmatpush1.bf16.msk.msra.mxu0 %vm3756_vm4, %v1858_v26  ;;  %v1323_v41 = vsel %vm3765_vm12, %v3764_v12, %v2236_v6  ;;  %v1867_v46 = vpack.c.bf16 %v1324_v14, %v1054_v25  ;;  %vm3766_vm7 = vmmov %vm3759_vm14  ;;  %vm3771_vm3 = vnez %v3770_v1  ;;  %v3774_v18 = vunpack.i.h.bf16 %v3773_v61 }
 0x24f   : > { %1862 = vmatprep.subr.msk.bf16.mxu0 %vm3762_vm9, %v1861_v17  ;;  %v1055_v63 = vsel %vm3766_vm7, %v2227_v57, %v2231_v32  ;;  %vm3767_vm2 = vmmov %vm3766_vm7 }
 0x250   : > { %v2240_v35 = vpop.permute.xlu1 %2239  ;;  %v1056_v40 = vsel %vm3767_vm2, %v2231_v32, %v2232_v24  ;;  %vm3768_vm8 = vmmov %vm3754_vm10 }
 0x251   : > { %v2242_v13 = vunpack.i.h.bf16 %v2240_v35  ;;  %v2241_v10 = vunpack.i.l.bf16 %v2240_v35  ;;  %vm3769_vm10 = vmmov %vm3768_vm8 }
 0x252   : > { %vm3772_vm4 = vmpackc.low %vm3771_vm3, %vm3715_vm1  ;;  %vm3776_vm1 = vcmask 588800  }
 0x253   : > { %v1325_v51 = vsel %vm3768_vm8, %v2237_v45, %v2241_v10  ;;  %v1326_v62 = vsel %vm3769_vm10, %v2241_v10, %v2242_v13  ;;  %1865 = vmatpush1.bf16.msk.msra.mxu0 %vm3772_vm4, %v1864_v34  ;;  %vm3775_vm5 = vmmov %vm3767_vm2 }
 0x254   : > { %v1893_v4 = vpack.c.bf16 %v1326_v62, %v1056_v40  ;;  %v1896_v31 = vpack.c.bf16 %v1325_v51, %v1055_v63  ;;  %v1053_v33 = vsel %vm3775_vm5, %v3774_v18, %v2226_v19  ;;  %1868 = vmatprep.subr.msk.bf16.mxu0 %vm3733_vm11, %v1867_v46  ;;  %vm3777_vm14 = vmmov %vm3776_vm1 }
 0x255   : > { %v1870_v52 = vpack.c.bf16 %v1323_v41, %v1053_v33 }
 0x256   : > { %1894 = vmatprep.subr.msk.bf16.mxu1 %vm2879_vm15, %v1893_v4 }
 0x257   : > { %1897 = vmatpush1.bf16.msk.msra.mxu1 %vm3718_vm13, %v1896_v31  ;;  %1871 = vmatpush1.bf16.msk.msra.mxu0 %vm3741_vm6, %v1870_v52 }
 0x25a   : > { %1898 = vmatmul.mubr.msk.bf16.vlgmr.msra.gmra.mxu1 %vm3776_vm1, %v3203_v50  ;;  %1872 = vmatmul.mubr.msk.bf16.vlgmr.msra.gmra.mxu0 %vm3777_vm14, %v3203_v50 }
 0x2f1   : > { %v1518_v38 = vpop.f32.mrf.mxu1 }
 0x2f2   : > { %v1519_v30 = vadd.f32 %v1518_v38, %v1414_v37 }
 0x2f3   : > { %v1520_v39 = vpop.f32.mrf.mxu1 }
 0x2f4   : > { %v1521_v47 = vadd.f32 %v1520_v39, %v1414_v37 }
 0x2f5   : > { %v1522_v49 = vpop.f32.mrf.mxu1 }
 0x2f6   : > { %v1616_v21 = vcombine.low %v1519_v30, %v1521_v47 }
 0x2f7   : > { %v1523_v29 = vpop.f32.mrf.mxu1 }
 0x2f8   : > { %1624 = vst [vmem:[%s224_s17 + $0x8] sm:$0x77] %v1616_v21 }
 0x305   : > { %v1477_v8 = vpop.f32.mrf.mxu0 }
 0x306   : > { %v1478_v22 = vadd.f32 %v1477_v8, %v1414_v37 }
 0x307   : > { %v1479_v7 = vpop.f32.mrf.mxu0 }
 0x308   : > { %v1480_v59 = vadd.f32 %v1479_v7, %v1414_v37 }
 0x309   : > { %v1481_v60 = vpop.f32.mrf.mxu0 }
 0x30a   : > { %v1615_v50 = vcombine.low %v1478_v22, %v1480_v59 }
 0x30b   : > { %v1482_v11 = vpop.f32.mrf.mxu0 }
 0x30c   : > { %1623 = vst [vmem:[%s224_s17] sm:$0x77] %v1615_v50 }
 0x31a   : > { %v1600_v9 = vpop.f32.mrf.mxu1  ;;  %v1559_v27 = vpop.f32.mrf.mxu0 }
 0x31b   : > { %v1601_v28 = vadd.f32 %v1600_v9, %v1414_v37  ;;  %v1560_v6 = vadd.f32 %v1559_v27, %v1414_v37 }
 0x31c   : > { %v1602_v53 = vpop.f32.mrf.mxu1  ;;  %v1561_v44 = vpop.f32.mrf.mxu0 }
 0x31d   : > { %v1603_v45 = vadd.f32 %v1602_v53, %v1414_v37  ;;  %v1562_v2 = vadd.f32 %v1561_v44, %v1414_v37 }
 0x31e   : > { %v1604_v3 = vpop.f32.mrf.mxu1  ;;  %v1563_v16 = vpop.f32.mrf.mxu0 }
 0x31f   : > { %v1618_v15 = vcombine.low %v1601_v28, %v1603_v45  ;;  %v1617_v23 = vcombine.low %v1560_v6, %v1562_v2 }
 0x320   : > { %v1605_v57 = vpop.f32.mrf.mxu1  ;;  %v1564_v19 = vpop.f32.mrf.mxu0 }
 0x321   : > { %1626 = vst [vmem:[%s224_s17 + $0x18] sm:$0x77] %v1618_v15  ;;  %1625 = vst [vmem:[%s224_s17 + $0x10] sm:$0x77] %v1617_v23 }
 0x322 PF: > { %s15_s18 = sadd.s32 1, %s2249_s18  }
 0x323   : > { %p12_p4 = scmp.ge.s32.totalorder %s15_s18, 4  }
 0x325   :  { %14 = sbr.rel (!%p12_p4) target bundleno = 1 (0x1), region = 70 }

</bundles_post_ra>
